<compile_context>
chip_gen: v7x
topology: tpu7x:2x2x1
jax: 0.10.0
libtpu: 0.0.40
codegen_flags: <defaults>
</compile_context>

<pallas_src>
import functools
import math

import jax
import jax.numpy as jnp
from jax import lax
from jax.experimental import pallas as pl
from jax.experimental.pallas import tpu as pltpu

B_J0 = 0.01     # b_j0
BETA = 1.8      # isAdapt = 1
# R_m = 1 and dt = 1 are multiplicative identities and are folded out.


def _mem_update_adp(inp, mem, spike, b, alpha, ro):
    """Forward semantics of mem_update_adp / ActFun_adp.

    `spike` is bf16 (exactly 0/1 after the first step); `mem`, `b`, `inp` are
    f32; `alpha`, `ro` are (1, H) and sublane-broadcast inside the VPU ops.
    """
    b = ro * b + (1.0 - ro) * spike
    Bth = B_J0 + BETA * b
    mem = mem * alpha + inp - Bth * spike
    new_spike = (mem - Bth > 0.0).astype(jnp.bfloat16)
    return mem, new_spike, b


def _alif_kernel(feed1_ref,                            # (Tc, Bb, H1) f32: x@Wi1 + bi1 + bh1
                 wh1_ref,                              # (H1, H1) bf16
                 wi2_ref, wh2_ref, b2_ref,             # (H1,H2) bf16, (H2,H2) bf16, (1,H2) f32
                 wi3_ref, b3_ref,                      # (H2,H3) bf16, (1,H3) f32
                 wo_ref, bo_ref,                       # (H3,O) bf16, (1,O) f32
                 a1_ref, r1_ref, a2_ref, r2_ref, a3_ref, r3_ref,   # (1,H) f32 decays
                 init1_ref, init2_ref, init3_ref,      # (Bb,H) f32
                 out_ref,                              # (Bb,O) or (Tc,Bb,O) f32
                 spk3_slab,                            # (Tc,Bb,H3) bf16 scratch
                 mem1_s, spk1_s, bb1_s,
                 mem2_s, spk2_s, bb2_s,
                 mem3_s, spk3_s, bb3_s,
                 *, per_step_output: bool, last_local: int):
    t_blk = pl.program_id(1)
    t_chunk, b_blk, _ = feed1_ref.shape
    H3 = wo_ref.shape[0]
    Op = wo_ref.shape[1]

    # ---- (re)initialize recurrent state at the first time chunk -------------
    @pl.when(t_blk == 0)
    def _():
        mem1_s[...] = init1_ref[...]
        spk1_s[...] = init1_ref[...].astype(jnp.bfloat16)
        bb1_s[...] = jnp.full(mem1_s.shape, B_J0, jnp.float32)
        mem2_s[...] = init2_ref[...]
        spk2_s[...] = init2_ref[...].astype(jnp.bfloat16)
        bb2_s[...] = jnp.full(mem2_s.shape, B_J0, jnp.float32)
        mem3_s[...] = init3_ref[...]
        spk3_s[...] = init3_ref[...].astype(jnp.bfloat16)
        bb3_s[...] = jnp.full(mem3_s.shape, B_J0, jnp.float32)

    # (1, H) decay factors / folded biases -- no broadcast materialization.
    alpha1 = a1_ref[...]; ro1 = r1_ref[...]
    alpha2 = a2_ref[...]; ro2 = r2_ref[...]
    alpha3 = a3_ref[...]; ro3 = r3_ref[...]
    bias2 = b2_ref[...]
    bias3 = b3_ref[...]

    # ---- sequential recurrence over this time chunk --------------------------
    def step(t, carry):
        mem1, spk1, b1, mem2, spk2, b2, mem3, spk3, b3 = carry

        rec1 = jnp.dot(spk1, wh1_ref[...], preferred_element_type=jnp.float32)
        mem1, spk1, b1 = _mem_update_adp(feed1_ref[t] + rec1,
                                         mem1, spk1, b1, alpha1, ro1)

        # layer 2: two bf16 matmuls accumulating into f32 (no concat / cast).
        h2_in = (jnp.dot(spk1, wi2_ref[...], preferred_element_type=jnp.float32)
                 + jnp.dot(spk2, wh2_ref[...], preferred_element_type=jnp.float32)
                 + bias2)
        mem2, spk2, b2 = _mem_update_adp(h2_in, mem2, spk2, b2, alpha2, ro2)

        h3_in = (jnp.dot(spk2, wi3_ref[...], preferred_element_type=jnp.float32)
                 + bias3)
        mem3, spk3, b3 = _mem_update_adp(h3_in, mem3, spk3, b3, alpha3, ro3)

        spk3_slab[t] = spk3     # readout hoisted off the recurrent critical path
        return (mem1, spk1, b1, mem2, spk2, b2, mem3, spk3, b3)

    carry0 = (mem1_s[...], spk1_s[...], bb1_s[...],
              mem2_s[...], spk2_s[...], bb2_s[...],
              mem3_s[...], spk3_s[...], bb3_s[...])
    carry = lax.fori_loop(0, t_chunk, step, carry0, unroll=True)
    (mem1, spk1, b1, mem2, spk2, b2, mem3, spk3, b3) = carry

    # persist state for the next time chunk
    mem1_s[...] = mem1; spk1_s[...] = spk1; bb1_s[...] = b1
    mem2_s[...] = mem2; spk2_s[...] = spk2; bb2_s[...] = b2
    mem3_s[...] = mem3; spk3_s[...] = spk3; bb3_s[...] = b3

    bias_o = bo_ref[...]
    if per_step_output:
        # One batched readout for the whole chunk: M = t_chunk * b_blk.
        s3 = spk3_slab[...].reshape(t_chunk * b_blk, H3)
        logits = jnp.dot(s3, wo_ref[...],
                         preferred_element_type=jnp.float32) + bias_o
        out_ref[...] = jax.nn.sigmoid(logits).reshape(t_chunk, b_blk, Op)
    else:
        # Only the last chunk's readout survives: compute / store it once, from
        # the true last step's spikes (static local index handles padded tails).
        @pl.when(t_blk == pl.num_programs(1) - 1)
        def _():
            logits = (jnp.dot(spk3_slab[last_local], wo_ref[...],
                              preferred_element_type=jnp.float32) + bias_o)
            out_ref[...] = jax.nn.sigmoid(logits)


# -------------------------------------------------------------------------
# wrapper
# -------------------------------------------------------------------------
def _round_up(n, m):
    return ((n + m - 1) // m) * m


def _pad_to(a, shape, value=0.0):
    pads = [(0, s - d) for d, s in zip(a.shape, shape)]
    return jnp.pad(a, pads, constant_values=value)


def _num_tensorcore_splits():
    # Best-effort: on v7x (2 TensorCores per chip) prefer >= 2 batch blocks so
    # the "parallel" grid axis can shard across cores.
    try:
        kind = (jax.devices()[0].device_kind or "").lower()
        if "v7" in kind:
            return 2
    except Exception:
        pass
    return 1


def _pick_batch_block(bp, min_blocks=1, cap=256):
    """Largest multiple-of-8 divisor of bp (<= cap) that still yields at least
    `min_blocks` batch blocks; falls back to the largest divisor if impossible."""
    best = None
    for d in range(8, min(bp, cap) + 1, 8):
        if bp % d == 0 and bp // d >= min_blocks:
            best = d
    if best is None:
        best = 8
        for d in range(8, min(bp, cap) + 1, 8):
            if bp % d == 0:
                best = d
    return best


def _const_spec(arr):
    nd = arr.ndim
    return pl.BlockSpec(arr.shape, lambda b, t, _nd=nd: (0,) * _nd)


def alif_forward(x, params, init_states, time_window, task="duration",
                 *, max_t_chunk=16):
    """x: (batch, input_size, time) float32, same layout as the torch module."""
    x = x.astype(jnp.float32)
    B, Din, _ = x.shape
    T = int(time_window)

    H1 = params["wh1"].shape[0]
    H2 = params["wh2"].shape[0]
    H3 = params["wi3"].shape[1]
    O = params["wo"].shape[1]
    H1p, H2p, H3p = (_round_up(h, 128) for h in (H1, H2, H3))
    Op = _round_up(O, 128)
    Bp = _round_up(B, 8)

    per_step = task in ("syn", "recall")

    # time chunking with zero-padded tail (handles prime / odd T).
    t_chunk = min(max_t_chunk, T)
    n_chunks = -(-T // t_chunk)
    T_pad = n_chunks * t_chunk
    last_local = (T - 1) - (n_chunks - 1) * t_chunk   # static in-chunk index of step T-1

    b_blk = _pick_batch_block(Bp, min_blocks=_num_tensorcore_splits())

    # ---- layer-1 input projection precomputed with plain XLA (lane-dense) ---
    x_t = jnp.transpose(x[:, :, :T], (2, 0, 1))                   # (T, B, Din)
    feed1 = (jnp.einsum("tbd,dh->tbh", x_t, params["wi1"])
             + (params["bi1"] + params["bh1"]))                   # (T, B, H1)
    feed1 = _pad_to(feed1.astype(jnp.float32), (T_pad, Bp, H1p))

    # ---- pad / fuse / cast parameters (done once, outside the kernel) -------
    wh1 = _pad_to(params["wh1"], (H1p, H1p)).astype(jnp.bfloat16)
    wi2 = _pad_to(params["wi2"], (H1p, H2p)).astype(jnp.bfloat16)
    wh2 = _pad_to(params["wh2"], (H2p, H2p)).astype(jnp.bfloat16)
    b2f = _pad_to(params["bi2"] + params["bh2"], (1, H2p))
    wi3 = _pad_to(params["wi3"], (H2p, H3p)).astype(jnp.bfloat16)
    b3f = _pad_to(params["bi3"], (1, H3p))
    wo = _pad_to(params["wo"], (H3p, Op)).astype(jnp.bfloat16)
    bof = _pad_to(params["bo"], (1, Op))

    # decay factors precomputed in the wrapper (tau padded with 1.0; padded
    # lanes stay inert because their weights/biases are zero and B_J0 > 0).
    a1 = jnp.exp(-1.0 / _pad_to(params["tau_m_h1"], (1, H1p), 1.0))
    r1 = jnp.exp(-1.0 / _pad_to(params["tau_adp_h1"], (1, H1p), 1.0))
    a2 = jnp.exp(-1.0 / _pad_to(params["tau_m_h2"], (1, H2p), 1.0))
    r2 = jnp.exp(-1.0 / _pad_to(params["tau_adp_h2"], (1, H2p), 1.0))
    a3 = jnp.exp(-1.0 / _pad_to(params["tau_m_h3"], (1, H3p), 1.0))
    r3 = jnp.exp(-1.0 / _pad_to(params["tau_adp_h3"], (1, H3p), 1.0))

    init1 = _pad_to(init_states[0].astype(jnp.float32), (Bp, H1p))
    init2 = _pad_to(init_states[1].astype(jnp.float32), (Bp, H2p))
    init3 = _pad_to(init_states[2].astype(jnp.float32), (Bp, H3p))

    grid = (Bp // b_blk, n_chunks)
    consts = (wh1, wi2, wh2, b2f, wi3, b3f, wo, bof, a1, r1, a2, r2, a3, r3)
    # TODO(synk): constant-index weight blocks could use pipeline_mode=pl.Buffered(1)
    # to halve their VMEM footprint on v7x; left at the default here for portability.
    in_specs = ([pl.BlockSpec((t_chunk, b_blk, H1p), lambda b, t: (t, b, 0))]
                + [_const_spec(c) for c in consts]
                + [pl.BlockSpec((b_blk, H1p), lambda b, t: (b, 0)),
                   pl.BlockSpec((b_blk, H2p), lambda b, t: (b, 0)),
                   pl.BlockSpec((b_blk, H3p), lambda b, t: (b, 0))])

    if per_step:
        out_shape = jax.ShapeDtypeStruct((T_pad, Bp, Op), jnp.float32)
        out_spec = pl.BlockSpec((t_chunk, b_blk, Op), lambda b, t: (t, b, 0))
    else:
        out_shape = jax.ShapeDtypeStruct((Bp, Op), jnp.float32)
        out_spec = pl.BlockSpec((b_blk, Op), lambda b, t: (b, 0))

    scratch_shapes = [
        pltpu.VMEM((t_chunk, b_blk, H3p), jnp.bfloat16),      # spk3 slab (readout)
        pltpu.VMEM((b_blk, H1p), jnp.float32),                # mem1
        pltpu.VMEM((b_blk, H1p), jnp.bfloat16),               # spk1
        pltpu.VMEM((b_blk, H1p), jnp.float32),                # b1
        pltpu.VMEM((b_blk, H2p), jnp.float32),                # mem2
        pltpu.VMEM((b_blk, H2p), jnp.bfloat16),               # spk2
        pltpu.VMEM((b_blk, H2p), jnp.float32),                # b2
        pltpu.VMEM((b_blk, H3p), jnp.float32),                # mem3
        pltpu.VMEM((b_blk, H3p), jnp.bfloat16),               # spk3
        pltpu.VMEM((b_blk, H3p), jnp.float32),                # b3
    ]

    const_bytes = sum(int(a.size) * a.dtype.itemsize for a in consts)
    init_bytes = sum(int(a.size) * a.dtype.itemsize for a in (init1, init2, init3))
    feed_blk = t_chunk * b_blk * H1p * 4
    out_blk = (t_chunk if per_step else 1) * b_blk * Op * 4
    scratch_bytes = (t_chunk * b_blk * H3p * 2
                     + b_blk * (H1p + H2p + H3p) * (4 + 2 + 4))
    need = 2 * (const_bytes + init_bytes + feed_blk + out_blk) + scratch_bytes
    # cap well below the v7x 64 MiB per-TC VMEM (also fine on v5e/v6e).
    vmem_limit = int(min(48 << 20, max(16 << 20, need + (4 << 20))))

    matmul_flops = 2 * T_pad * Bp * (H1p * H1p + H1p * H2p + H2p * H2p + H2p * H3p)
    readout_flops = 2 * Bp * H3p * Op * (T_pad if per_step else 1)
    out_elems = math.prod(out_shape.shape)
    cost = pl.CostEstimate(
        flops=int(matmul_flops + readout_flops),
        transcendentals=int(Bp * Op * (T_pad if per_step else 1)),
        bytes_accessed=int(feed1.size * 4 + const_bytes + init_bytes + out_elems * 4),
    )

    out = pl.pallas_call(
        functools.partial(_alif_kernel, per_step_output=per_step,
                          last_local=last_local),
        out_shape=out_shape,
        grid_spec=pltpu.PrefetchScalarGridSpec(
            num_scalar_prefetch=0,
            grid=grid,
            in_specs=in_specs,
            out_specs=out_spec,
            scratch_shapes=scratch_shapes),
        compiler_params=pltpu.CompilerParams(
            dimension_semantics=("parallel", "arbitrary"),
            vmem_limit_bytes=vmem_limit),
        cost_estimate=cost,
    )(feed1, *consts, init1, init2, init3)

    if per_step:
        out = out[:T, :B, :O]                      # drop time/batch/lane padding
        return jnp.transpose(out, (1, 2, 0))       # (B, O, T) like torch.stack(dim=2)
    return out[:B, :O]                             # (B, O) == output[:, :, -1]


# -------------------------------------------------------------------------
# deterministic synthetic parameters (module's shapes / init style)
# -------------------------------------------------------------------------
def init_params(key, input_size, hidden_dims, output_size):
    h1, h2, h3 = hidden_dims
    ks = jax.random.split(key, 12)

    def xavier(k, fan_in, fan_out):
        lim = math.sqrt(6.0 / (fan_in + fan_out))
        return jax.random.uniform(k, (fan_in, fan_out), jnp.float32, -lim, lim)

    ortho = jax.nn.initializers.orthogonal()
    return {
        "wi1": xavier(ks[0], input_size, h1), "bi1": jnp.zeros((1, h1), jnp.float32),
        "wh1": ortho(ks[1], (h1, h1), jnp.float32), "bh1": jnp.zeros((1, h1), jnp.float32),
        "wi2": xavier(ks[2], h1, h2), "bi2": jnp.zeros((1, h2), jnp.float32),
        "wh2": ortho(ks[3], (h2, h2), jnp.float32), "bh2": jnp.zeros((1, h2), jnp.float32),
        "wi3": xavier(ks[4], h2, h3), "bi3": jnp.zeros((1, h3), jnp.float32),
        "wo": xavier(ks[5], h3, output_size),
        "bo": jnp.zeros((1, output_size), jnp.float32),
        "tau_adp_h1": 700.0 + 25.0 * jax.random.normal(ks[6], (1, h1), jnp.float32),
        "tau_adp_h2": 700.0 + 25.0 * jax.random.normal(ks[7], (1, h2), jnp.float32),
        "tau_adp_h3": 700.0 + 25.0 * jax.random.normal(ks[8], (1, h3), jnp.float32),
        "tau_m_h1": 20.0 + 5.0 * jax.random.normal(ks[9], (1, h1), jnp.float32),
        "tau_m_h2": 20.0 + 5.0 * jax.random.normal(ks[10], (1, h2), jnp.float32),
        "tau_m_h3": 20.0 + 5.0 * jax.random.normal(ks[11], (1, h3), jnp.float32),
    }


if __name__ == "__main__":
    # TODO(synk): only the forward pass is implemented; ActFun_adp's surrogate
    # gradient (backward) and get_grads hooks are not represented.
    key = jax.random.PRNGKey(0)
    batch, input_size, time_len = 8, 4, 8
    hidden_dims = [32, 32, 32]
    output_size = 2
    time_window = time_len

    k_x, k_p, k_i1, k_i2, k_i3 = jax.random.split(key, 5)
    x = jax.random.normal(k_x, (batch, input_size, time_len), jnp.float32)
    params = init_params(k_p, input_size, hidden_dims, output_size)
    # torch.rand initial mem/spike (mem and spike share the same random values)
    init_states = (
        jax.random.uniform(k_i1, (batch, hidden_dims[0]), jnp.float32),
        jax.random.uniform(k_i2, (batch, hidden_dims[1]), jnp.float32),
        jax.random.uniform(k_i3, (batch, hidden_dims[2]), jnp.float32),
    )

    out_dur = alif_forward(x, params, init_states, time_window, task="duration")
    out_dur = jax.block_until_ready(out_dur)
    out_syn = alif_forward(x, params, init_states, time_window, task="syn")
    out_syn = jax.block_until_ready(out_syn)

    assert out_dur.shape == (batch, output_size), out_dur.shape
    assert out_syn.shape == (batch, output_size, time_window), out_syn.shape
    assert bool(jnp.all(jnp.isfinite(out_dur)))
    assert bool(jnp.all(jnp.isfinite(out_syn)))
    # sigmoid outputs must lie in (0, 1)
    assert bool(jnp.all((out_dur > 0.0) & (out_dur < 1.0)))
    assert bool(jnp.all((out_syn > 0.0) & (out_syn < 1.0)))
    # duration path == last step of the per-step path
    assert bool(jnp.allclose(out_syn[:, :, -1], out_dur, atol=1e-5, rtol=1e-5))
    print("KERNEL_OK")
</pallas_src>

<mosaic_0001>
module attributes {stable_mosaic.version = 11 : i64} {
  func.func @_alif_kernel(%arg0: i32, %arg1: i32, %arg2: memref<8x8x128xf32, #tpu.memory_space<vmem>>, %arg3: memref<128x128xbf16, #tpu.memory_space<vmem>>, %arg4: memref<128x128xbf16, #tpu.memory_space<vmem>>, %arg5: memref<128x128xbf16, #tpu.memory_space<vmem>>, %arg6: memref<1x128xf32, #tpu.memory_space<vmem>>, %arg7: memref<128x128xbf16, #tpu.memory_space<vmem>>, %arg8: memref<1x128xf32, #tpu.memory_space<vmem>>, %arg9: memref<128x128xbf16, #tpu.memory_space<vmem>>, %arg10: memref<1x128xf32, #tpu.memory_space<vmem>>, %arg11: memref<1x128xf32, #tpu.memory_space<vmem>>, %arg12: memref<1x128xf32, #tpu.memory_space<vmem>>, %arg13: memref<1x128xf32, #tpu.memory_space<vmem>>, %arg14: memref<1x128xf32, #tpu.memory_space<vmem>>, %arg15: memref<1x128xf32, #tpu.memory_space<vmem>>, %arg16: memref<1x128xf32, #tpu.memory_space<vmem>>, %arg17: memref<8x128xf32, #tpu.memory_space<vmem>>, %arg18: memref<8x128xf32, #tpu.memory_space<vmem>>, %arg19: memref<8x128xf32, #tpu.memory_space<vmem>>, %arg20: memref<8x128xf32, #tpu.memory_space<vmem>>, %arg21: memref<8x8x128xbf16, #tpu.memory_space<vmem>>, %arg22: memref<8x128xf32, #tpu.memory_space<vmem>>, %arg23: memref<8x128xbf16, #tpu.memory_space<vmem>>, %arg24: memref<8x128xf32, #tpu.memory_space<vmem>>, %arg25: memref<8x128xf32, #tpu.memory_space<vmem>>, %arg26: memref<8x128xbf16, #tpu.memory_space<vmem>>, %arg27: memref<8x128xf32, #tpu.memory_space<vmem>>, %arg28: memref<8x128xf32, #tpu.memory_space<vmem>>, %arg29: memref<8x128xbf16, #tpu.memory_space<vmem>>, %arg30: memref<8x128xf32, #tpu.memory_space<vmem>>) attributes {dimension_semantics = [#tpu.dimension_semantics<parallel>, #tpu.dimension_semantics<arbitrary>], iteration_bounds = array<i64: 1, 1>, scalar_prefetch = 0 : i64, scratch_operands = 10 : i64, tpu.core_type = #tpu.core_type<tc>, window_params = [{transform_indices = @transform_0, window_bounds = array<i64: 8, 8, 128>}, {pipeline_mode = #tpu.pipeline_mode<synchronous>, transform_indices = @transform_1, window_bounds = array<i64: 128, 128>}, {pipeline_mode = #tpu.pipeline_mode<synchronous>, transform_indices = @transform_2, window_bounds = array<i64: 128, 128>}, {pipeline_mode = #tpu.pipeline_mode<synchronous>, transform_indices = @transform_3, window_bounds = array<i64: 128, 128>}, {pipeline_mode = #tpu.pipeline_mode<synchronous>, transform_indices = @transform_4, window_bounds = array<i64: 1, 128>}, {pipeline_mode = #tpu.pipeline_mode<synchronous>, transform_indices = @transform_5, window_bounds = array<i64: 128, 128>}, {pipeline_mode = #tpu.pipeline_mode<synchronous>, transform_indices = @transform_6, window_bounds = array<i64: 1, 128>}, {pipeline_mode = #tpu.pipeline_mode<synchronous>, transform_indices = @transform_7, window_bounds = array<i64: 128, 128>}, {pipeline_mode = #tpu.pipeline_mode<synchronous>, transform_indices = @transform_8, window_bounds = array<i64: 1, 128>}, {pipeline_mode = #tpu.pipeline_mode<synchronous>, transform_indices = @transform_9, window_bounds = array<i64: 1, 128>}, {pipeline_mode = #tpu.pipeline_mode<synchronous>, transform_indices = @transform_10, window_bounds = array<i64: 1, 128>}, {pipeline_mode = #tpu.pipeline_mode<synchronous>, transform_indices = @transform_11, window_bounds = array<i64: 1, 128>}, {pipeline_mode = #tpu.pipeline_mode<synchronous>, transform_indices = @transform_12, window_bounds = array<i64: 1, 128>}, {pipeline_mode = #tpu.pipeline_mode<synchronous>, transform_indices = @transform_13, window_bounds = array<i64: 1, 128>}, {pipeline_mode = #tpu.pipeline_mode<synchronous>, transform_indices = @transform_14, window_bounds = array<i64: 1, 128>}, {transform_indices = @transform_15, window_bounds = array<i64: 8, 128>}, {transform_indices = @transform_16, window_bounds = array<i64: 8, 128>}, {transform_indices = @transform_17, window_bounds = array<i64: 8, 128>}, {transform_indices = @transform_18, window_bounds = array<i64: 8, 128>}]} {
    %c0_i32 = arith.constant 0 : i32
    %0 = arith.cmpi eq, %arg1, %c0_i32 : i32
    %1 = arith.extui %0 : i1 to i32
    %c0_i32_0 = arith.constant 0 : i32
    %2 = arith.cmpi ne, %1, %c0_i32_0 : i32
    scf.if %2 {
      %c0_280 = arith.constant 0 : index
      %c0_281 = arith.constant 0 : index
      %777 = vector.load %arg17[%c0_280, %c0_281] : memref<8x128xf32, #tpu.memory_space<vmem>>, vector<8x128xf32>
      %c0_282 = arith.constant 0 : index
      %c0_283 = arith.constant 0 : index
      %778 = vector.load %arg22[%c0_282, %c0_283] : memref<8x128xf32, #tpu.memory_space<vmem>>, vector<8x128xf32>
      tpu.vector_store %arg22[%c0_282, %c0_283], %777 {strides = array<i32>} : memref<8x128xf32, #tpu.memory_space<vmem>>, vector<8x128xf32>,
      %c0_284 = arith.constant 0 : index
      %c0_285 = arith.constant 0 : index
      %779 = vector.load %arg17[%c0_284, %c0_285] : memref<8x128xf32, #tpu.memory_space<vmem>>, vector<8x128xf32>
      %780 = arith.truncf %779 : vector<8x128xf32> to vector<8x128xbf16>
      %c0_286 = arith.constant 0 : index
      %c0_287 = arith.constant 0 : index
      %781 = vector.load %arg23[%c0_286, %c0_287] : memref<8x128xbf16, #tpu.memory_space<vmem>>, vector<8x128xbf16>
      tpu.vector_store %arg23[%c0_286, %c0_287], %780 {strides = array<i32>} : memref<8x128xbf16, #tpu.memory_space<vmem>>, vector<8x128xbf16>,
      %cst_288 = arith.constant 0.00999999977 : f32
      %782 = vector.broadcast %cst_288 : f32 to vector<8x128xf32>
      %c0_289 = arith.constant 0 : index
      %c0_290 = arith.constant 0 : index
      %783 = vector.load %arg24[%c0_289, %c0_290] : memref<8x128xf32, #tpu.memory_space<vmem>>, vector<8x128xf32>
      tpu.vector_store %arg24[%c0_289, %c0_290], %782 {strides = array<i32>} : memref<8x128xf32, #tpu.memory_space<vmem>>, vector<8x128xf32>,
      %c0_291 = arith.constant 0 : index
      %c0_292 = arith.constant 0 : index
      %784 = vector.load %arg18[%c0_291, %c0_292] : memref<8x128xf32, #tpu.memory_space<vmem>>, vector<8x128xf32>
      %c0_293 = arith.constant 0 : index
      %c0_294 = arith.constant 0 : index
      %785 = vector.load %arg25[%c0_293, %c0_294] : memref<8x128xf32, #tpu.memory_space<vmem>>, vector<8x128xf32>
      tpu.vector_store %arg25[%c0_293, %c0_294], %784 {strides = array<i32>} : memref<8x128xf32, #tpu.memory_space<vmem>>, vector<8x128xf32>,
      %c0_295 = arith.constant 0 : index
      %c0_296 = arith.constant 0 : index
      %786 = vector.load %arg18[%c0_295, %c0_296] : memref<8x128xf32, #tpu.memory_space<vmem>>, vector<8x128xf32>
      %787 = arith.truncf %786 : vector<8x128xf32> to vector<8x128xbf16>
      %c0_297 = arith.constant 0 : index
      %c0_298 = arith.constant 0 : index
      %788 = vector.load %arg26[%c0_297, %c0_298] : memref<8x128xbf16, #tpu.memory_space<vmem>>, vector<8x128xbf16>
      tpu.vector_store %arg26[%c0_297, %c0_298], %787 {strides = array<i32>} : memref<8x128xbf16, #tpu.memory_space<vmem>>, vector<8x128xbf16>,
      %cst_299 = arith.constant 0.00999999977 : f32
      %789 = vector.broadcast %cst_299 : f32 to vector<8x128xf32>
      %c0_300 = arith.constant 0 : index
      %c0_301 = arith.constant 0 : index
      %790 = vector.load %arg27[%c0_300, %c0_301] : memref<8x128xf32, #tpu.memory_space<vmem>>, vector<8x128xf32>
      tpu.vector_store %arg27[%c0_300, %c0_301], %789 {strides = array<i32>} : memref<8x128xf32, #tpu.memory_space<vmem>>, vector<8x128xf32>,
      %c0_302 = arith.constant 0 : index
      %c0_303 = arith.constant 0 : index
      %791 = vector.load %arg19[%c0_302, %c0_303] : memref<8x128xf32, #tpu.memory_space<vmem>>, vector<8x128xf32>
      %c0_304 = arith.constant 0 : index
      %c0_305 = arith.constant 0 : index
      %792 = vector.load %arg28[%c0_304, %c0_305] : memref<8x128xf32, #tpu.memory_space<vmem>>, vector<8x128xf32>
      tpu.vector_store %arg28[%c0_304, %c0_305], %791 {strides = array<i32>} : memref<8x128xf32, #tpu.memory_space<vmem>>, vector<8x128xf32>,
      %c0_306 = arith.constant 0 : index
      %c0_307 = arith.constant 0 : index
      %793 = vector.load %arg19[%c0_306, %c0_307] : memref<8x128xf32, #tpu.memory_space<vmem>>, vector<8x128xf32>
      %794 = arith.truncf %793 : vector<8x128xf32> to vector<8x128xbf16>
      %c0_308 = arith.constant 0 : index
      %c0_309 = arith.constant 0 : index
      %795 = vector.load %arg29[%c0_308, %c0_309] : memref<8x128xbf16, #tpu.memory_space<vmem>>, vector<8x128xbf16>
      tpu.vector_store %arg29[%c0_308, %c0_309], %794 {strides = array<i32>} : memref<8x128xbf16, #tpu.memory_space<vmem>>, vector<8x128xbf16>,
      %cst_310 = arith.constant 0.00999999977 : f32
      %796 = vector.broadcast %cst_310 : f32 to vector<8x128xf32>
      %c0_311 = arith.constant 0 : index
      %c0_312 = arith.constant 0 : index
      %797 = vector.load %arg30[%c0_311, %c0_312] : memref<8x128xf32, #tpu.memory_space<vmem>>, vector<8x128xf32>
      tpu.vector_store %arg30[%c0_311, %c0_312], %796 {strides = array<i32>} : memref<8x128xf32, #tpu.memory_space<vmem>>, vector<8x128xf32>,
    } else {
    }
    %c0 = arith.constant 0 : index
    %c0_1 = arith.constant 0 : index
    %3 = vector.load %arg11[%c0, %c0_1] : memref<1x128xf32, #tpu.memory_space<vmem>>, vector<1x128xf32>
    %c0_2 = arith.constant 0 : index
    %c0_3 = arith.constant 0 : index
    %4 = vector.load %arg12[%c0_2, %c0_3] : memref<1x128xf32, #tpu.memory_space<vmem>>, vector<1x128xf32>
    %c0_4 = arith.constant 0 : index
    %c0_5 = arith.constant 0 : index
    %5 = vector.load %arg13[%c0_4, %c0_5] : memref<1x128xf32, #tpu.memory_space<vmem>>, vector<1x128xf32>
    %c0_6 = arith.constant 0 : index
    %c0_7 = arith.constant 0 : index
    %6 = vector.load %arg14[%c0_6, %c0_7] : memref<1x128xf32, #tpu.memory_space<vmem>>, vector<1x128xf32>
    %c0_8 = arith.constant 0 : index
    %c0_9 = arith.constant 0 : index
    %7 = vector.load %arg15[%c0_8, %c0_9] : memref<1x128xf32, #tpu.memory_space<vmem>>, vector<1x128xf32>
    %c0_10 = arith.constant 0 : index
    %c0_11 = arith.constant 0 : index
    %8 = vector.load %arg16[%c0_10, %c0_11] : memref<1x128xf32, #tpu.memory_space<vmem>>, vector<1x128xf32>
    %c0_12 = arith.constant 0 : index
    %c0_13 = arith.constant 0 : index
    %9 = vector.load %arg6[%c0_12, %c0_13] : memref<1x128xf32, #tpu.memory_space<vmem>>, vector<1x128xf32>
    %c0_14 = arith.constant 0 : index
    %c0_15 = arith.constant 0 : index
    %10 = vector.load %arg8[%c0_14, %c0_15] : memref<1x128xf32, #tpu.memory_space<vmem>>, vector<1x128xf32>
    %c0_16 = arith.constant 0 : index
    %c0_17 = arith.constant 0 : index
    %11 = vector.load %arg22[%c0_16, %c0_17] : memref<8x128xf32, #tpu.memory_space<vmem>>, vector<8x128xf32>
    %c0_18 = arith.constant 0 : index
    %c0_19 = arith.constant 0 : index
    %12 = vector.load %arg23[%c0_18, %c0_19] : memref<8x128xbf16, #tpu.memory_space<vmem>>, vector<8x128xbf16>
    %c0_20 = arith.constant 0 : index
    %c0_21 = arith.constant 0 : index
    %13 = vector.load %arg24[%c0_20, %c0_21] : memref<8x128xf32, #tpu.memory_space<vmem>>, vector<8x128xf32>
    %c0_22 = arith.constant 0 : index
    %c0_23 = arith.constant 0 : index
    %14 = vector.load %arg25[%c0_22, %c0_23] : memref<8x128xf32, #tpu.memory_space<vmem>>, vector<8x128xf32>
    %c0_24 = arith.constant 0 : index
    %c0_25 = arith.constant 0 : index
    %15 = vector.load %arg26[%c0_24, %c0_25] : memref<8x128xbf16, #tpu.memory_space<vmem>>, vector<8x128xbf16>
    %c0_26 = arith.constant 0 : index
    %c0_27 = arith.constant 0 : index
    %16 = vector.load %arg27[%c0_26, %c0_27] : memref<8x128xf32, #tpu.memory_space<vmem>>, vector<8x128xf32>
    %c0_28 = arith.constant 0 : index
    %c0_29 = arith.constant 0 : index
    %17 = vector.load %arg28[%c0_28, %c0_29] : memref<8x128xf32, #tpu.memory_space<vmem>>, vector<8x128xf32>
    %c0_30 = arith.constant 0 : index
    %c0_31 = arith.constant 0 : index
    %18 = vector.load %arg29[%c0_30, %c0_31] : memref<8x128xbf16, #tpu.memory_space<vmem>>, vector<8x128xbf16>
    %c0_32 = arith.constant 0 : index
    %c0_33 = arith.constant 0 : index
    %19 = vector.load %arg30[%c0_32, %c0_33] : memref<8x128xf32, #tpu.memory_space<vmem>>, vector<8x128xf32>
    %c0_i32_34 = arith.constant 0 : i32
    %c0_35 = arith.constant 0 : index
    %c0_36 = arith.constant 0 : index
    %20 = vector.load %arg3[%c0_35, %c0_36] : memref<128x128xbf16, #tpu.memory_space<vmem>>, vector<128x128xbf16>
    %cst = arith.constant dense<0.000000e+00> : vector<8x128xf32>
    %21 = tpu.matmul %12, %20, %cst {dimension_numbers = #tpu.dot_dimension_numbers<[1], [0], [0], [1], [0, 0, 1, 1], [], []>} : vector<8x128xbf16>, vector<128x128xbf16>, vector<8x128xf32> -> vector<8x128xf32>
    %22 = arith.index_cast %c0_i32_34 : i32 to index
    %c0_37 = arith.constant 0 : index
    %c0_38 = arith.constant 0 : index
    %23 = vector.load %arg2[%22, %c0_37, %c0_38] : memref<8x8x128xf32, #tpu.memory_space<vmem>>, vector<1x8x128xf32>
    %24 = vector.shape_cast %23 : vector<1x8x128xf32> to vector<8x128xf32>
    %25 = arith.addf %24, %21 : vector<8x128xf32>
    %26 = vector.broadcast %4 : vector<1x128xf32> to vector<8x128xf32>
    %27 = arith.mulf %26, %13 : vector<8x128xf32>
    %cst_39 = arith.constant 1.000000e+00 : f32
    %28 = vector.broadcast %cst_39 : f32 to vector<1x128xf32>
    %29 = arith.subf %28, %4 : vector<1x128xf32>
    %30 = arith.extf %12 : vector<8x128xbf16> to vector<8x128xf32>
    %31 = vector.broadcast %29 : vector<1x128xf32> to vector<8x128xf32>
    %32 = arith.mulf %31, %30 : vector<8x128xf32>
    %33 = arith.addf %27, %32 : vector<8x128xf32>
    %cst_40 = arith.constant 1.800000e+00 : f32
    %34 = vector.broadcast %cst_40 : f32 to vector<8x128xf32>
    %35 = arith.mulf %34, %33 : vector<8x128xf32>
    %cst_41 = arith.constant 0.00999999977 : f32
    %36 = vector.broadcast %cst_41 : f32 to vector<8x128xf32>
    %37 = arith.addf %36, %35 : vector<8x128xf32>
    %38 = vector.broadcast %3 : vector<1x128xf32> to vector<8x128xf32>
    %39 = arith.mulf %11, %38 : vector<8x128xf32>
    %40 = arith.addf %39, %25 : vector<8x128xf32>
    %41 = arith.extf %12 : vector<8x128xbf16> to vector<8x128xf32>
    %42 = arith.mulf %37, %41 : vector<8x128xf32>
    %43 = arith.subf %40, %42 : vector<8x128xf32>
    %44 = arith.subf %43, %37 : vector<8x128xf32>
    %cst_42 = arith.constant 0.000000e+00 : f32
    %45 = vector.broadcast %cst_42 : f32 to vector<8x128xf32>
    %46 = arith.cmpf ogt, %44, %45 : vector<8x128xf32>
    %47 = arith.extui %46 : vector<8x128xi1> to vector<8x128xi32>
    %48 = arith.sitofp %47 : vector<8x128xi32> to vector<8x128xf32>
    %49 = arith.truncf %48 : vector<8x128xf32> to vector<8x128xbf16>
    %c0_43 = arith.constant 0 : index
    %c0_44 = arith.constant 0 : index
    %50 = vector.load %arg4[%c0_43, %c0_44] : memref<128x128xbf16, #tpu.memory_space<vmem>>, vector<128x128xbf16>
    %cst_45 = arith.constant dense<0.000000e+00> : vector<8x128xf32>
    %51 = tpu.matmul %49, %50, %cst_45 {dimension_numbers = #tpu.dot_dimension_numbers<[1], [0], [0], [1], [0, 0, 1, 1], [], []>} : vector<8x128xbf16>, vector<128x128xbf16>, vector<8x128xf32> -> vector<8x128xf32>
    %c0_46 = arith.constant 0 : index
    %c0_47 = arith.constant 0 : index
    %52 = vector.load %arg5[%c0_46, %c0_47] : memref<128x128xbf16, #tpu.memory_space<vmem>>, vector<128x128xbf16>
    %cst_48 = arith.constant dense<0.000000e+00> : vector<8x128xf32>
    %53 = tpu.matmul %15, %52, %cst_48 {dimension_numbers = #tpu.dot_dimension_numbers<[1], [0], [0], [1], [0, 0, 1, 1], [], []>} : vector<8x128xbf16>, vector<128x128xbf16>, vector<8x128xf32> -> vector<8x128xf32>
    %54 = arith.addf %51, %53 : vector<8x128xf32>
    %55 = vector.broadcast %9 : vector<1x128xf32> to vector<8x128xf32>
    %56 = arith.addf %54, %55 : vector<8x128xf32>
    %57 = vector.broadcast %6 : vector<1x128xf32> to vector<8x128xf32>
    %58 = arith.mulf %57, %16 : vector<8x128xf32>
    %cst_49 = arith.constant 1.000000e+00 : f32
    %59 = vector.broadcast %cst_49 : f32 to vector<1x128xf32>
    %60 = arith.subf %59, %6 : vector<1x128xf32>
    %61 = arith.extf %15 : vector<8x128xbf16> to vector<8x128xf32>
    %62 = vector.broadcast %60 : vector<1x128xf32> to vector<8x128xf32>
    %63 = arith.mulf %62, %61 : vector<8x128xf32>
    %64 = arith.addf %58, %63 : vector<8x128xf32>
    %cst_50 = arith.constant 1.800000e+00 : f32
    %65 = vector.broadcast %cst_50 : f32 to vector<8x128xf32>
    %66 = arith.mulf %65, %64 : vector<8x128xf32>
    %cst_51 = arith.constant 0.00999999977 : f32
    %67 = vector.broadcast %cst_51 : f32 to vector<8x128xf32>
    %68 = arith.addf %67, %66 : vector<8x128xf32>
    %69 = vector.broadcast %5 : vector<1x128xf32> to vector<8x128xf32>
    %70 = arith.mulf %14, %69 : vector<8x128xf32>
    %71 = arith.addf %70, %56 : vector<8x128xf32>
    %72 = arith.extf %15 : vector<8x128xbf16> to vector<8x128xf32>
    %73 = arith.mulf %68, %72 : vector<8x128xf32>
    %74 = arith.subf %71, %73 : vector<8x128xf32>
    %75 = arith.subf %74, %68 : vector<8x128xf32>
    %cst_52 = arith.constant 0.000000e+00 : f32
    %76 = vector.broadcast %cst_52 : f32 to vector<8x128xf32>
    %77 = arith.cmpf ogt, %75, %76 : vector<8x128xf32>
    %78 = arith.extui %77 : vector<8x128xi1> to vector<8x128xi32>
    %79 = arith.sitofp %78 : vector<8x128xi32> to vector<8x128xf32>
    %80 = arith.truncf %79 : vector<8x128xf32> to vector<8x128xbf16>
    %c0_53 = arith.constant 0 : index
    %c0_54 = arith.constant 0 : index
    %81 = vector.load %arg7[%c0_53, %c0_54] : memref<128x128xbf16, #tpu.memory_space<vmem>>, vector<128x128xbf16>
    %cst_55 = arith.constant dense<0.000000e+00> : vector<8x128xf32>
    %82 = tpu.matmul %80, %81, %cst_55 {dimension_numbers = #tpu.dot_dimension_numbers<[1], [0], [0], [1], [0, 0, 1, 1], [], []>} : vector<8x128xbf16>, vector<128x128xbf16>, vector<8x128xf32> -> vector<8x128xf32>
    %83 = vector.broadcast %10 : vector<1x128xf32> to vector<8x128xf32>
    %84 = arith.addf %82, %83 : vector<8x128xf32>
    %85 = vector.broadcast %8 : vector<1x128xf32> to vector<8x128xf32>
    %86 = arith.mulf %85, %19 : vector<8x128xf32>
    %cst_56 = arith.constant 1.000000e+00 : f32
    %87 = vector.broadcast %cst_56 : f32 to vector<1x128xf32>
    %88 = arith.subf %87, %8 : vector<1x128xf32>
    %89 = arith.extf %18 : vector<8x128xbf16> to vector<8x128xf32>
    %90 = vector.broadcast %88 : vector<1x128xf32> to vector<8x128xf32>
    %91 = arith.mulf %90, %89 : vector<8x128xf32>
    %92 = arith.addf %86, %91 : vector<8x128xf32>
    %cst_57 = arith.constant 1.800000e+00 : f32
    %93 = vector.broadcast %cst_57 : f32 to vector<8x128xf32>
    %94 = arith.mulf %93, %92 : vector<8x128xf32>
    %cst_58 = arith.constant 0.00999999977 : f32
    %95 = vector.broadcast %cst_58 : f32 to vector<8x128xf32>
    %96 = arith.addf %95, %94 : vector<8x128xf32>
    %97 = vector.broadcast %7 : vector<1x128xf32> to vector<8x128xf32>
    %98 = arith.mulf %17, %97 : vector<8x128xf32>
    %99 = arith.addf %98, %84 : vector<8x128xf32>
    %100 = arith.extf %18 : vector<8x128xbf16> to vector<8x128xf32>
    %101 = arith.mulf %96, %100 : vector<8x128xf32>
    %102 = arith.subf %99, %101 : vector<8x128xf32>
    %103 = arith.subf %102, %96 : vector<8x128xf32>
    %cst_59 = arith.constant 0.000000e+00 : f32
    %104 = vector.broadcast %cst_59 : f32 to vector<8x128xf32>
    %105 = arith.cmpf ogt, %103, %104 : vector<8x128xf32>
    %106 = arith.extui %105 : vector<8x128xi1> to vector<8x128xi32>
    %107 = arith.sitofp %106 : vector<8x128xi32> to vector<8x128xf32>
    %108 = arith.truncf %107 : vector<8x128xf32> to vector<8x128xbf16>
    %109 = arith.index_cast %c0_i32_34 : i32 to index
    %c0_60 = arith.constant 0 : index
    %c0_61 = arith.constant 0 : index
    %110 = vector.load %arg21[%109, %c0_60, %c0_61] : memref<8x8x128xbf16, #tpu.memory_space<vmem>>, vector<1x8x128xbf16>
    %111 = vector.shape_cast %110 : vector<1x8x128xbf16> to vector<8x128xbf16>
    %112 = vector.shape_cast %108 : vector<8x128xbf16> to vector<1x8x128xbf16>
    tpu.vector_store %arg21[%109, %c0_60, %c0_61], %112 {strides = array<i32>} : memref<8x8x128xbf16, #tpu.memory_space<vmem>>, vector<1x8x128xbf16>,
    %c1_i32 = arith.constant 1 : i32
    %c0_62 = arith.constant 0 : index
    %c0_63 = arith.constant 0 : index
    %113 = vector.load %arg3[%c0_62, %c0_63] : memref<128x128xbf16, #tpu.memory_space<vmem>>, vector<128x128xbf16>
    %cst_64 = arith.constant dense<0.000000e+00> : vector<8x128xf32>
    %114 = tpu.matmul %49, %113, %cst_64 {dimension_numbers = #tpu.dot_dimension_numbers<[1], [0], [0], [1], [0, 0, 1, 1], [], []>} : vector<8x128xbf16>, vector<128x128xbf16>, vector<8x128xf32> -> vector<8x128xf32>
    %115 = arith.index_cast %c1_i32 : i32 to index
    %c0_65 = arith.constant 0 : index
    %c0_66 = arith.constant 0 : index
    %116 = vector.load %arg2[%115, %c0_65, %c0_66] : memref<8x8x128xf32, #tpu.memory_space<vmem>>, vector<1x8x128xf32>
    %117 = vector.shape_cast %116 : vector<1x8x128xf32> to vector<8x128xf32>
    %118 = arith.addf %117, %114 : vector<8x128xf32>
    %119 = vector.broadcast %4 : vector<1x128xf32> to vector<8x128xf32>
    %120 = arith.mulf %119, %33 : vector<8x128xf32>
    %cst_67 = arith.constant 1.000000e+00 : f32
    %121 = vector.broadcast %cst_67 : f32 to vector<1x128xf32>
    %122 = arith.subf %121, %4 : vector<1x128xf32>
    %123 = arith.extf %49 : vector<8x128xbf16> to vector<8x128xf32>
    %124 = vector.broadcast %122 : vector<1x128xf32> to vector<8x128xf32>
    %125 = arith.mulf %124, %123 : vector<8x128xf32>
    %126 = arith.addf %120, %125 : vector<8x128xf32>
    %cst_68 = arith.constant 1.800000e+00 : f32
    %127 = vector.broadcast %cst_68 : f32 to vector<8x128xf32>
    %128 = arith.mulf %127, %126 : vector<8x128xf32>
    %cst_69 = arith.constant 0.00999999977 : f32
    %129 = vector.broadcast %cst_69 : f32 to vector<8x128xf32>
    %130 = arith.addf %129, %128 : vector<8x128xf32>
    %131 = vector.broadcast %3 : vector<1x128xf32> to vector<8x128xf32>
    %132 = arith.mulf %43, %131 : vector<8x128xf32>
    %133 = arith.addf %132, %118 : vector<8x128xf32>
    %134 = arith.extf %49 : vector<8x128xbf16> to vector<8x128xf32>
    %135 = arith.mulf %130, %134 : vector<8x128xf32>
    %136 = arith.subf %133, %135 : vector<8x128xf32>
    %137 = arith.subf %136, %130 : vector<8x128xf32>
    %cst_70 = arith.constant 0.000000e+00 : f32
    %138 = vector.broadcast %cst_70 : f32 to vector<8x128xf32>
    %139 = arith.cmpf ogt, %137, %138 : vector<8x128xf32>
    %140 = arith.extui %139 : vector<8x128xi1> to vector<8x128xi32>
    %141 = arith.sitofp %140 : vector<8x128xi32> to vector<8x128xf32>
    %142 = arith.truncf %141 : vector<8x128xf32> to vector<8x128xbf16>
    %c0_71 = arith.constant 0 : index
    %c0_72 = arith.constant 0 : index
    %143 = vector.load %arg4[%c0_71, %c0_72] : memref<128x128xbf16, #tpu.memory_space<vmem>>, vector<128x128xbf16>
    %cst_73 = arith.constant dense<0.000000e+00> : vector<8x128xf32>
    %144 = tpu.matmul %142, %143, %cst_73 {dimension_numbers = #tpu.dot_dimension_numbers<[1], [0], [0], [1], [0, 0, 1, 1], [], []>} : vector<8x128xbf16>, vector<128x128xbf16>, vector<8x128xf32> -> vector<8x128xf32>
    %c0_74 = arith.constant 0 : index
    %c0_75 = arith.constant 0 : index
    %145 = vector.load %arg5[%c0_74, %c0_75] : memref<128x128xbf16, #tpu.memory_space<vmem>>, vector<128x128xbf16>
    %cst_76 = arith.constant dense<0.000000e+00> : vector<8x128xf32>
    %146 = tpu.matmul %80, %145, %cst_76 {dimension_numbers = #tpu.dot_dimension_numbers<[1], [0], [0], [1], [0, 0, 1, 1], [], []>} : vector<8x128xbf16>, vector<128x128xbf16>, vector<8x128xf32> -> vector<8x128xf32>
    %147 = arith.addf %144, %146 : vector<8x128xf32>
    %148 = vector.broadcast %9 : vector<1x128xf32> to vector<8x128xf32>
    %149 = arith.addf %147, %148 : vector<8x128xf32>
    %150 = vector.broadcast %6 : vector<1x128xf32> to vector<8x128xf32>
    %151 = arith.mulf %150, %64 : vector<8x128xf32>
    %cst_77 = arith.constant 1.000000e+00 : f32
    %152 = vector.broadcast %cst_77 : f32 to vector<1x128xf32>
    %153 = arith.subf %152, %6 : vector<1x128xf32>
    %154 = arith.extf %80 : vector<8x128xbf16> to vector<8x128xf32>
    %155 = vector.broadcast %153 : vector<1x128xf32> to vector<8x128xf32>
    %156 = arith.mulf %155, %154 : vector<8x128xf32>
    %157 = arith.addf %151, %156 : vector<8x128xf32>
    %cst_78 = arith.constant 1.800000e+00 : f32
    %158 = vector.broadcast %cst_78 : f32 to vector<8x128xf32>
    %159 = arith.mulf %158, %157 : vector<8x128xf32>
    %cst_79 = arith.constant 0.00999999977 : f32
    %160 = vector.broadcast %cst_79 : f32 to vector<8x128xf32>
    %161 = arith.addf %160, %159 : vector<8x128xf32>
    %162 = vector.broadcast %5 : vector<1x128xf32> to vector<8x128xf32>
    %163 = arith.mulf %74, %162 : vector<8x128xf32>
    %164 = arith.addf %163, %149 : vector<8x128xf32>
    %165 = arith.extf %80 : vector<8x128xbf16> to vector<8x128xf32>
    %166 = arith.mulf %161, %165 : vector<8x128xf32>
    %167 = arith.subf %164, %166 : vector<8x128xf32>
    %168 = arith.subf %167, %161 : vector<8x128xf32>
    %cst_80 = arith.constant 0.000000e+00 : f32
    %169 = vector.broadcast %cst_80 : f32 to vector<8x128xf32>
    %170 = arith.cmpf ogt, %168, %169 : vector<8x128xf32>
    %171 = arith.extui %170 : vector<8x128xi1> to vector<8x128xi32>
    %172 = arith.sitofp %171 : vector<8x128xi32> to vector<8x128xf32>
    %173 = arith.truncf %172 : vector<8x128xf32> to vector<8x128xbf16>
    %c0_81 = arith.constant 0 : index
    %c0_82 = arith.constant 0 : index
    %174 = vector.load %arg7[%c0_81, %c0_82] : memref<128x128xbf16, #tpu.memory_space<vmem>>, vector<128x128xbf16>
    %cst_83 = arith.constant dense<0.000000e+00> : vector<8x128xf32>
    %175 = tpu.matmul %173, %174, %cst_83 {dimension_numbers = #tpu.dot_dimension_numbers<[1], [0], [0], [1], [0, 0, 1, 1], [], []>} : vector<8x128xbf16>, vector<128x128xbf16>, vector<8x128xf32> -> vector<8x128xf32>
    %176 = vector.broadcast %10 : vector<1x128xf32> to vector<8x128xf32>
    %177 = arith.addf %175, %176 : vector<8x128xf32>
    %178 = vector.broadcast %8 : vector<1x128xf32> to vector<8x128xf32>
    %179 = arith.mulf %178, %92 : vector<8x128xf32>
    %cst_84 = arith.constant 1.000000e+00 : f32
    %180 = vector.broadcast %cst_84 : f32 to vector<1x128xf32>
    %181 = arith.subf %180, %8 : vector<1x128xf32>
    %182 = arith.extf %108 : vector<8x128xbf16> to vector<8x128xf32>
    %183 = vector.broadcast %181 : vector<1x128xf32> to vector<8x128xf32>
    %184 = arith.mulf %183, %182 : vector<8x128xf32>
    %185 = arith.addf %179, %184 : vector<8x128xf32>
    %cst_85 = arith.constant 1.800000e+00 : f32
    %186 = vector.broadcast %cst_85 : f32 to vector<8x128xf32>
    %187 = arith.mulf %186, %185 : vector<8x128xf32>
    %cst_86 = arith.constant 0.00999999977 : f32
    %188 = vector.broadcast %cst_86 : f32 to vector<8x128xf32>
    %189 = arith.addf %188, %187 : vector<8x128xf32>
    %190 = vector.broadcast %7 : vector<1x128xf32> to vector<8x128xf32>
    %191 = arith.mulf %102, %190 : vector<8x128xf32>
    %192 = arith.addf %191, %177 : vector<8x128xf32>
    %193 = arith.extf %108 : vector<8x128xbf16> to vector<8x128xf32>
    %194 = arith.mulf %189, %193 : vector<8x128xf32>
    %195 = arith.subf %192, %194 : vector<8x128xf32>
    %196 = arith.subf %195, %189 : vector<8x128xf32>
    %cst_87 = arith.constant 0.000000e+00 : f32
    %197 = vector.broadcast %cst_87 : f32 to vector<8x128xf32>
    %198 = arith.cmpf ogt, %196, %197 : vector<8x128xf32>
    %199 = arith.extui %198 : vector<8x128xi1> to vector<8x128xi32>
    %200 = arith.sitofp %199 : vector<8x128xi32> to vector<8x128xf32>
    %201 = arith.truncf %200 : vector<8x128xf32> to vector<8x128xbf16>
    %202 = arith.index_cast %c1_i32 : i32 to index
    %c0_88 = arith.constant 0 : index
    %c0_89 = arith.constant 0 : index
    %203 = vector.load %arg21[%202, %c0_88, %c0_89] : memref<8x8x128xbf16, #tpu.memory_space<vmem>>, vector<1x8x128xbf16>
    %204 = vector.shape_cast %203 : vector<1x8x128xbf16> to vector<8x128xbf16>
    %205 = vector.shape_cast %201 : vector<8x128xbf16> to vector<1x8x128xbf16>
    tpu.vector_store %arg21[%202, %c0_88, %c0_89], %205 {strides = array<i32>} : memref<8x8x128xbf16, #tpu.memory_space<vmem>>, vector<1x8x128xbf16>,
    %c2_i32 = arith.constant 2 : i32
    %c0_90 = arith.constant 0 : index
    %c0_91 = arith.constant 0 : index
    %206 = vector.load %arg3[%c0_90, %c0_91] : memref<128x128xbf16, #tpu.memory_space<vmem>>, vector<128x128xbf16>
    %cst_92 = arith.constant dense<0.000000e+00> : vector<8x128xf32>
    %207 = tpu.matmul %142, %206, %cst_92 {dimension_numbers = #tpu.dot_dimension_numbers<[1], [0], [0], [1], [0, 0, 1, 1], [], []>} : vector<8x128xbf16>, vector<128x128xbf16>, vector<8x128xf32> -> vector<8x128xf32>
    %208 = arith.index_cast %c2_i32 : i32 to index
    %c0_93 = arith.constant 0 : index
    %c0_94 = arith.constant 0 : index
    %209 = vector.load %arg2[%208, %c0_93, %c0_94] : memref<8x8x128xf32, #tpu.memory_space<vmem>>, vector<1x8x128xf32>
    %210 = vector.shape_cast %209 : vector<1x8x128xf32> to vector<8x128xf32>
    %211 = arith.addf %210, %207 : vector<8x128xf32>
    %212 = vector.broadcast %4 : vector<1x128xf32> to vector<8x128xf32>
    %213 = arith.mulf %212, %126 : vector<8x128xf32>
    %cst_95 = arith.constant 1.000000e+00 : f32
    %214 = vector.broadcast %cst_95 : f32 to vector<1x128xf32>
    %215 = arith.subf %214, %4 : vector<1x128xf32>
    %216 = arith.extf %142 : vector<8x128xbf16> to vector<8x128xf32>
    %217 = vector.broadcast %215 : vector<1x128xf32> to vector<8x128xf32>
    %218 = arith.mulf %217, %216 : vector<8x128xf32>
    %219 = arith.addf %213, %218 : vector<8x128xf32>
    %cst_96 = arith.constant 1.800000e+00 : f32
    %220 = vector.broadcast %cst_96 : f32 to vector<8x128xf32>
    %221 = arith.mulf %220, %219 : vector<8x128xf32>
    %cst_97 = arith.constant 0.00999999977 : f32
    %222 = vector.broadcast %cst_97 : f32 to vector<8x128xf32>
    %223 = arith.addf %222, %221 : vector<8x128xf32>
    %224 = vector.broadcast %3 : vector<1x128xf32> to vector<8x128xf32>
    %225 = arith.mulf %136, %224 : vector<8x128xf32>
    %226 = arith.addf %225, %211 : vector<8x128xf32>
    %227 = arith.extf %142 : vector<8x128xbf16> to vector<8x128xf32>
    %228 = arith.mulf %223, %227 : vector<8x128xf32>
    %229 = arith.subf %226, %228 : vector<8x128xf32>
    %230 = arith.subf %229, %223 : vector<8x128xf32>
    %cst_98 = arith.constant 0.000000e+00 : f32
    %231 = vector.broadcast %cst_98 : f32 to vector<8x128xf32>
    %232 = arith.cmpf ogt, %230, %231 : vector<8x128xf32>
    %233 = arith.extui %232 : vector<8x128xi1> to vector<8x128xi32>
    %234 = arith.sitofp %233 : vector<8x128xi32> to vector<8x128xf32>
    %235 = arith.truncf %234 : vector<8x128xf32> to vector<8x128xbf16>
    %c0_99 = arith.constant 0 : index
    %c0_100 = arith.constant 0 : index
    %236 = vector.load %arg4[%c0_99, %c0_100] : memref<128x128xbf16, #tpu.memory_space<vmem>>, vector<128x128xbf16>
    %cst_101 = arith.constant dense<0.000000e+00> : vector<8x128xf32>
    %237 = tpu.matmul %235, %236, %cst_101 {dimension_numbers = #tpu.dot_dimension_numbers<[1], [0], [0], [1], [0, 0, 1, 1], [], []>} : vector<8x128xbf16>, vector<128x128xbf16>, vector<8x128xf32> -> vector<8x128xf32>
    %c0_102 = arith.constant 0 : index
    %c0_103 = arith.constant 0 : index
    %238 = vector.load %arg5[%c0_102, %c0_103] : memref<128x128xbf16, #tpu.memory_space<vmem>>, vector<128x128xbf16>
    %cst_104 = arith.constant dense<0.000000e+00> : vector<8x128xf32>
    %239 = tpu.matmul %173, %238, %cst_104 {dimension_numbers = #tpu.dot_dimension_numbers<[1], [0], [0], [1], [0, 0, 1, 1], [], []>} : vector<8x128xbf16>, vector<128x128xbf16>, vector<8x128xf32> -> vector<8x128xf32>
    %240 = arith.addf %237, %239 : vector<8x128xf32>
    %241 = vector.broadcast %9 : vector<1x128xf32> to vector<8x128xf32>
    %242 = arith.addf %240, %241 : vector<8x128xf32>
    %243 = vector.broadcast %6 : vector<1x128xf32> to vector<8x128xf32>
    %244 = arith.mulf %243, %157 : vector<8x128xf32>
    %cst_105 = arith.constant 1.000000e+00 : f32
    %245 = vector.broadcast %cst_105 : f32 to vector<1x128xf32>
    %246 = arith.subf %245, %6 : vector<1x128xf32>
    %247 = arith.extf %173 : vector<8x128xbf16> to vector<8x128xf32>
    %248 = vector.broadcast %246 : vector<1x128xf32> to vector<8x128xf32>
    %249 = arith.mulf %248, %247 : vector<8x128xf32>
    %250 = arith.addf %244, %249 : vector<8x128xf32>
    %cst_106 = arith.constant 1.800000e+00 : f32
    %251 = vector.broadcast %cst_106 : f32 to vector<8x128xf32>
    %252 = arith.mulf %251, %250 : vector<8x128xf32>
    %cst_107 = arith.constant 0.00999999977 : f32
    %253 = vector.broadcast %cst_107 : f32 to vector<8x128xf32>
    %254 = arith.addf %253, %252 : vector<8x128xf32>
    %255 = vector.broadcast %5 : vector<1x128xf32> to vector<8x128xf32>
    %256 = arith.mulf %167, %255 : vector<8x128xf32>
    %257 = arith.addf %256, %242 : vector<8x128xf32>
    %258 = arith.extf %173 : vector<8x128xbf16> to vector<8x128xf32>
    %259 = arith.mulf %254, %258 : vector<8x128xf32>
    %260 = arith.subf %257, %259 : vector<8x128xf32>
    %261 = arith.subf %260, %254 : vector<8x128xf32>
    %cst_108 = arith.constant 0.000000e+00 : f32
    %262 = vector.broadcast %cst_108 : f32 to vector<8x128xf32>
    %263 = arith.cmpf ogt, %261, %262 : vector<8x128xf32>
    %264 = arith.extui %263 : vector<8x128xi1> to vector<8x128xi32>
    %265 = arith.sitofp %264 : vector<8x128xi32> to vector<8x128xf32>
    %266 = arith.truncf %265 : vector<8x128xf32> to vector<8x128xbf16>
    %c0_109 = arith.constant 0 : index
    %c0_110 = arith.constant 0 : index
    %267 = vector.load %arg7[%c0_109, %c0_110] : memref<128x128xbf16, #tpu.memory_space<vmem>>, vector<128x128xbf16>
    %cst_111 = arith.constant dense<0.000000e+00> : vector<8x128xf32>
    %268 = tpu.matmul %266, %267, %cst_111 {dimension_numbers = #tpu.dot_dimension_numbers<[1], [0], [0], [1], [0, 0, 1, 1], [], []>} : vector<8x128xbf16>, vector<128x128xbf16>, vector<8x128xf32> -> vector<8x128xf32>
    %269 = vector.broadcast %10 : vector<1x128xf32> to vector<8x128xf32>
    %270 = arith.addf %268, %269 : vector<8x128xf32>
    %271 = vector.broadcast %8 : vector<1x128xf32> to vector<8x128xf32>
    %272 = arith.mulf %271, %185 : vector<8x128xf32>
    %cst_112 = arith.constant 1.000000e+00 : f32
    %273 = vector.broadcast %cst_112 : f32 to vector<1x128xf32>
    %274 = arith.subf %273, %8 : vector<1x128xf32>
    %275 = arith.extf %201 : vector<8x128xbf16> to vector<8x128xf32>
    %276 = vector.broadcast %274 : vector<1x128xf32> to vector<8x128xf32>
    %277 = arith.mulf %276, %275 : vector<8x128xf32>
    %278 = arith.addf %272, %277 : vector<8x128xf32>
    %cst_113 = arith.constant 1.800000e+00 : f32
    %279 = vector.broadcast %cst_113 : f32 to vector<8x128xf32>
    %280 = arith.mulf %279, %278 : vector<8x128xf32>
    %cst_114 = arith.constant 0.00999999977 : f32
    %281 = vector.broadcast %cst_114 : f32 to vector<8x128xf32>
    %282 = arith.addf %281, %280 : vector<8x128xf32>
    %283 = vector.broadcast %7 : vector<1x128xf32> to vector<8x128xf32>
    %284 = arith.mulf %195, %283 : vector<8x128xf32>
    %285 = arith.addf %284, %270 : vector<8x128xf32>
    %286 = arith.extf %201 : vector<8x128xbf16> to vector<8x128xf32>
    %287 = arith.mulf %282, %286 : vector<8x128xf32>
    %288 = arith.subf %285, %287 : vector<8x128xf32>
    %289 = arith.subf %288, %282 : vector<8x128xf32>
    %cst_115 = arith.constant 0.000000e+00 : f32
    %290 = vector.broadcast %cst_115 : f32 to vector<8x128xf32>
    %291 = arith.cmpf ogt, %289, %290 : vector<8x128xf32>
    %292 = arith.extui %291 : vector<8x128xi1> to vector<8x128xi32>
    %293 = arith.sitofp %292 : vector<8x128xi32> to vector<8x128xf32>
    %294 = arith.truncf %293 : vector<8x128xf32> to vector<8x128xbf16>
    %295 = arith.index_cast %c2_i32 : i32 to index
    %c0_116 = arith.constant 0 : index
    %c0_117 = arith.constant 0 : index
    %296 = vector.load %arg21[%295, %c0_116, %c0_117] : memref<8x8x128xbf16, #tpu.memory_space<vmem>>, vector<1x8x128xbf16>
    %297 = vector.shape_cast %296 : vector<1x8x128xbf16> to vector<8x128xbf16>
    %298 = vector.shape_cast %294 : vector<8x128xbf16> to vector<1x8x128xbf16>
    tpu.vector_store %arg21[%295, %c0_116, %c0_117], %298 {strides = array<i32>} : memref<8x8x128xbf16, #tpu.memory_space<vmem>>, vector<1x8x128xbf16>,
    %c3_i32 = arith.constant 3 : i32
    %c0_118 = arith.constant 0 : index
    %c0_119 = arith.constant 0 : index
    %299 = vector.load %arg3[%c0_118, %c0_119] : memref<128x128xbf16, #tpu.memory_space<vmem>>, vector<128x128xbf16>
    %cst_120 = arith.constant dense<0.000000e+00> : vector<8x128xf32>
    %300 = tpu.matmul %235, %299, %cst_120 {dimension_numbers = #tpu.dot_dimension_numbers<[1], [0], [0], [1], [0, 0, 1, 1], [], []>} : vector<8x128xbf16>, vector<128x128xbf16>, vector<8x128xf32> -> vector<8x128xf32>
    %301 = arith.index_cast %c3_i32 : i32 to index
    %c0_121 = arith.constant 0 : index
    %c0_122 = arith.constant 0 : index
    %302 = vector.load %arg2[%301, %c0_121, %c0_122] : memref<8x8x128xf32, #tpu.memory_space<vmem>>, vector<1x8x128xf32>
    %303 = vector.shape_cast %302 : vector<1x8x128xf32> to vector<8x128xf32>
    %304 = arith.addf %303, %300 : vector<8x128xf32>
    %305 = vector.broadcast %4 : vector<1x128xf32> to vector<8x128xf32>
    %306 = arith.mulf %305, %219 : vector<8x128xf32>
    %cst_123 = arith.constant 1.000000e+00 : f32
    %307 = vector.broadcast %cst_123 : f32 to vector<1x128xf32>
    %308 = arith.subf %307, %4 : vector<1x128xf32>
    %309 = arith.extf %235 : vector<8x128xbf16> to vector<8x128xf32>
    %310 = vector.broadcast %308 : vector<1x128xf32> to vector<8x128xf32>
    %311 = arith.mulf %310, %309 : vector<8x128xf32>
    %312 = arith.addf %306, %311 : vector<8x128xf32>
    %cst_124 = arith.constant 1.800000e+00 : f32
    %313 = vector.broadcast %cst_124 : f32 to vector<8x128xf32>
    %314 = arith.mulf %313, %312 : vector<8x128xf32>
    %cst_125 = arith.constant 0.00999999977 : f32
    %315 = vector.broadcast %cst_125 : f32 to vector<8x128xf32>
    %316 = arith.addf %315, %314 : vector<8x128xf32>
    %317 = vector.broadcast %3 : vector<1x128xf32> to vector<8x128xf32>
    %318 = arith.mulf %229, %317 : vector<8x128xf32>
    %319 = arith.addf %318, %304 : vector<8x128xf32>
    %320 = arith.extf %235 : vector<8x128xbf16> to vector<8x128xf32>
    %321 = arith.mulf %316, %320 : vector<8x128xf32>
    %322 = arith.subf %319, %321 : vector<8x128xf32>
    %323 = arith.subf %322, %316 : vector<8x128xf32>
    %cst_126 = arith.constant 0.000000e+00 : f32
    %324 = vector.broadcast %cst_126 : f32 to vector<8x128xf32>
    %325 = arith.cmpf ogt, %323, %324 : vector<8x128xf32>
    %326 = arith.extui %325 : vector<8x128xi1> to vector<8x128xi32>
    %327 = arith.sitofp %326 : vector<8x128xi32> to vector<8x128xf32>
    %328 = arith.truncf %327 : vector<8x128xf32> to vector<8x128xbf16>
    %c0_127 = arith.constant 0 : index
    %c0_128 = arith.constant 0 : index
    %329 = vector.load %arg4[%c0_127, %c0_128] : memref<128x128xbf16, #tpu.memory_space<vmem>>, vector<128x128xbf16>
    %cst_129 = arith.constant dense<0.000000e+00> : vector<8x128xf32>
    %330 = tpu.matmul %328, %329, %cst_129 {dimension_numbers = #tpu.dot_dimension_numbers<[1], [0], [0], [1], [0, 0, 1, 1], [], []>} : vector<8x128xbf16>, vector<128x128xbf16>, vector<8x128xf32> -> vector<8x128xf32>
    %c0_130 = arith.constant 0 : index
    %c0_131 = arith.constant 0 : index
    %331 = vector.load %arg5[%c0_130, %c0_131] : memref<128x128xbf16, #tpu.memory_space<vmem>>, vector<128x128xbf16>
    %cst_132 = arith.constant dense<0.000000e+00> : vector<8x128xf32>
    %332 = tpu.matmul %266, %331, %cst_132 {dimension_numbers = #tpu.dot_dimension_numbers<[1], [0], [0], [1], [0, 0, 1, 1], [], []>} : vector<8x128xbf16>, vector<128x128xbf16>, vector<8x128xf32> -> vector<8x128xf32>
    %333 = arith.addf %330, %332 : vector<8x128xf32>
    %334 = vector.broadcast %9 : vector<1x128xf32> to vector<8x128xf32>
    %335 = arith.addf %333, %334 : vector<8x128xf32>
    %336 = vector.broadcast %6 : vector<1x128xf32> to vector<8x128xf32>
    %337 = arith.mulf %336, %250 : vector<8x128xf32>
    %cst_133 = arith.constant 1.000000e+00 : f32
    %338 = vector.broadcast %cst_133 : f32 to vector<1x128xf32>
    %339 = arith.subf %338, %6 : vector<1x128xf32>
    %340 = arith.extf %266 : vector<8x128xbf16> to vector<8x128xf32>
    %341 = vector.broadcast %339 : vector<1x128xf32> to vector<8x128xf32>
    %342 = arith.mulf %341, %340 : vector<8x128xf32>
    %343 = arith.addf %337, %342 : vector<8x128xf32>
    %cst_134 = arith.constant 1.800000e+00 : f32
    %344 = vector.broadcast %cst_134 : f32 to vector<8x128xf32>
    %345 = arith.mulf %344, %343 : vector<8x128xf32>
    %cst_135 = arith.constant 0.00999999977 : f32
    %346 = vector.broadcast %cst_135 : f32 to vector<8x128xf32>
    %347 = arith.addf %346, %345 : vector<8x128xf32>
    %348 = vector.broadcast %5 : vector<1x128xf32> to vector<8x128xf32>
    %349 = arith.mulf %260, %348 : vector<8x128xf32>
    %350 = arith.addf %349, %335 : vector<8x128xf32>
    %351 = arith.extf %266 : vector<8x128xbf16> to vector<8x128xf32>
    %352 = arith.mulf %347, %351 : vector<8x128xf32>
    %353 = arith.subf %350, %352 : vector<8x128xf32>
    %354 = arith.subf %353, %347 : vector<8x128xf32>
    %cst_136 = arith.constant 0.000000e+00 : f32
    %355 = vector.broadcast %cst_136 : f32 to vector<8x128xf32>
    %356 = arith.cmpf ogt, %354, %355 : vector<8x128xf32>
    %357 = arith.extui %356 : vector<8x128xi1> to vector<8x128xi32>
    %358 = arith.sitofp %357 : vector<8x128xi32> to vector<8x128xf32>
    %359 = arith.truncf %358 : vector<8x128xf32> to vector<8x128xbf16>
    %c0_137 = arith.constant 0 : index
    %c0_138 = arith.constant 0 : index
    %360 = vector.load %arg7[%c0_137, %c0_138] : memref<128x128xbf16, #tpu.memory_space<vmem>>, vector<128x128xbf16>
    %cst_139 = arith.constant dense<0.000000e+00> : vector<8x128xf32>
    %361 = tpu.matmul %359, %360, %cst_139 {dimension_numbers = #tpu.dot_dimension_numbers<[1], [0], [0], [1], [0, 0, 1, 1], [], []>} : vector<8x128xbf16>, vector<128x128xbf16>, vector<8x128xf32> -> vector<8x128xf32>
    %362 = vector.broadcast %10 : vector<1x128xf32> to vector<8x128xf32>
    %363 = arith.addf %361, %362 : vector<8x128xf32>
    %364 = vector.broadcast %8 : vector<1x128xf32> to vector<8x128xf32>
    %365 = arith.mulf %364, %278 : vector<8x128xf32>
    %cst_140 = arith.constant 1.000000e+00 : f32
    %366 = vector.broadcast %cst_140 : f32 to vector<1x128xf32>
    %367 = arith.subf %366, %8 : vector<1x128xf32>
    %368 = arith.extf %294 : vector<8x128xbf16> to vector<8x128xf32>
    %369 = vector.broadcast %367 : vector<1x128xf32> to vector<8x128xf32>
    %370 = arith.mulf %369, %368 : vector<8x128xf32>
    %371 = arith.addf %365, %370 : vector<8x128xf32>
    %cst_141 = arith.constant 1.800000e+00 : f32
    %372 = vector.broadcast %cst_141 : f32 to vector<8x128xf32>
    %373 = arith.mulf %372, %371 : vector<8x128xf32>
    %cst_142 = arith.constant 0.00999999977 : f32
    %374 = vector.broadcast %cst_142 : f32 to vector<8x128xf32>
    %375 = arith.addf %374, %373 : vector<8x128xf32>
    %376 = vector.broadcast %7 : vector<1x128xf32> to vector<8x128xf32>
    %377 = arith.mulf %288, %376 : vector<8x128xf32>
    %378 = arith.addf %377, %363 : vector<8x128xf32>
    %379 = arith.extf %294 : vector<8x128xbf16> to vector<8x128xf32>
    %380 = arith.mulf %375, %379 : vector<8x128xf32>
    %381 = arith.subf %378, %380 : vector<8x128xf32>
    %382 = arith.subf %381, %375 : vector<8x128xf32>
    %cst_143 = arith.constant 0.000000e+00 : f32
    %383 = vector.broadcast %cst_143 : f32 to vector<8x128xf32>
    %384 = arith.cmpf ogt, %382, %383 : vector<8x128xf32>
    %385 = arith.extui %384 : vector<8x128xi1> to vector<8x128xi32>
    %386 = arith.sitofp %385 : vector<8x128xi32> to vector<8x128xf32>
    %387 = arith.truncf %386 : vector<8x128xf32> to vector<8x128xbf16>
    %388 = arith.index_cast %c3_i32 : i32 to index
    %c0_144 = arith.constant 0 : index
    %c0_145 = arith.constant 0 : index
    %389 = vector.load %arg21[%388, %c0_144, %c0_145] : memref<8x8x128xbf16, #tpu.memory_space<vmem>>, vector<1x8x128xbf16>
    %390 = vector.shape_cast %389 : vector<1x8x128xbf16> to vector<8x128xbf16>
    %391 = vector.shape_cast %387 : vector<8x128xbf16> to vector<1x8x128xbf16>
    tpu.vector_store %arg21[%388, %c0_144, %c0_145], %391 {strides = array<i32>} : memref<8x8x128xbf16, #tpu.memory_space<vmem>>, vector<1x8x128xbf16>,
    %c4_i32 = arith.constant 4 : i32
    %c0_146 = arith.constant 0 : index
    %c0_147 = arith.constant 0 : index
    %392 = vector.load %arg3[%c0_146, %c0_147] : memref<128x128xbf16, #tpu.memory_space<vmem>>, vector<128x128xbf16>
    %cst_148 = arith.constant dense<0.000000e+00> : vector<8x128xf32>
    %393 = tpu.matmul %328, %392, %cst_148 {dimension_numbers = #tpu.dot_dimension_numbers<[1], [0], [0], [1], [0, 0, 1, 1], [], []>} : vector<8x128xbf16>, vector<128x128xbf16>, vector<8x128xf32> -> vector<8x128xf32>
    %394 = arith.index_cast %c4_i32 : i32 to index
    %c0_149 = arith.constant 0 : index
    %c0_150 = arith.constant 0 : index
    %395 = vector.load %arg2[%394, %c0_149, %c0_150] : memref<8x8x128xf32, #tpu.memory_space<vmem>>, vector<1x8x128xf32>
    %396 = vector.shape_cast %395 : vector<1x8x128xf32> to vector<8x128xf32>
    %397 = arith.addf %396, %393 : vector<8x128xf32>
    %398 = vector.broadcast %4 : vector<1x128xf32> to vector<8x128xf32>
    %399 = arith.mulf %398, %312 : vector<8x128xf32>
    %cst_151 = arith.constant 1.000000e+00 : f32
    %400 = vector.broadcast %cst_151 : f32 to vector<1x128xf32>
    %401 = arith.subf %400, %4 : vector<1x128xf32>
    %402 = arith.extf %328 : vector<8x128xbf16> to vector<8x128xf32>
    %403 = vector.broadcast %401 : vector<1x128xf32> to vector<8x128xf32>
    %404 = arith.mulf %403, %402 : vector<8x128xf32>
    %405 = arith.addf %399, %404 : vector<8x128xf32>
    %cst_152 = arith.constant 1.800000e+00 : f32
    %406 = vector.broadcast %cst_152 : f32 to vector<8x128xf32>
    %407 = arith.mulf %406, %405 : vector<8x128xf32>
    %cst_153 = arith.constant 0.00999999977 : f32
    %408 = vector.broadcast %cst_153 : f32 to vector<8x128xf32>
    %409 = arith.addf %408, %407 : vector<8x128xf32>
    %410 = vector.broadcast %3 : vector<1x128xf32> to vector<8x128xf32>
    %411 = arith.mulf %322, %410 : vector<8x128xf32>
    %412 = arith.addf %411, %397 : vector<8x128xf32>
    %413 = arith.extf %328 : vector<8x128xbf16> to vector<8x128xf32>
    %414 = arith.mulf %409, %413 : vector<8x128xf32>
    %415 = arith.subf %412, %414 : vector<8x128xf32>
    %416 = arith.subf %415, %409 : vector<8x128xf32>
    %cst_154 = arith.constant 0.000000e+00 : f32
    %417 = vector.broadcast %cst_154 : f32 to vector<8x128xf32>
    %418 = arith.cmpf ogt, %416, %417 : vector<8x128xf32>
    %419 = arith.extui %418 : vector<8x128xi1> to vector<8x128xi32>
    %420 = arith.sitofp %419 : vector<8x128xi32> to vector<8x128xf32>
    %421 = arith.truncf %420 : vector<8x128xf32> to vector<8x128xbf16>
    %c0_155 = arith.constant 0 : index
    %c0_156 = arith.constant 0 : index
    %422 = vector.load %arg4[%c0_155, %c0_156] : memref<128x128xbf16, #tpu.memory_space<vmem>>, vector<128x128xbf16>
    %cst_157 = arith.constant dense<0.000000e+00> : vector<8x128xf32>
    %423 = tpu.matmul %421, %422, %cst_157 {dimension_numbers = #tpu.dot_dimension_numbers<[1], [0], [0], [1], [0, 0, 1, 1], [], []>} : vector<8x128xbf16>, vector<128x128xbf16>, vector<8x128xf32> -> vector<8x128xf32>
    %c0_158 = arith.constant 0 : index
    %c0_159 = arith.constant 0 : index
    %424 = vector.load %arg5[%c0_158, %c0_159] : memref<128x128xbf16, #tpu.memory_space<vmem>>, vector<128x128xbf16>
    %cst_160 = arith.constant dense<0.000000e+00> : vector<8x128xf32>
    %425 = tpu.matmul %359, %424, %cst_160 {dimension_numbers = #tpu.dot_dimension_numbers<[1], [0], [0], [1], [0, 0, 1, 1], [], []>} : vector<8x128xbf16>, vector<128x128xbf16>, vector<8x128xf32> -> vector<8x128xf32>
    %426 = arith.addf %423, %425 : vector<8x128xf32>
    %427 = vector.broadcast %9 : vector<1x128xf32> to vector<8x128xf32>
    %428 = arith.addf %426, %427 : vector<8x128xf32>
    %429 = vector.broadcast %6 : vector<1x128xf32> to vector<8x128xf32>
    %430 = arith.mulf %429, %343 : vector<8x128xf32>
    %cst_161 = arith.constant 1.000000e+00 : f32
    %431 = vector.broadcast %cst_161 : f32 to vector<1x128xf32>
    %432 = arith.subf %431, %6 : vector<1x128xf32>
    %433 = arith.extf %359 : vector<8x128xbf16> to vector<8x128xf32>
    %434 = vector.broadcast %432 : vector<1x128xf32> to vector<8x128xf32>
    %435 = arith.mulf %434, %433 : vector<8x128xf32>
    %436 = arith.addf %430, %435 : vector<8x128xf32>
    %cst_162 = arith.constant 1.800000e+00 : f32
    %437 = vector.broadcast %cst_162 : f32 to vector<8x128xf32>
    %438 = arith.mulf %437, %436 : vector<8x128xf32>
    %cst_163 = arith.constant 0.00999999977 : f32
    %439 = vector.broadcast %cst_163 : f32 to vector<8x128xf32>
    %440 = arith.addf %439, %438 : vector<8x128xf32>
    %441 = vector.broadcast %5 : vector<1x128xf32> to vector<8x128xf32>
    %442 = arith.mulf %353, %441 : vector<8x128xf32>
    %443 = arith.addf %442, %428 : vector<8x128xf32>
    %444 = arith.extf %359 : vector<8x128xbf16> to vector<8x128xf32>
    %445 = arith.mulf %440, %444 : vector<8x128xf32>
    %446 = arith.subf %443, %445 : vector<8x128xf32>
    %447 = arith.subf %446, %440 : vector<8x128xf32>
    %cst_164 = arith.constant 0.000000e+00 : f32
    %448 = vector.broadcast %cst_164 : f32 to vector<8x128xf32>
    %449 = arith.cmpf ogt, %447, %448 : vector<8x128xf32>
    %450 = arith.extui %449 : vector<8x128xi1> to vector<8x128xi32>
    %451 = arith.sitofp %450 : vector<8x128xi32> to vector<8x128xf32>
    %452 = arith.truncf %451 : vector<8x128xf32> to vector<8x128xbf16>
    %c0_165 = arith.constant 0 : index
    %c0_166 = arith.constant 0 : index
    %453 = vector.load %arg7[%c0_165, %c0_166] : memref<128x128xbf16, #tpu.memory_space<vmem>>, vector<128x128xbf16>
    %cst_167 = arith.constant dense<0.000000e+00> : vector<8x128xf32>
    %454 = tpu.matmul %452, %453, %cst_167 {dimension_numbers = #tpu.dot_dimension_numbers<[1], [0], [0], [1], [0, 0, 1, 1], [], []>} : vector<8x128xbf16>, vector<128x128xbf16>, vector<8x128xf32> -> vector<8x128xf32>
    %455 = vector.broadcast %10 : vector<1x128xf32> to vector<8x128xf32>
    %456 = arith.addf %454, %455 : vector<8x128xf32>
    %457 = vector.broadcast %8 : vector<1x128xf32> to vector<8x128xf32>
    %458 = arith.mulf %457, %371 : vector<8x128xf32>
    %cst_168 = arith.constant 1.000000e+00 : f32
    %459 = vector.broadcast %cst_168 : f32 to vector<1x128xf32>
    %460 = arith.subf %459, %8 : vector<1x128xf32>
    %461 = arith.extf %387 : vector<8x128xbf16> to vector<8x128xf32>
    %462 = vector.broadcast %460 : vector<1x128xf32> to vector<8x128xf32>
    %463 = arith.mulf %462, %461 : vector<8x128xf32>
    %464 = arith.addf %458, %463 : vector<8x128xf32>
    %cst_169 = arith.constant 1.800000e+00 : f32
    %465 = vector.broadcast %cst_169 : f32 to vector<8x128xf32>
    %466 = arith.mulf %465, %464 : vector<8x128xf32>
    %cst_170 = arith.constant 0.00999999977 : f32
    %467 = vector.broadcast %cst_170 : f32 to vector<8x128xf32>
    %468 = arith.addf %467, %466 : vector<8x128xf32>
    %469 = vector.broadcast %7 : vector<1x128xf32> to vector<8x128xf32>
    %470 = arith.mulf %381, %469 : vector<8x128xf32>
    %471 = arith.addf %470, %456 : vector<8x128xf32>
    %472 = arith.extf %387 : vector<8x128xbf16> to vector<8x128xf32>
    %473 = arith.mulf %468, %472 : vector<8x128xf32>
    %474 = arith.subf %471, %473 : vector<8x128xf32>
    %475 = arith.subf %474, %468 : vector<8x128xf32>
    %cst_171 = arith.constant 0.000000e+00 : f32
    %476 = vector.broadcast %cst_171 : f32 to vector<8x128xf32>
    %477 = arith.cmpf ogt, %475, %476 : vector<8x128xf32>
    %478 = arith.extui %477 : vector<8x128xi1> to vector<8x128xi32>
    %479 = arith.sitofp %478 : vector<8x128xi32> to vector<8x128xf32>
    %480 = arith.truncf %479 : vector<8x128xf32> to vector<8x128xbf16>
    %481 = arith.index_cast %c4_i32 : i32 to index
    %c0_172 = arith.constant 0 : index
    %c0_173 = arith.constant 0 : index
    %482 = vector.load %arg21[%481, %c0_172, %c0_173] : memref<8x8x128xbf16, #tpu.memory_space<vmem>>, vector<1x8x128xbf16>
    %483 = vector.shape_cast %482 : vector<1x8x128xbf16> to vector<8x128xbf16>
    %484 = vector.shape_cast %480 : vector<8x128xbf16> to vector<1x8x128xbf16>
    tpu.vector_store %arg21[%481, %c0_172, %c0_173], %484 {strides = array<i32>} : memref<8x8x128xbf16, #tpu.memory_space<vmem>>, vector<1x8x128xbf16>,
    %c5_i32 = arith.constant 5 : i32
    %c0_174 = arith.constant 0 : index
    %c0_175 = arith.constant 0 : index
    %485 = vector.load %arg3[%c0_174, %c0_175] : memref<128x128xbf16, #tpu.memory_space<vmem>>, vector<128x128xbf16>
    %cst_176 = arith.constant dense<0.000000e+00> : vector<8x128xf32>
    %486 = tpu.matmul %421, %485, %cst_176 {dimension_numbers = #tpu.dot_dimension_numbers<[1], [0], [0], [1], [0, 0, 1, 1], [], []>} : vector<8x128xbf16>, vector<128x128xbf16>, vector<8x128xf32> -> vector<8x128xf32>
    %487 = arith.index_cast %c5_i32 : i32 to index
    %c0_177 = arith.constant 0 : index
    %c0_178 = arith.constant 0 : index
    %488 = vector.load %arg2[%487, %c0_177, %c0_178] : memref<8x8x128xf32, #tpu.memory_space<vmem>>, vector<1x8x128xf32>
    %489 = vector.shape_cast %488 : vector<1x8x128xf32> to vector<8x128xf32>
    %490 = arith.addf %489, %486 : vector<8x128xf32>
    %491 = vector.broadcast %4 : vector<1x128xf32> to vector<8x128xf32>
    %492 = arith.mulf %491, %405 : vector<8x128xf32>
    %cst_179 = arith.constant 1.000000e+00 : f32
    %493 = vector.broadcast %cst_179 : f32 to vector<1x128xf32>
    %494 = arith.subf %493, %4 : vector<1x128xf32>
    %495 = arith.extf %421 : vector<8x128xbf16> to vector<8x128xf32>
    %496 = vector.broadcast %494 : vector<1x128xf32> to vector<8x128xf32>
    %497 = arith.mulf %496, %495 : vector<8x128xf32>
    %498 = arith.addf %492, %497 : vector<8x128xf32>
    %cst_180 = arith.constant 1.800000e+00 : f32
    %499 = vector.broadcast %cst_180 : f32 to vector<8x128xf32>
    %500 = arith.mulf %499, %498 : vector<8x128xf32>
    %cst_181 = arith.constant 0.00999999977 : f32
    %501 = vector.broadcast %cst_181 : f32 to vector<8x128xf32>
    %502 = arith.addf %501, %500 : vector<8x128xf32>
    %503 = vector.broadcast %3 : vector<1x128xf32> to vector<8x128xf32>
    %504 = arith.mulf %415, %503 : vector<8x128xf32>
    %505 = arith.addf %504, %490 : vector<8x128xf32>
    %506 = arith.extf %421 : vector<8x128xbf16> to vector<8x128xf32>
    %507 = arith.mulf %502, %506 : vector<8x128xf32>
    %508 = arith.subf %505, %507 : vector<8x128xf32>
    %509 = arith.subf %508, %502 : vector<8x128xf32>
    %cst_182 = arith.constant 0.000000e+00 : f32
    %510 = vector.broadcast %cst_182 : f32 to vector<8x128xf32>
    %511 = arith.cmpf ogt, %509, %510 : vector<8x128xf32>
    %512 = arith.extui %511 : vector<8x128xi1> to vector<8x128xi32>
    %513 = arith.sitofp %512 : vector<8x128xi32> to vector<8x128xf32>
    %514 = arith.truncf %513 : vector<8x128xf32> to vector<8x128xbf16>
    %c0_183 = arith.constant 0 : index
    %c0_184 = arith.constant 0 : index
    %515 = vector.load %arg4[%c0_183, %c0_184] : memref<128x128xbf16, #tpu.memory_space<vmem>>, vector<128x128xbf16>
    %cst_185 = arith.constant dense<0.000000e+00> : vector<8x128xf32>
    %516 = tpu.matmul %514, %515, %cst_185 {dimension_numbers = #tpu.dot_dimension_numbers<[1], [0], [0], [1], [0, 0, 1, 1], [], []>} : vector<8x128xbf16>, vector<128x128xbf16>, vector<8x128xf32> -> vector<8x128xf32>
    %c0_186 = arith.constant 0 : index
    %c0_187 = arith.constant 0 : index
    %517 = vector.load %arg5[%c0_186, %c0_187] : memref<128x128xbf16, #tpu.memory_space<vmem>>, vector<128x128xbf16>
    %cst_188 = arith.constant dense<0.000000e+00> : vector<8x128xf32>
    %518 = tpu.matmul %452, %517, %cst_188 {dimension_numbers = #tpu.dot_dimension_numbers<[1], [0], [0], [1], [0, 0, 1, 1], [], []>} : vector<8x128xbf16>, vector<128x128xbf16>, vector<8x128xf32> -> vector<8x128xf32>
    %519 = arith.addf %516, %518 : vector<8x128xf32>
    %520 = vector.broadcast %9 : vector<1x128xf32> to vector<8x128xf32>
    %521 = arith.addf %519, %520 : vector<8x128xf32>
    %522 = vector.broadcast %6 : vector<1x128xf32> to vector<8x128xf32>
    %523 = arith.mulf %522, %436 : vector<8x128xf32>
    %cst_189 = arith.constant 1.000000e+00 : f32
    %524 = vector.broadcast %cst_189 : f32 to vector<1x128xf32>
    %525 = arith.subf %524, %6 : vector<1x128xf32>
    %526 = arith.extf %452 : vector<8x128xbf16> to vector<8x128xf32>
    %527 = vector.broadcast %525 : vector<1x128xf32> to vector<8x128xf32>
    %528 = arith.mulf %527, %526 : vector<8x128xf32>
    %529 = arith.addf %523, %528 : vector<8x128xf32>
    %cst_190 = arith.constant 1.800000e+00 : f32
    %530 = vector.broadcast %cst_190 : f32 to vector<8x128xf32>
    %531 = arith.mulf %530, %529 : vector<8x128xf32>
    %cst_191 = arith.constant 0.00999999977 : f32
    %532 = vector.broadcast %cst_191 : f32 to vector<8x128xf32>
    %533 = arith.addf %532, %531 : vector<8x128xf32>
    %534 = vector.broadcast %5 : vector<1x128xf32> to vector<8x128xf32>
    %535 = arith.mulf %446, %534 : vector<8x128xf32>
    %536 = arith.addf %535, %521 : vector<8x128xf32>
    %537 = arith.extf %452 : vector<8x128xbf16> to vector<8x128xf32>
    %538 = arith.mulf %533, %537 : vector<8x128xf32>
    %539 = arith.subf %536, %538 : vector<8x128xf32>
    %540 = arith.subf %539, %533 : vector<8x128xf32>
    %cst_192 = arith.constant 0.000000e+00 : f32
    %541 = vector.broadcast %cst_192 : f32 to vector<8x128xf32>
    %542 = arith.cmpf ogt, %540, %541 : vector<8x128xf32>
    %543 = arith.extui %542 : vector<8x128xi1> to vector<8x128xi32>
    %544 = arith.sitofp %543 : vector<8x128xi32> to vector<8x128xf32>
    %545 = arith.truncf %544 : vector<8x128xf32> to vector<8x128xbf16>
    %c0_193 = arith.constant 0 : index
    %c0_194 = arith.constant 0 : index
    %546 = vector.load %arg7[%c0_193, %c0_194] : memref<128x128xbf16, #tpu.memory_space<vmem>>, vector<128x128xbf16>
    %cst_195 = arith.constant dense<0.000000e+00> : vector<8x128xf32>
    %547 = tpu.matmul %545, %546, %cst_195 {dimension_numbers = #tpu.dot_dimension_numbers<[1], [0], [0], [1], [0, 0, 1, 1], [], []>} : vector<8x128xbf16>, vector<128x128xbf16>, vector<8x128xf32> -> vector<8x128xf32>
    %548 = vector.broadcast %10 : vector<1x128xf32> to vector<8x128xf32>
    %549 = arith.addf %547, %548 : vector<8x128xf32>
    %550 = vector.broadcast %8 : vector<1x128xf32> to vector<8x128xf32>
    %551 = arith.mulf %550, %464 : vector<8x128xf32>
    %cst_196 = arith.constant 1.000000e+00 : f32
    %552 = vector.broadcast %cst_196 : f32 to vector<1x128xf32>
    %553 = arith.subf %552, %8 : vector<1x128xf32>
    %554 = arith.extf %480 : vector<8x128xbf16> to vector<8x128xf32>
    %555 = vector.broadcast %553 : vector<1x128xf32> to vector<8x128xf32>
    %556 = arith.mulf %555, %554 : vector<8x128xf32>
    %557 = arith.addf %551, %556 : vector<8x128xf32>
    %cst_197 = arith.constant 1.800000e+00 : f32
    %558 = vector.broadcast %cst_197 : f32 to vector<8x128xf32>
    %559 = arith.mulf %558, %557 : vector<8x128xf32>
    %cst_198 = arith.constant 0.00999999977 : f32
    %560 = vector.broadcast %cst_198 : f32 to vector<8x128xf32>
    %561 = arith.addf %560, %559 : vector<8x128xf32>
    %562 = vector.broadcast %7 : vector<1x128xf32> to vector<8x128xf32>
    %563 = arith.mulf %474, %562 : vector<8x128xf32>
    %564 = arith.addf %563, %549 : vector<8x128xf32>
    %565 = arith.extf %480 : vector<8x128xbf16> to vector<8x128xf32>
    %566 = arith.mulf %561, %565 : vector<8x128xf32>
    %567 = arith.subf %564, %566 : vector<8x128xf32>
    %568 = arith.subf %567, %561 : vector<8x128xf32>
    %cst_199 = arith.constant 0.000000e+00 : f32
    %569 = vector.broadcast %cst_199 : f32 to vector<8x128xf32>
    %570 = arith.cmpf ogt, %568, %569 : vector<8x128xf32>
    %571 = arith.extui %570 : vector<8x128xi1> to vector<8x128xi32>
    %572 = arith.sitofp %571 : vector<8x128xi32> to vector<8x128xf32>
    %573 = arith.truncf %572 : vector<8x128xf32> to vector<8x128xbf16>
    %574 = arith.index_cast %c5_i32 : i32 to index
    %c0_200 = arith.constant 0 : index
    %c0_201 = arith.constant 0 : index
    %575 = vector.load %arg21[%574, %c0_200, %c0_201] : memref<8x8x128xbf16, #tpu.memory_space<vmem>>, vector<1x8x128xbf16>
    %576 = vector.shape_cast %575 : vector<1x8x128xbf16> to vector<8x128xbf16>
    %577 = vector.shape_cast %573 : vector<8x128xbf16> to vector<1x8x128xbf16>
    tpu.vector_store %arg21[%574, %c0_200, %c0_201], %577 {strides = array<i32>} : memref<8x8x128xbf16, #tpu.memory_space<vmem>>, vector<1x8x128xbf16>,
    %c6_i32 = arith.constant 6 : i32
    %c0_202 = arith.constant 0 : index
    %c0_203 = arith.constant 0 : index
    %578 = vector.load %arg3[%c0_202, %c0_203] : memref<128x128xbf16, #tpu.memory_space<vmem>>, vector<128x128xbf16>
    %cst_204 = arith.constant dense<0.000000e+00> : vector<8x128xf32>
    %579 = tpu.matmul %514, %578, %cst_204 {dimension_numbers = #tpu.dot_dimension_numbers<[1], [0], [0], [1], [0, 0, 1, 1], [], []>} : vector<8x128xbf16>, vector<128x128xbf16>, vector<8x128xf32> -> vector<8x128xf32>
    %580 = arith.index_cast %c6_i32 : i32 to index
    %c0_205 = arith.constant 0 : index
    %c0_206 = arith.constant 0 : index
    %581 = vector.load %arg2[%580, %c0_205, %c0_206] : memref<8x8x128xf32, #tpu.memory_space<vmem>>, vector<1x8x128xf32>
    %582 = vector.shape_cast %581 : vector<1x8x128xf32> to vector<8x128xf32>
    %583 = arith.addf %582, %579 : vector<8x128xf32>
    %584 = vector.broadcast %4 : vector<1x128xf32> to vector<8x128xf32>
    %585 = arith.mulf %584, %498 : vector<8x128xf32>
    %cst_207 = arith.constant 1.000000e+00 : f32
    %586 = vector.broadcast %cst_207 : f32 to vector<1x128xf32>
    %587 = arith.subf %586, %4 : vector<1x128xf32>
    %588 = arith.extf %514 : vector<8x128xbf16> to vector<8x128xf32>
    %589 = vector.broadcast %587 : vector<1x128xf32> to vector<8x128xf32>
    %590 = arith.mulf %589, %588 : vector<8x128xf32>
    %591 = arith.addf %585, %590 : vector<8x128xf32>
    %cst_208 = arith.constant 1.800000e+00 : f32
    %592 = vector.broadcast %cst_208 : f32 to vector<8x128xf32>
    %593 = arith.mulf %592, %591 : vector<8x128xf32>
    %cst_209 = arith.constant 0.00999999977 : f32
    %594 = vector.broadcast %cst_209 : f32 to vector<8x128xf32>
    %595 = arith.addf %594, %593 : vector<8x128xf32>
    %596 = vector.broadcast %3 : vector<1x128xf32> to vector<8x128xf32>
    %597 = arith.mulf %508, %596 : vector<8x128xf32>
    %598 = arith.addf %597, %583 : vector<8x128xf32>
    %599 = arith.extf %514 : vector<8x128xbf16> to vector<8x128xf32>
    %600 = arith.mulf %595, %599 : vector<8x128xf32>
    %601 = arith.subf %598, %600 : vector<8x128xf32>
    %602 = arith.subf %601, %595 : vector<8x128xf32>
    %cst_210 = arith.constant 0.000000e+00 : f32
    %603 = vector.broadcast %cst_210 : f32 to vector<8x128xf32>
    %604 = arith.cmpf ogt, %602, %603 : vector<8x128xf32>
    %605 = arith.extui %604 : vector<8x128xi1> to vector<8x128xi32>
    %606 = arith.sitofp %605 : vector<8x128xi32> to vector<8x128xf32>
    %607 = arith.truncf %606 : vector<8x128xf32> to vector<8x128xbf16>
    %c0_211 = arith.constant 0 : index
    %c0_212 = arith.constant 0 : index
    %608 = vector.load %arg4[%c0_211, %c0_212] : memref<128x128xbf16, #tpu.memory_space<vmem>>, vector<128x128xbf16>
    %cst_213 = arith.constant dense<0.000000e+00> : vector<8x128xf32>
    %609 = tpu.matmul %607, %608, %cst_213 {dimension_numbers = #tpu.dot_dimension_numbers<[1], [0], [0], [1], [0, 0, 1, 1], [], []>} : vector<8x128xbf16>, vector<128x128xbf16>, vector<8x128xf32> -> vector<8x128xf32>
    %c0_214 = arith.constant 0 : index
    %c0_215 = arith.constant 0 : index
    %610 = vector.load %arg5[%c0_214, %c0_215] : memref<128x128xbf16, #tpu.memory_space<vmem>>, vector<128x128xbf16>
    %cst_216 = arith.constant dense<0.000000e+00> : vector<8x128xf32>
    %611 = tpu.matmul %545, %610, %cst_216 {dimension_numbers = #tpu.dot_dimension_numbers<[1], [0], [0], [1], [0, 0, 1, 1], [], []>} : vector<8x128xbf16>, vector<128x128xbf16>, vector<8x128xf32> -> vector<8x128xf32>
    %612 = arith.addf %609, %611 : vector<8x128xf32>
    %613 = vector.broadcast %9 : vector<1x128xf32> to vector<8x128xf32>
    %614 = arith.addf %612, %613 : vector<8x128xf32>
    %615 = vector.broadcast %6 : vector<1x128xf32> to vector<8x128xf32>
    %616 = arith.mulf %615, %529 : vector<8x128xf32>
    %cst_217 = arith.constant 1.000000e+00 : f32
    %617 = vector.broadcast %cst_217 : f32 to vector<1x128xf32>
    %618 = arith.subf %617, %6 : vector<1x128xf32>
    %619 = arith.extf %545 : vector<8x128xbf16> to vector<8x128xf32>
    %620 = vector.broadcast %618 : vector<1x128xf32> to vector<8x128xf32>
    %621 = arith.mulf %620, %619 : vector<8x128xf32>
    %622 = arith.addf %616, %621 : vector<8x128xf32>
    %cst_218 = arith.constant 1.800000e+00 : f32
    %623 = vector.broadcast %cst_218 : f32 to vector<8x128xf32>
    %624 = arith.mulf %623, %622 : vector<8x128xf32>
    %cst_219 = arith.constant 0.00999999977 : f32
    %625 = vector.broadcast %cst_219 : f32 to vector<8x128xf32>
    %626 = arith.addf %625, %624 : vector<8x128xf32>
    %627 = vector.broadcast %5 : vector<1x128xf32> to vector<8x128xf32>
    %628 = arith.mulf %539, %627 : vector<8x128xf32>
    %629 = arith.addf %628, %614 : vector<8x128xf32>
    %630 = arith.extf %545 : vector<8x128xbf16> to vector<8x128xf32>
    %631 = arith.mulf %626, %630 : vector<8x128xf32>
    %632 = arith.subf %629, %631 : vector<8x128xf32>
    %633 = arith.subf %632, %626 : vector<8x128xf32>
    %cst_220 = arith.constant 0.000000e+00 : f32
    %634 = vector.broadcast %cst_220 : f32 to vector<8x128xf32>
    %635 = arith.cmpf ogt, %633, %634 : vector<8x128xf32>
    %636 = arith.extui %635 : vector<8x128xi1> to vector<8x128xi32>
    %637 = arith.sitofp %636 : vector<8x128xi32> to vector<8x128xf32>
    %638 = arith.truncf %637 : vector<8x128xf32> to vector<8x128xbf16>
    %c0_221 = arith.constant 0 : index
    %c0_222 = arith.constant 0 : index
    %639 = vector.load %arg7[%c0_221, %c0_222] : memref<128x128xbf16, #tpu.memory_space<vmem>>, vector<128x128xbf16>
    %cst_223 = arith.constant dense<0.000000e+00> : vector<8x128xf32>
    %640 = tpu.matmul %638, %639, %cst_223 {dimension_numbers = #tpu.dot_dimension_numbers<[1], [0], [0], [1], [0, 0, 1, 1], [], []>} : vector<8x128xbf16>, vector<128x128xbf16>, vector<8x128xf32> -> vector<8x128xf32>
    %641 = vector.broadcast %10 : vector<1x128xf32> to vector<8x128xf32>
    %642 = arith.addf %640, %641 : vector<8x128xf32>
    %643 = vector.broadcast %8 : vector<1x128xf32> to vector<8x128xf32>
    %644 = arith.mulf %643, %557 : vector<8x128xf32>
    %cst_224 = arith.constant 1.000000e+00 : f32
    %645 = vector.broadcast %cst_224 : f32 to vector<1x128xf32>
    %646 = arith.subf %645, %8 : vector<1x128xf32>
    %647 = arith.extf %573 : vector<8x128xbf16> to vector<8x128xf32>
    %648 = vector.broadcast %646 : vector<1x128xf32> to vector<8x128xf32>
    %649 = arith.mulf %648, %647 : vector<8x128xf32>
    %650 = arith.addf %644, %649 : vector<8x128xf32>
    %cst_225 = arith.constant 1.800000e+00 : f32
    %651 = vector.broadcast %cst_225 : f32 to vector<8x128xf32>
    %652 = arith.mulf %651, %650 : vector<8x128xf32>
    %cst_226 = arith.constant 0.00999999977 : f32
    %653 = vector.broadcast %cst_226 : f32 to vector<8x128xf32>
    %654 = arith.addf %653, %652 : vector<8x128xf32>
    %655 = vector.broadcast %7 : vector<1x128xf32> to vector<8x128xf32>
    %656 = arith.mulf %567, %655 : vector<8x128xf32>
    %657 = arith.addf %656, %642 : vector<8x128xf32>
    %658 = arith.extf %573 : vector<8x128xbf16> to vector<8x128xf32>
    %659 = arith.mulf %654, %658 : vector<8x128xf32>
    %660 = arith.subf %657, %659 : vector<8x128xf32>
    %661 = arith.subf %660, %654 : vector<8x128xf32>
    %cst_227 = arith.constant 0.000000e+00 : f32
    %662 = vector.broadcast %cst_227 : f32 to vector<8x128xf32>
    %663 = arith.cmpf ogt, %661, %662 : vector<8x128xf32>
    %664 = arith.extui %663 : vector<8x128xi1> to vector<8x128xi32>
    %665 = arith.sitofp %664 : vector<8x128xi32> to vector<8x128xf32>
    %666 = arith.truncf %665 : vector<8x128xf32> to vector<8x128xbf16>
    %667 = arith.index_cast %c6_i32 : i32 to index
    %c0_228 = arith.constant 0 : index
    %c0_229 = arith.constant 0 : index
    %668 = vector.load %arg21[%667, %c0_228, %c0_229] : memref<8x8x128xbf16, #tpu.memory_space<vmem>>, vector<1x8x128xbf16>
    %669 = vector.shape_cast %668 : vector<1x8x128xbf16> to vector<8x128xbf16>
    %670 = vector.shape_cast %666 : vector<8x128xbf16> to vector<1x8x128xbf16>
    tpu.vector_store %arg21[%667, %c0_228, %c0_229], %670 {strides = array<i32>} : memref<8x8x128xbf16, #tpu.memory_space<vmem>>, vector<1x8x128xbf16>,
    %c7_i32 = arith.constant 7 : i32
    %c0_230 = arith.constant 0 : index
    %c0_231 = arith.constant 0 : index
    %671 = vector.load %arg3[%c0_230, %c0_231] : memref<128x128xbf16, #tpu.memory_space<vmem>>, vector<128x128xbf16>
    %cst_232 = arith.constant dense<0.000000e+00> : vector<8x128xf32>
    %672 = tpu.matmul %607, %671, %cst_232 {dimension_numbers = #tpu.dot_dimension_numbers<[1], [0], [0], [1], [0, 0, 1, 1], [], []>} : vector<8x128xbf16>, vector<128x128xbf16>, vector<8x128xf32> -> vector<8x128xf32>
    %673 = arith.index_cast %c7_i32 : i32 to index
    %c0_233 = arith.constant 0 : index
    %c0_234 = arith.constant 0 : index
    %674 = vector.load %arg2[%673, %c0_233, %c0_234] : memref<8x8x128xf32, #tpu.memory_space<vmem>>, vector<1x8x128xf32>
    %675 = vector.shape_cast %674 : vector<1x8x128xf32> to vector<8x128xf32>
    %676 = arith.addf %675, %672 : vector<8x128xf32>
    %677 = vector.broadcast %4 : vector<1x128xf32> to vector<8x128xf32>
    %678 = arith.mulf %677, %591 : vector<8x128xf32>
    %cst_235 = arith.constant 1.000000e+00 : f32
    %679 = vector.broadcast %cst_235 : f32 to vector<1x128xf32>
    %680 = arith.subf %679, %4 : vector<1x128xf32>
    %681 = arith.extf %607 : vector<8x128xbf16> to vector<8x128xf32>
    %682 = vector.broadcast %680 : vector<1x128xf32> to vector<8x128xf32>
    %683 = arith.mulf %682, %681 : vector<8x128xf32>
    %684 = arith.addf %678, %683 : vector<8x128xf32>
    %cst_236 = arith.constant 1.800000e+00 : f32
    %685 = vector.broadcast %cst_236 : f32 to vector<8x128xf32>
    %686 = arith.mulf %685, %684 : vector<8x128xf32>
    %cst_237 = arith.constant 0.00999999977 : f32
    %687 = vector.broadcast %cst_237 : f32 to vector<8x128xf32>
    %688 = arith.addf %687, %686 : vector<8x128xf32>
    %689 = vector.broadcast %3 : vector<1x128xf32> to vector<8x128xf32>
    %690 = arith.mulf %601, %689 : vector<8x128xf32>
    %691 = arith.addf %690, %676 : vector<8x128xf32>
    %692 = arith.extf %607 : vector<8x128xbf16> to vector<8x128xf32>
    %693 = arith.mulf %688, %692 : vector<8x128xf32>
    %694 = arith.subf %691, %693 : vector<8x128xf32>
    %695 = arith.subf %694, %688 : vector<8x128xf32>
    %cst_238 = arith.constant 0.000000e+00 : f32
    %696 = vector.broadcast %cst_238 : f32 to vector<8x128xf32>
    %697 = arith.cmpf ogt, %695, %696 : vector<8x128xf32>
    %698 = arith.extui %697 : vector<8x128xi1> to vector<8x128xi32>
    %699 = arith.sitofp %698 : vector<8x128xi32> to vector<8x128xf32>
    %700 = arith.truncf %699 : vector<8x128xf32> to vector<8x128xbf16>
    %c0_239 = arith.constant 0 : index
    %c0_240 = arith.constant 0 : index
    %701 = vector.load %arg4[%c0_239, %c0_240] : memref<128x128xbf16, #tpu.memory_space<vmem>>, vector<128x128xbf16>
    %cst_241 = arith.constant dense<0.000000e+00> : vector<8x128xf32>
    %702 = tpu.matmul %700, %701, %cst_241 {dimension_numbers = #tpu.dot_dimension_numbers<[1], [0], [0], [1], [0, 0, 1, 1], [], []>} : vector<8x128xbf16>, vector<128x128xbf16>, vector<8x128xf32> -> vector<8x128xf32>
    %c0_242 = arith.constant 0 : index
    %c0_243 = arith.constant 0 : index
    %703 = vector.load %arg5[%c0_242, %c0_243] : memref<128x128xbf16, #tpu.memory_space<vmem>>, vector<128x128xbf16>
    %cst_244 = arith.constant dense<0.000000e+00> : vector<8x128xf32>
    %704 = tpu.matmul %638, %703, %cst_244 {dimension_numbers = #tpu.dot_dimension_numbers<[1], [0], [0], [1], [0, 0, 1, 1], [], []>} : vector<8x128xbf16>, vector<128x128xbf16>, vector<8x128xf32> -> vector<8x128xf32>
    %705 = arith.addf %702, %704 : vector<8x128xf32>
    %706 = vector.broadcast %9 : vector<1x128xf32> to vector<8x128xf32>
    %707 = arith.addf %705, %706 : vector<8x128xf32>
    %708 = vector.broadcast %6 : vector<1x128xf32> to vector<8x128xf32>
    %709 = arith.mulf %708, %622 : vector<8x128xf32>
    %cst_245 = arith.constant 1.000000e+00 : f32
    %710 = vector.broadcast %cst_245 : f32 to vector<1x128xf32>
    %711 = arith.subf %710, %6 : vector<1x128xf32>
    %712 = arith.extf %638 : vector<8x128xbf16> to vector<8x128xf32>
    %713 = vector.broadcast %711 : vector<1x128xf32> to vector<8x128xf32>
    %714 = arith.mulf %713, %712 : vector<8x128xf32>
    %715 = arith.addf %709, %714 : vector<8x128xf32>
    %cst_246 = arith.constant 1.800000e+00 : f32
    %716 = vector.broadcast %cst_246 : f32 to vector<8x128xf32>
    %717 = arith.mulf %716, %715 : vector<8x128xf32>
    %cst_247 = arith.constant 0.00999999977 : f32
    %718 = vector.broadcast %cst_247 : f32 to vector<8x128xf32>
    %719 = arith.addf %718, %717 : vector<8x128xf32>
    %720 = vector.broadcast %5 : vector<1x128xf32> to vector<8x128xf32>
    %721 = arith.mulf %632, %720 : vector<8x128xf32>
    %722 = arith.addf %721, %707 : vector<8x128xf32>
    %723 = arith.extf %638 : vector<8x128xbf16> to vector<8x128xf32>
    %724 = arith.mulf %719, %723 : vector<8x128xf32>
    %725 = arith.subf %722, %724 : vector<8x128xf32>
    %726 = arith.subf %725, %719 : vector<8x128xf32>
    %cst_248 = arith.constant 0.000000e+00 : f32
    %727 = vector.broadcast %cst_248 : f32 to vector<8x128xf32>
    %728 = arith.cmpf ogt, %726, %727 : vector<8x128xf32>
    %729 = arith.extui %728 : vector<8x128xi1> to vector<8x128xi32>
    %730 = arith.sitofp %729 : vector<8x128xi32> to vector<8x128xf32>
    %731 = arith.truncf %730 : vector<8x128xf32> to vector<8x128xbf16>
    %c0_249 = arith.constant 0 : index
    %c0_250 = arith.constant 0 : index
    %732 = vector.load %arg7[%c0_249, %c0_250] : memref<128x128xbf16, #tpu.memory_space<vmem>>, vector<128x128xbf16>
    %cst_251 = arith.constant dense<0.000000e+00> : vector<8x128xf32>
    %733 = tpu.matmul %731, %732, %cst_251 {dimension_numbers = #tpu.dot_dimension_numbers<[1], [0], [0], [1], [0, 0, 1, 1], [], []>} : vector<8x128xbf16>, vector<128x128xbf16>, vector<8x128xf32> -> vector<8x128xf32>
    %734 = vector.broadcast %10 : vector<1x128xf32> to vector<8x128xf32>
    %735 = arith.addf %733, %734 : vector<8x128xf32>
    %736 = vector.broadcast %8 : vector<1x128xf32> to vector<8x128xf32>
    %737 = arith.mulf %736, %650 : vector<8x128xf32>
    %cst_252 = arith.constant 1.000000e+00 : f32
    %738 = vector.broadcast %cst_252 : f32 to vector<1x128xf32>
    %739 = arith.subf %738, %8 : vector<1x128xf32>
    %740 = arith.extf %666 : vector<8x128xbf16> to vector<8x128xf32>
    %741 = vector.broadcast %739 : vector<1x128xf32> to vector<8x128xf32>
    %742 = arith.mulf %741, %740 : vector<8x128xf32>
    %743 = arith.addf %737, %742 : vector<8x128xf32>
    %cst_253 = arith.constant 1.800000e+00 : f32
    %744 = vector.broadcast %cst_253 : f32 to vector<8x128xf32>
    %745 = arith.mulf %744, %743 : vector<8x128xf32>
    %cst_254 = arith.constant 0.00999999977 : f32
    %746 = vector.broadcast %cst_254 : f32 to vector<8x128xf32>
    %747 = arith.addf %746, %745 : vector<8x128xf32>
    %748 = vector.broadcast %7 : vector<1x128xf32> to vector<8x128xf32>
    %749 = arith.mulf %660, %748 : vector<8x128xf32>
    %750 = arith.addf %749, %735 : vector<8x128xf32>
    %751 = arith.extf %666 : vector<8x128xbf16> to vector<8x128xf32>
    %752 = arith.mulf %747, %751 : vector<8x128xf32>
    %753 = arith.subf %750, %752 : vector<8x128xf32>
    %754 = arith.subf %753, %747 : vector<8x128xf32>
    %cst_255 = arith.constant 0.000000e+00 : f32
    %755 = vector.broadcast %cst_255 : f32 to vector<8x128xf32>
    %756 = arith.cmpf ogt, %754, %755 : vector<8x128xf32>
    %757 = arith.extui %756 : vector<8x128xi1> to vector<8x128xi32>
    %758 = arith.sitofp %757 : vector<8x128xi32> to vector<8x128xf32>
    %759 = arith.truncf %758 : vector<8x128xf32> to vector<8x128xbf16>
    %760 = arith.index_cast %c7_i32 : i32 to index
    %c0_256 = arith.constant 0 : index
    %c0_257 = arith.constant 0 : index
    %761 = vector.load %arg21[%760, %c0_256, %c0_257] : memref<8x8x128xbf16, #tpu.memory_space<vmem>>, vector<1x8x128xbf16>
    %762 = vector.shape_cast %761 : vector<1x8x128xbf16> to vector<8x128xbf16>
    %763 = vector.shape_cast %759 : vector<8x128xbf16> to vector<1x8x128xbf16>
    tpu.vector_store %arg21[%760, %c0_256, %c0_257], %763 {strides = array<i32>} : memref<8x8x128xbf16, #tpu.memory_space<vmem>>, vector<1x8x128xbf16>,
    %c8_i32 = arith.constant 8 : i32
    %c0_258 = arith.constant 0 : index
    %c0_259 = arith.constant 0 : index
    %764 = vector.load %arg22[%c0_258, %c0_259] : memref<8x128xf32, #tpu.memory_space<vmem>>, vector<8x128xf32>
    tpu.vector_store %arg22[%c0_258, %c0_259], %694 {strides = array<i32>} : memref<8x128xf32, #tpu.memory_space<vmem>>, vector<8x128xf32>,
    %c0_260 = arith.constant 0 : index
    %c0_261 = arith.constant 0 : index
    %765 = vector.load %arg23[%c0_260, %c0_261] : memref<8x128xbf16, #tpu.memory_space<vmem>>, vector<8x128xbf16>
    tpu.vector_store %arg23[%c0_260, %c0_261], %700 {strides = array<i32>} : memref<8x128xbf16, #tpu.memory_space<vmem>>, vector<8x128xbf16>,
    %c0_262 = arith.constant 0 : index
    %c0_263 = arith.constant 0 : index
    %766 = vector.load %arg24[%c0_262, %c0_263] : memref<8x128xf32, #tpu.memory_space<vmem>>, vector<8x128xf32>
    tpu.vector_store %arg24[%c0_262, %c0_263], %684 {strides = array<i32>} : memref<8x128xf32, #tpu.memory_space<vmem>>, vector<8x128xf32>,
    %c0_264 = arith.constant 0 : index
    %c0_265 = arith.constant 0 : index
    %767 = vector.load %arg25[%c0_264, %c0_265] : memref<8x128xf32, #tpu.memory_space<vmem>>, vector<8x128xf32>
    tpu.vector_store %arg25[%c0_264, %c0_265], %725 {strides = array<i32>} : memref<8x128xf32, #tpu.memory_space<vmem>>, vector<8x128xf32>,
    %c0_266 = arith.constant 0 : index
    %c0_267 = arith.constant 0 : index
    %768 = vector.load %arg26[%c0_266, %c0_267] : memref<8x128xbf16, #tpu.memory_space<vmem>>, vector<8x128xbf16>
    tpu.vector_store %arg26[%c0_266, %c0_267], %731 {strides = array<i32>} : memref<8x128xbf16, #tpu.memory_space<vmem>>, vector<8x128xbf16>,
    %c0_268 = arith.constant 0 : index
    %c0_269 = arith.constant 0 : index
    %769 = vector.load %arg27[%c0_268, %c0_269] : memref<8x128xf32, #tpu.memory_space<vmem>>, vector<8x128xf32>
    tpu.vector_store %arg27[%c0_268, %c0_269], %715 {strides = array<i32>} : memref<8x128xf32, #tpu.memory_space<vmem>>, vector<8x128xf32>,
    %c0_270 = arith.constant 0 : index
    %c0_271 = arith.constant 0 : index
    %770 = vector.load %arg28[%c0_270, %c0_271] : memref<8x128xf32, #tpu.memory_space<vmem>>, vector<8x128xf32>
    tpu.vector_store %arg28[%c0_270, %c0_271], %753 {strides = array<i32>} : memref<8x128xf32, #tpu.memory_space<vmem>>, vector<8x128xf32>,
    %c0_272 = arith.constant 0 : index
    %c0_273 = arith.constant 0 : index
    %771 = vector.load %arg29[%c0_272, %c0_273] : memref<8x128xbf16, #tpu.memory_space<vmem>>, vector<8x128xbf16>
    tpu.vector_store %arg29[%c0_272, %c0_273], %759 {strides = array<i32>} : memref<8x128xbf16, #tpu.memory_space<vmem>>, vector<8x128xbf16>,
    %c0_274 = arith.constant 0 : index
    %c0_275 = arith.constant 0 : index
    %772 = vector.load %arg30[%c0_274, %c0_275] : memref<8x128xf32, #tpu.memory_space<vmem>>, vector<8x128xf32>
    tpu.vector_store %arg30[%c0_274, %c0_275], %743 {strides = array<i32>} : memref<8x128xf32, #tpu.memory_space<vmem>>, vector<8x128xf32>,
    %c0_276 = arith.constant 0 : index
    %c0_277 = arith.constant 0 : index
    %773 = vector.load %arg10[%c0_276, %c0_277] : memref<1x128xf32, #tpu.memory_space<vmem>>, vector<1x128xf32>
    %c0_i32_278 = arith.constant 0 : i32
    %774 = arith.cmpi eq, %arg1, %c0_i32_278 : i32
    %775 = arith.extui %774 : i1 to i32
    %c0_i32_279 = arith.constant 0 : i32
    %776 = arith.cmpi ne, %775, %c0_i32_279 : i32
    scf.if %776 {
      %c7 = arith.constant 7 : index
      %c0_280 = arith.constant 0 : index
      %c0_281 = arith.constant 0 : index
      %777 = vector.load %arg21[%c7, %c0_280, %c0_281] : memref<8x8x128xbf16, #tpu.memory_space<vmem>>, vector<1x8x128xbf16>
      %778 = vector.shape_cast %777 : vector<1x8x128xbf16> to vector<8x128xbf16>
      %c0_282 = arith.constant 0 : index
      %c0_283 = arith.constant 0 : index
      %779 = vector.load %arg9[%c0_282, %c0_283] : memref<128x128xbf16, #tpu.memory_space<vmem>>, vector<128x128xbf16>
      %cst_284 = arith.constant dense<0.000000e+00> : vector<8x128xf32>
      %780 = tpu.matmul %778, %779, %cst_284 {dimension_numbers = #tpu.dot_dimension_numbers<[1], [0], [0], [1], [0, 0, 1, 1], [], []>} : vector<8x128xbf16>, vector<128x128xbf16>, vector<8x128xf32> -> vector<8x128xf32>
      %781 = vector.broadcast %773 : vector<1x128xf32> to vector<8x128xf32>
      %782 = arith.addf %780, %781 : vector<8x128xf32>
      %783 = arith.negf %782 : vector<8x128xf32>
      %784 = math.exp %783 : vector<8x128xf32>
      %cst_285 = arith.constant 1.000000e+00 : f32
      %785 = vector.broadcast %cst_285 : f32 to vector<8x128xf32>
      %786 = arith.addf %785, %784 : vector<8x128xf32>
      %787 = arith.divf %785, %786 : vector<8x128xf32>
      %c0_286 = arith.constant 0 : index
      %c0_287 = arith.constant 0 : index
      %788 = vector.load %arg20[%c0_286, %c0_287] : memref<8x128xf32, #tpu.memory_space<vmem>>, vector<8x128xf32>
      tpu.vector_store %arg20[%c0_286, %c0_287], %787 {strides = array<i32>} : memref<8x128xf32, #tpu.memory_space<vmem>>, vector<8x128xf32>,
    } else {
    }
    return
  }
  func.func @transform_0(%arg0: i32, %arg1: i32) -> (i32, i32, i32) {
    %c0_i32 = arith.constant 0 : i32
    %c0_i32_0 = arith.constant 0 : i32
    return %arg1, %arg0, %c0_i32 : i32, i32, i32
  }
  func.func @transform_1(%arg0: i32, %arg1: i32) -> (i32, i32) {
    %c0_i32 = arith.constant 0 : i32
    %c0_i32_0 = arith.constant 0 : i32
    %c0_i32_1 = arith.constant 0 : i32
    return %c0_i32, %c0_i32_0 : i32, i32
  }
  func.func @transform_2(%arg0: i32, %arg1: i32) -> (i32, i32) {
    %c0_i32 = arith.constant 0 : i32
    %c0_i32_0 = arith.constant 0 : i32
    %c0_i32_1 = arith.constant 0 : i32
    return %c0_i32, %c0_i32_0 : i32, i32
  }
  func.func @transform_3(%arg0: i32, %arg1: i32) -> (i32, i32) {
    %c0_i32 = arith.constant 0 : i32
    %c0_i32_0 = arith.constant 0 : i32
    %c0_i32_1 = arith.constant 0 : i32
    return %c0_i32, %c0_i32_0 : i32, i32
  }
  func.func @transform_4(%arg0: i32, %arg1: i32) -> (i32, i32) {
    %c0_i32 = arith.constant 0 : i32
    %c0_i32_0 = arith.constant 0 : i32
    %c0_i32_1 = arith.constant 0 : i32
    return %c0_i32, %c0_i32_0 : i32, i32
  }
  func.func @transform_5(%arg0: i32, %arg1: i32) -> (i32, i32) {
    %c0_i32 = arith.constant 0 : i32
    %c0_i32_0 = arith.constant 0 : i32
    %c0_i32_1 = arith.constant 0 : i32
    return %c0_i32, %c0_i32_0 : i32, i32
  }
  func.func @transform_6(%arg0: i32, %arg1: i32) -> (i32, i32) {
    %c0_i32 = arith.constant 0 : i32
    %c0_i32_0 = arith.constant 0 : i32
    %c0_i32_1 = arith.constant 0 : i32
    return %c0_i32, %c0_i32_0 : i32, i32
  }
  func.func @transform_7(%arg0: i32, %arg1: i32) -> (i32, i32) {
    %c0_i32 = arith.constant 0 : i32
    %c0_i32_0 = arith.constant 0 : i32
    %c0_i32_1 = arith.constant 0 : i32
    return %c0_i32, %c0_i32_0 : i32, i32
  }
  func.func @transform_8(%arg0: i32, %arg1: i32) -> (i32, i32) {
    %c0_i32 = arith.constant 0 : i32
    %c0_i32_0 = arith.constant 0 : i32
    %c0_i32_1 = arith.constant 0 : i32
    return %c0_i32, %c0_i32_0 : i32, i32
  }
  func.func @transform_9(%arg0: i32, %arg1: i32) -> (i32, i32) {
    %c0_i32 = arith.constant 0 : i32
    %c0_i32_0 = arith.constant 0 : i32
    %c0_i32_1 = arith.constant 0 : i32
    return %c0_i32, %c0_i32_0 : i32, i32
  }
  func.func @transform_10(%arg0: i32, %arg1: i32) -> (i32, i32) {
    %c0_i32 = arith.constant 0 : i32
    %c0_i32_0 = arith.constant 0 : i32
    %c0_i32_1 = arith.constant 0 : i32
    return %c0_i32, %c0_i32_0 : i32, i32
  }
  func.func @transform_11(%arg0: i32, %arg1: i32) -> (i32, i32) {
    %c0_i32 = arith.constant 0 : i32
    %c0_i32_0 = arith.constant 0 : i32
    %c0_i32_1 = arith.constant 0 : i32
    return %c0_i32, %c0_i32_0 : i32, i32
  }
  func.func @transform_12(%arg0: i32, %arg1: i32) -> (i32, i32) {
    %c0_i32 = arith.constant 0 : i32
    %c0_i32_0 = arith.constant 0 : i32
    %c0_i32_1 = arith.constant 0 : i32
    return %c0_i32, %c0_i32_0 : i32, i32
  }
  func.func @transform_13(%arg0: i32, %arg1: i32) -> (i32, i32) {
    %c0_i32 = arith.constant 0 : i32
    %c0_i32_0 = arith.constant 0 : i32
    %c0_i32_1 = arith.constant 0 : i32
    return %c0_i32, %c0_i32_0 : i32, i32
  }
  func.func @transform_14(%arg0: i32, %arg1: i32) -> (i32, i32) {
    %c0_i32 = arith.constant 0 : i32
    %c0_i32_0 = arith.constant 0 : i32
    %c0_i32_1 = arith.constant 0 : i32
    return %c0_i32, %c0_i32_0 : i32, i32
  }
  func.func @transform_15(%arg0: i32, %arg1: i32) -> (i32, i32) {
    %c0_i32 = arith.constant 0 : i32
    %c0_i32_0 = arith.constant 0 : i32
    return %arg0, %c0_i32 : i32, i32
  }
  func.func @transform_16(%arg0: i32, %arg1: i32) -> (i32, i32) {
    %c0_i32 = arith.constant 0 : i32
    %c0_i32_0 = arith.constant 0 : i32
    return %arg0, %c0_i32 : i32, i32
  }
  func.func @transform_17(%arg0: i32, %arg1: i32) -> (i32, i32) {
    %c0_i32 = arith.constant 0 : i32
    %c0_i32_0 = arith.constant 0 : i32
    return %arg0, %c0_i32 : i32, i32
  }
  func.func @transform_18(%arg0: i32, %arg1: i32) -> (i32, i32) {
    %c0_i32 = arith.constant 0 : i32
    %c0_i32_0 = arith.constant 0 : i32
    return %arg0, %c0_i32 : i32, i32
  }
}

</mosaic_0001>

<bundles_post_ra>
// kernel: tpu_custom_call.1
= control target key start
LH: loop header
LB: loop body
LE: loop exit
PB: predicated region body
PF: predicated region fallthrough
CT: control target
= control target key end

     0   :  { %s7251_s0 = inlined_call_operand.hbm [shape: f32[8,8,128], index: 0, kind: input, shape index: {}]   ;;  %s7252_s1 = inlined_call_operand.hbm [shape: bf16[128,128], index: 1, kind: input, shape index: {}]   ;;  %s7253_s2 = inlined_call_operand.hbm [shape: bf16[128,128], index: 2, kind: input, shape index: {}]   ;;  %s7254_s3 = inlined_call_operand.hbm [shape: bf16[128,128], index: 3, kind: input, shape index: {}]   ;;  %s7255_s4 = inlined_call_operand.vmem [shape: f32[1,128], index: 4, kind: input, shape index: {}]   ;;  %s7256_s5 = inlined_call_operand.hbm [shape: bf16[128,128], index: 5, kind: input, shape index: {}]   ;;  %s7257_s6 = inlined_call_operand.vmem [shape: f32[1,128], index: 6, kind: input, shape index: {}]   ;;  %s7258_s7 = inlined_call_operand.hbm [shape: bf16[128,128], index: 7, kind: input, shape index: {}]   ;;  %s7259_s8 = inlined_call_operand.vmem [shape: f32[1,128], index: 8, kind: input, shape index: {}]   ;;  %s7260_s9 = inlined_call_operand.vmem [shape: f32[1,128], index: 9, kind: input, shape index: {}]   ;;  %s7261_s10 = inlined_call_operand.vmem [shape: f32[1,128], index: 10, kind: input, shape index: {}]   ;;  %s7262_s11 = inlined_call_operand.vmem [shape: f32[1,128], index: 11, kind: input, shape index: {}]   ;;  %s7263_s12 = inlined_call_operand.vmem [shape: f32[1,128], index: 12, kind: input, shape index: {}]   ;;  %s7264_s13 = inlined_call_operand.vmem [shape: f32[1,128], index: 13, kind: input, shape index: {}]   ;;  %s7265_s14 = inlined_call_operand.vmem [shape: f32[1,128], index: 14, kind: input, shape index: {}]   ;;  %s7266_s15 = inlined_call_operand.vmem [shape: f32[8,128], index: 15, kind: input, shape index: {}]   ;;  %s7267_s16 = inlined_call_operand.vmem [shape: f32[8,128], index: 16, kind: input, shape index: {}]   ;;  %s7268_s17 = inlined_call_operand.vmem [shape: f32[8,128], index: 17, kind: input, shape index: {}]   ;;  %s7269_s18 = inlined_call_operand.hbm [shape: f32[8,128], index: 18, kind: output, shape index: {}]  }
   0x1   :  { %7278 = sst [smem:[#allocation29_spill]] %s7251_s0 }
   0x2   :  { %7279 = sst [smem:[#allocation30_spill]] %s7252_s1 }
   0x3   :  { %7280 = sst [smem:[#allocation31_spill]] %s7253_s2 }
   0x4   :  { %7281 = sst [smem:[#allocation32_spill]] %s7259_s8 }
   0x5   :  { %7282 = sst [smem:[#allocation33_spill]] %s7269_s18 }
   0x6   :  { %23 = vsyncpa [#allocation13], 0 }
   0x7   :  { %24 = vsyncpa [#allocation16], 0 }
   0x8   :  { %25 = vsyncpa [#allocation19], 0 }
   0x9   :  { %26 = vsyncpa [#allocation22], 0 }
   0xa   :  { %27 = vsyncpa [#allocation14], 0  ;;  %s5901_s27 = smov [#allocation15]   ;;  %s7283_s0 = sld [smem:[#allocation30_spill]] }
   0xb   :  { %s45_s28 = sshll.u32 %s5901_s27, 4  ;;  %s46_s28 = int_to_ptr.vmem [resolvable:$true] %s45_s28 }
  0x10   :  { %s5737_s19 = scalar_lea.hbm %s7283_s0, 1024 }
  0x11   :  { %p5738_p0 = scmp.ne.s32.totalorder %s7283_s0, %s5737_s19  ;;  %p5741_p1 = scmp.lt.u32.totalorder %s5737_s19, %s7283_s0 }
  0x13   :  { %p5743_p2 = pnand %p5741_p1, %p5738_p0 }
  0x15   :  { %5746 = shalt.err (!%p5743_p2)
}
  0x16   :  { %s5747_s2 = scalar_lea.vmem %s46_s28, 1024  ;;  %p5752_p4 = scmp.lt.s32.totalorder %s46_s28, %s46_s28 }
  0x17   :  { %p5748_p3 = scmp.ne.s32.totalorder %s46_s28, %s5747_s2  ;;  %p5753_p5 = scmp.lt.s32.totalorder %s5747_s2, %s5747_s2 }
  0x19   :  { %p5754_p6 = por %p5753_p5, %p5752_p4 }
  0x1b   :  { %p5755_p7 = pnand %p5754_p6, %p5748_p3 }
  0x1d   :  { %5758 = shalt.err (!%p5755_p7)
}
  0x1e   :  { %s7274_s23 = smov 64   ;;  %s7276_s24 = smov 4  }
  0x1f   :  { %51 = dma.hbm_to_vmem [thread:$0]  %s7283_s0, 1024, %s46_s28, [#allocation16], %s7274_s23, %s7274_s23, %s7276_s24  }
  0x20   :  { %s5904_s27 = smov [#allocation18]   ;;  %s5905_s30 = smov [#allocation12]  }
  0x21   :  { %s69_s29 = sshll.u32 %s5904_s27, 4  ;;  %s33_s19 = sshll.u32 %s5905_s30, 4  ;;  %s70_s29 = int_to_ptr.vmem [resolvable:$true] %s69_s29  ;;  %s34_s19 = int_to_ptr.vmem [resolvable:$true] %s33_s19 }
  0x22   :  { %s5759_s21 = scalar_lea.hbm %s7254_s3, 1024 }
  0x23   :  { %p5760_p8 = scmp.ne.s32.totalorder %s7254_s3, %s5759_s21  ;;  %p5763_p9 = scmp.lt.u32.totalorder %s5759_s21, %s7254_s3 }
  0x25   :  { %p5765_p10 = pnand %p5763_p9, %p5760_p8 }
  0x27   :  { %5768 = shalt.err (!%p5765_p10)
}
  0x28   :  { %s5769_s28 = scalar_lea.vmem %s70_s29, 1024  ;;  %p5774_p12 = scmp.lt.s32.totalorder %s70_s29, %s70_s29 }
  0x29   :  { %p5770_p11 = scmp.ne.s32.totalorder %s70_s29, %s5769_s28  ;;  %p5775_p13 = scmp.lt.s32.totalorder %s5769_s28, %s5769_s28 }
  0x2b   :  { %p5776_p0 = por %p5775_p13, %p5774_p12 }
  0x2d   :  { %p5777_p1 = pnand %p5776_p0, %p5770_p11 }
  0x2f   :  { %5780 = shalt.err (!%p5777_p1)
}
  0x30   :  { %75 = dma.hbm_to_vmem [thread:$0]  %s7254_s3, 1024, %s70_s29, [#allocation19], %s7274_s23, %s7274_s23, %s7276_s24  }
  0x31   :  { %s7284_s18 = sld [smem:[#allocation29_spill]] }
  0x37   :  { %s5781_s27 = scalar_lea.hbm %s7284_s18, 1024 }
  0x38   :  { %p5782_p2 = scmp.ne.s32.totalorder %s7284_s18, %s5781_s27  ;;  %p5785_p3 = scmp.lt.u32.totalorder %s5781_s27, %s7284_s18 }
  0x3a   :  { %p5787_p4 = pnand %p5785_p3, %p5782_p2 }
  0x3c   :  { %5790 = shalt.err (!%p5787_p4)
}
  0x3d   :  { %s5791_s22 = scalar_lea.vmem %s34_s19, 1024  ;;  %p5796_p6 = scmp.lt.s32.totalorder %s34_s19, %s34_s19 }
  0x3e   :  { %p5792_p5 = scmp.ne.s32.totalorder %s34_s19, %s5791_s22  ;;  %p5797_p7 = scmp.lt.s32.totalorder %s5791_s22, %s5791_s22 }
  0x40   :  { %p5798_p8 = por %p5797_p7, %p5796_p6 }
  0x42   :  { %p5799_p9 = pnand %p5798_p8, %p5792_p5 }
  0x44   :  { %5802 = shalt.err (!%p5799_p9)
}
  0x45   :  { %s5906_s3 = smov 128   ;;  %s5907_s29 = smov 8  }
  0x46   :  { %39 = dma.hbm_to_vmem [thread:$0]  %s7284_s18, 1024, %s34_s19, [#allocation13], %s5906_s3, %s5906_s3, %s5907_s29  }
  0x47   :  { %s5908_s0 = smov [#allocation17]   ;;  %s5909_s26 = smov [#allocation20]  }
  0x48   :  { %s57_s25 = sshll.u32 %s5908_s0, 4  ;;  %s83_s8 = sshll.u32 %s5909_s26, 4  ;;  %s58_s25 = int_to_ptr.vmem [resolvable:$true] %s57_s25  ;;  %s84_s8 = int_to_ptr.vmem [resolvable:$true] %s83_s8 }
  0x49   :  { %s7285_s1 = sld [smem:[#allocation31_spill]] }
  0x4f   :  { %s5803_s20 = scalar_lea.hbm %s7285_s1, 1024 }
  0x50   :  { %p5804_p10 = scmp.ne.s32.totalorder %s7285_s1, %s5803_s20  ;;  %p5807_p11 = scmp.lt.u32.totalorder %s5803_s20, %s7285_s1 }
  0x52   :  { %p5809_p12 = pnand %p5807_p11, %p5804_p10 }
  0x54   :  { %5812 = shalt.err (!%p5809_p12)
}
  0x55   :  { %s5813_s19 = scalar_lea.vmem %s58_s25, 1024  ;;  %p5818_p0 = scmp.lt.s32.totalorder %s58_s25, %s58_s25 }
  0x56   :  { %p5814_p13 = scmp.ne.s32.totalorder %s58_s25, %s5813_s19  ;;  %p5819_p1 = scmp.lt.s32.totalorder %s5813_s19, %s5813_s19 }
  0x58   :  { %p5820_p2 = por %p5819_p1, %p5818_p0 }
  0x5a   :  { %p5821_p3 = pnand %p5820_p2, %p5814_p13 }
  0x5c   :  { %5824 = shalt.err (!%p5821_p3)
}
  0x5d   :  { %s7286_s18 = smov 4   ;;  %s7287_s3 = smov 64  }
  0x5e   :  { %63 = dma.hbm_to_vmem [thread:$0]  %s7285_s1, 1024, %s58_s25, [#allocation16], %s7287_s3, %s7287_s3, %s7286_s18  }
  0x5f   :  { %s5825_s24 = scalar_lea.hbm %s7256_s5, 1024 }
  0x60   :  { %p5826_p4 = scmp.ne.s32.totalorder %s7256_s5, %s5825_s24  ;;  %p5829_p5 = scmp.lt.u32.totalorder %s5825_s24, %s7256_s5 }
  0x62   :  { %p5831_p6 = pnand %p5829_p5, %p5826_p4 }
  0x64   :  { %5834 = shalt.err (!%p5831_p6)
}
  0x65   :  { %s5835_s20 = scalar_lea.vmem %s84_s8, 1024  ;;  %p5840_p8 = scmp.lt.s32.totalorder %s84_s8, %s84_s8 }
  0x66   :  { %p5836_p7 = scmp.ne.s32.totalorder %s84_s8, %s5835_s20  ;;  %p5841_p9 = scmp.lt.s32.totalorder %s5835_s20, %s5835_s20 }
  0x68   :  { %p5842_p10 = por %p5841_p9, %p5840_p8 }
  0x6a   :  { %p5843_p11 = pnand %p5842_p10, %p5836_p7 }
  0x6c   :  { %5846 = shalt.err (!%p5843_p11)
}
  0x6d   :  { %89 = dma.hbm_to_vmem [thread:$0]  %s7256_s5, 1024, %s84_s8, [#allocation19], %s7287_s3, %s7287_s3, %s7286_s18  }
  0x6e   :  { %s5910_s21 = smov [#allocation21]   ;;  %s5847_s2 = scalar_lea.hbm %s7258_s7, 1024 }
  0x6f   :  { %s97_s22 = sshll.u32 %s5910_s21, 4  ;;  %p5848_p12 = scmp.ne.s32.totalorder %s7258_s7, %s5847_s2  ;;  %s98_s22 = int_to_ptr.vmem [resolvable:$true] %s97_s22 }
  0x70   :  { %p5851_p13 = scmp.lt.u32.totalorder %s5847_s2, %s7258_s7 }
  0x72   :  { %p5853_p0 = pnand %p5851_p13, %p5848_p12 }
  0x74   :  { %5856 = shalt.err (!%p5853_p0)
}
  0x75   :  { %s5857_s26 = scalar_lea.vmem %s98_s22, 1024  ;;  %p5862_p2 = scmp.lt.s32.totalorder %s98_s22, %s98_s22 }
  0x76   :  { %p5858_p1 = scmp.ne.s32.totalorder %s98_s22, %s5857_s26  ;;  %p5863_p3 = scmp.lt.s32.totalorder %s5857_s26, %s5857_s26 }
  0x78   :  { %p5864_p4 = por %p5863_p3, %p5862_p2 }
  0x7a   :  { %p5865_p5 = pnand %p5864_p4, %p5858_p1 }
  0x7c   :  { %5868 = shalt.err (!%p5865_p5)
}
  0x7d   :  { %103 = dma.hbm_to_vmem [thread:$0]  %s7258_s7, 1024, %s98_s22, [#allocation22], %s7287_s3, %s7287_s3, %s7286_s18  }
  0x7e   :  { %5891 = dma.done.wait [#allocation13], 1024  }
  0x7f   :  { %5892 = vsyncadd [#allocation13], 4294966272 }
  0x80   :  { %5893 = dma.done.wait [#allocation16], 2048  }
  0x81   :  { %5894 = vsyncadd [#allocation16], 4294965248 }
  0x82   :  { %5895 = dma.done.wait [#allocation19], 2048  }
  0x83   :  { %5896 = vsyncadd [#allocation19], 4294965248 }
  0x84   :  { %5897 = dma.done.wait [#allocation22], 1024  }
  0x85   :  { %5898 = vsyncadd [#allocation22], 4294966272  ;;  %v5911_v0 = vmov 0.0   ;;  %vm5912_vm0 = vmmov 0   ;;  %v5460_v1 = vld [vmem:[#allocation15] sm:$0xff]   ;;  %v5461_v2 = vld [vmem:[#allocation15 + $0x8] sm:$0xff]   ;;  %v289_v36 = vlaneseq }
  0x86   :  { %4786 = vmatprep.subr.bf16.mxu0 %v5911_v0  ;;  %4802 = vmatprep.mubr.msk.bf16.mxu0 %vm5912_vm0, %v5911_v0  ;;  %v5462_v3 = vld [vmem:[#allocation15 + $0x10] sm:$0xff]   ;;  %v5468_v6 = vld [vmem:[#allocation18] sm:$0xff]   ;;  %v5463_v7 = vld [vmem:[#allocation15 + $0x18] sm:$0xff]   ;;  %s7316_s1 = sld [smem:[#allocation32_spill]] }
  0x87   :  { %4806 = vmatprep.subr.bf16.mxu1 %v5911_v0  ;;  %4822 = vmatprep.mubr.msk.bf16.mxu1 %vm5912_vm0, %v5911_v0  ;;  %v149_v4 = vld [vmem:[%s7266_s15] sm:$0xff]  ;;  %v5470_v8 = vld [vmem:[#allocation18 + $0x8] sm:$0xff]   ;;  %v5464_v9 = vld [vmem:[#allocation15 + $0x20] sm:$0xff]   ;;  %v290_v37 = vshrl.u32 %v289_v36, 7 }
  0x88   :  { %4787 = vmatpush3.bf16.msra.mxu0 %v5460_v1  ;;  %v150_v5 = vpack.c.bf16 %v149_v4, %v149_v4  ;;  %4807 = vmatpush3.bf16.msra.mxu1 %v5468_v6  ;;  %v5472_v10 = vld [vmem:[#allocation18 + $0x10] sm:$0xff]   ;;  %v5465_v11 = vld [vmem:[#allocation15 + $0x28] sm:$0xff]   ;;  %v5474_v12 = vld [vmem:[#allocation18 + $0x18] sm:$0xff]   ;;  %v5913_v4 = vmov 1.0|1.0  }
  0x89   :  { %4788 = vmatprep.subr.bf16.mxu0 %v5911_v0  ;;  %4808 = vmatprep.subr.bf16.mxu1 %v5911_v0  ;;  %v5466_v13 = vld [vmem:[#allocation15 + $0x30] sm:$0xff]   ;;  %v5476_v14 = vld [vmem:[#allocation18 + $0x20] sm:$0xff]   ;;  %v5467_v15 = vld [vmem:[#allocation15 + $0x38] sm:$0xff]   ;;  %v6152_v39 = vsub.s32 0, %v290_v37 }
  0x8a   :  { %151 = vst [vmem:[#allocation4] sm:$0xf] %v150_v5  ;;  %v5478_v16 = vld [vmem:[#allocation18 + $0x28] sm:$0xff]   ;;  %v5469_v18 = vld [vmem:[#allocation17] sm:$0xff]   ;;  %v5473_v20 = vld [vmem:[#allocation17 + $0x10] sm:$0xff]  }
  0x8b   :  { %v5471_v19 = vld [vmem:[#allocation17 + $0x8] sm:$0xff]   ;;  %v5475_v21 = vld [vmem:[#allocation17 + $0x18] sm:$0xff]   ;;  %v5477_v22 = vld [vmem:[#allocation17 + $0x20] sm:$0xff]  }
  0x8c   :  { %4789 = vmatpush3.bf16.msra.mxu0 %v5461_v2  ;;  %4809 = vmatpush3.bf16.msra.mxu1 %v5470_v8  ;;  %v5479_v23 = vld [vmem:[#allocation17 + $0x28] sm:$0xff]   ;;  %v6131_v24 = vld [vmem:[%s7267_s16] sm:$0xff]  ;;  %v5492_v31 = vld [vmem:[#allocation20] sm:$0xff]  }
  0x8d   :  { %4790 = vmatprep.subr.bf16.mxu0 %v5911_v0  ;;  %4810 = vmatprep.subr.bf16.mxu1 %v5911_v0  ;;  %v156_v25 = vpack.c.bf16 %v6131_v24, %v6131_v24  ;;  %v5480_v26 = vld [vmem:[#allocation18 + $0x30] sm:$0xff]   ;;  %v5482_v28 = vld [vmem:[#allocation18 + $0x38] sm:$0xff]   ;;  %v5493_v32 = vld [vmem:[#allocation20 + $0x8] sm:$0xff]  }
  0x8e   :  { %v5481_v27 = vld [vmem:[#allocation17 + $0x30] sm:$0xff]   ;;  %v5483_v29 = vld [vmem:[#allocation17 + $0x38] sm:$0xff]   ;;  %v5496_v35 = vld [vmem:[#allocation20 + $0x20] sm:$0xff]  }
  0x8f   :  { %157 = vst [vmem:[#allocation7] sm:$0xf] %v156_v25  ;;  %v5494_v33 = vld [vmem:[#allocation20 + $0x10] sm:$0xff]   ;;  %v5495_v34 = vld [vmem:[#allocation20 + $0x18] sm:$0xff]   ;;  %v286_v51 = vld [vmem:[#allocation12] sm:$0xff] }
  0x90   :  { %4791 = vmatpush3.bf16.msra.mxu0 %v5462_v3  ;;  %4811 = vmatpush3.bf16.msra.mxu1 %v5472_v10  ;;  %v166_v38 = vld [vmem:[%s7261_s10] sm:$0x1]  ;;  %v5484_v63 = vld [vmem:[#allocation15] sm:$0xff]   ;;  %v5485_v6 = vld [vmem:[#allocation15 + $0x8] sm:$0xff]  }
  0x91   :  { %4792 = vmatprep.subr.bf16.mxu0 %v5911_v0  ;;  %4812 = vmatprep.subr.bf16.mxu1 %v5911_v0  ;;  %v174_v17 = vld [vmem:[#allocation4] sm:$0xf]  ;;  %v295_v40 = vsub.f32 1.0, %v166_v38  ;;  %v6155_v41 = vrot.slane %v166_v38, %v6152_v39  ;;  %v5500_v25 = vld [vmem:[#allocation17] sm:$0xff]  }
  0x92   :  { %v5728_v42 = vld [vmem:[#allocation4] sm:$0xf]  ;;  %v5539_v2 = vld [vmem:[#allocation17 + $0x20] sm:$0xff]  }
  0x93   :  { %v296_v43 = vunpack.c.l.bf16 %v5728_v42  ;;  %v6158_v44 = vrot.slane %v295_v40, %v6152_v39  ;;  %v294_v45 = vmul.f32 0.01, %v6155_v41  ;;  %v6165_v49 = vld [vmem:[%s7260_s9] ss:$0 sm:$0xff] }
  0x94   :  { %4793 = vmatpush3.bf16.msra.mxu0 %v5463_v7  ;;  %4813 = vmatpush3.bf16.msra.mxu1 %v5474_v12  ;;  %v5729_v52 = vld [vmem:[%s7266_s15] sm:$0xff]  ;;  %s5914_s15 = smov [#allocation23]  }
  0x95   :  { %4794 = vmatprep.subr.bf16.mxu0 %v5911_v0  ;;  %4814 = vmatprep.subr.bf16.mxu1 %v5911_v0  ;;  %v303_v46 = vmul.f32 %v6158_v44, %v296_v43  ;;  %v313_v53 = vmul.f32 %v5729_v52, %v6165_v49  ;;  %v5487_v12 = vld [vmem:[#allocation15 + $0x18] sm:$0xff]   ;;  %v168_v36 = vld [vmem:[%s7263_s12] sm:$0x1]  ;;  %s4122_s21 = sshll.u32 %s5914_s15, 4  ;;  %s4123_s21 = int_to_ptr.vmem [resolvable:$true] %s4122_s21 }
  0x96   :  { %v6138_v30 = vld [vmem:[#allocation7] sm:$0xf]  ;;  %v544_v37 = vsub.f32 1.0, %v168_v36  ;;  %v6240_v38 = vrot.slane %v168_v36, %v6152_v39  ;;  %v5518_v36 = vld [vmem:[#allocation15 + $0x10] sm:$0xff]   ;;  %s5869_s22 = scalar_lea.vmem %s4123_s21, 128  ;;  %p5874_p7 = scmp.lt.s32.totalorder %s4123_s21, %s4123_s21 }
  0x97   :  { %v304_v47 = vadd.f32 %v303_v46, %v294_v45  ;;  %v545_v40 = vunpack.c.l.bf16 %v6138_v30  ;;  %p5870_p6 = scmp.ne.s32.totalorder %s4123_s21, %s5869_s22  ;;  %p5875_p8 = scmp.lt.s32.totalorder %s5869_s22, %s5869_s22 }
  0x98   :  { %4795 = vmatpush3.bf16.msra.mxu0 %v5464_v9  ;;  %4815 = vmatpush3.bf16.msra.mxu1 %v5476_v14  ;;  %v5486_v9 = vld [vmem:[#allocation15 + $0x10] sm:$0xff]   ;;  %v5489_v14 = vld [vmem:[#allocation15 + $0x28] sm:$0xff]   ;;  %v6244_v42 = vrot.slane %v544_v37, %v6152_v39 }
  0x99   :  { %4796 = vmatprep.subr.bf16.mxu0 %v5911_v0  ;;  %4816 = vmatprep.subr.bf16.mxu1 %v5911_v0  ;;  %v305_v48 = vmul.f32 1.8, %v304_v47  ;;  %v823_v1 = vmul.f32 %v304_v47, %v6155_v41  ;;  %p5876_p9 = por %p5875_p8, %p5874_p7 }
  0x9a   :  { %v552_v45 = vmul.f32 %v6244_v42, %v545_v40 }
  0x9b   :  { %v306_v50 = vadd.f32 0.01, %v305_v48  ;;  %v6251_v48 = vld [vmem:[%s7262_s11] ss:$0 sm:$0xff]  ;;  %p5877_p10 = pnand %p5876_p9, %p5870_p6 }
  0x9c   :  { %4797 = vmatpush3.bf16.msra.mxu0 %v5465_v11  ;;  %4817 = vmatpush3.bf16.msra.mxu1 %v5478_v16  ;;  %v5491_v16 = vld [vmem:[#allocation15 + $0x38] sm:$0xff]  }
  0x9d   :  { %4798 = vmatprep.subr.bf16.mxu0 %v5911_v0  ;;  %4818 = vmatprep.subr.bf16.mxu1 %v5911_v0  ;;  %v315_v55 = vmul.f32 %v306_v50, %v296_v43  ;;  %v543_v43 = vmul.f32 0.01, %v6240_v38 }
  0x9f   :  { %v553_v46 = vadd.f32 %v552_v45, %v543_v43  ;;  %v5519_v43 = vld [vmem:[#allocation15 + $0x18] sm:$0xff]   ;;  %v5520_v45 = vld [vmem:[#allocation15 + $0x20] sm:$0xff]  }
  0xa0   :  { %4799 = vmatpush3.bf16.msra.mxu0 %v5466_v13  ;;  %4819 = vmatpush3.bf16.msra.mxu1 %v5480_v26  ;;  %v5488_v13 = vld [vmem:[#allocation15 + $0x20] sm:$0xff]   ;;  %v5502_v26 = vld [vmem:[#allocation17 + $0x8] sm:$0xff]  }
  0xa1   :  { %4800 = vmatprep.subr.bf16.mxu0 %v5911_v0  ;;  %4820 = vmatprep.subr.bf16.mxu1 %v5911_v0  ;;  %v554_v47 = vmul.f32 1.8, %v553_v46 }
  0xa4   :  { %4801 = vmatpush3.bf16.msra.mxu0 %v5467_v15  ;;  %4821 = vmatpush3.bf16.msra.mxu1 %v5482_v28  ;;  %v5490_v15 = vld [vmem:[#allocation15 + $0x30] sm:$0xff]   ;;  %v5506_v28 = vld [vmem:[#allocation17 + $0x18] sm:$0xff]  }
  0xa5   :  { %4826 = vmatprep.subr.bf16.mxu0 %v5911_v0  ;;  %4846 = vmatprep.subr.bf16.mxu1 %v5911_v0 }
  0xa7   :  { %4803 = vmatmul.mubr.bf16.vlgmr.msra.gmra.mrb[0].mxu0 %v174_v17  ;;  %4823 = vmatmul.mubr.bf16.vlgmr.msra.gmra.mrb[0].mxu1 %v6138_v30 }
  0xa8   :  { %4827 = vmatpush3.bf16.msra.mxu0 %v5469_v18  ;;  %4842 = vmatprep.mubr.msk.bf16.mxu0 %vm5912_vm0, %v5911_v0 }
  0xa9   :  { %4828 = vmatprep.subr.bf16.mxu0 %v5911_v0  ;;  %4862 = vmatprep.mubr.msk.bf16.mxu1 %vm5912_vm0, %v5911_v0 }
  0xaa   :  { %4847 = vmatpush3.bf16.msra.mxu1 %v5492_v31  ;;  %v5510_v31 = vld [vmem:[#allocation17 + $0x28] sm:$0xff]  }
  0xab   :  { %4848 = vmatprep.subr.bf16.mxu1 %v5911_v0 }
  0xac   :  { %4829 = vmatpush3.bf16.msra.mxu0 %v5471_v19 }
  0xad   :  { %4830 = vmatprep.subr.bf16.mxu0 %v5911_v0 }
  0xae   :  { %4849 = vmatpush3.bf16.msra.mxu1 %v5493_v32  ;;  %v5512_v32 = vld [vmem:[#allocation17 + $0x30] sm:$0xff]  }
  0xaf   :  { %4850 = vmatprep.subr.bf16.mxu1 %v5911_v0 }
  0xb0   :  { %4831 = vmatpush3.bf16.msra.mxu0 %v5473_v20 }
  0xb1   :  { %4832 = vmatprep.subr.bf16.mxu0 %v5911_v0 }
  0xb2   :  { %4851 = vmatpush3.bf16.msra.mxu1 %v5494_v33  ;;  %v5514_v33 = vld [vmem:[#allocation17 + $0x38] sm:$0xff]  }
  0xb3   :  { %4852 = vmatprep.subr.bf16.mxu1 %v5911_v0 }
  0xb4   :  { %4833 = vmatpush3.bf16.msra.mxu0 %v5475_v21  ;;  %v5497_v21 = vld [vmem:[#allocation20 + $0x28] sm:$0xff]  }
  0xb5   :  { %4834 = vmatprep.subr.bf16.mxu0 %v5911_v0 }
  0xb6   :  { %4853 = vmatpush3.bf16.msra.mxu1 %v5495_v34  ;;  %v6232_v34 = vld [vmem:[%s7268_s17] sm:$0xff] }
  0xb7   :  { %4854 = vmatprep.subr.bf16.mxu1 %v5911_v0 }
  0xb8   :  { %4835 = vmatpush3.bf16.msra.mxu0 %v5477_v22  ;;  %v5498_v22 = vld [vmem:[#allocation20 + $0x30] sm:$0xff]  }
  0xb9   :  { %4836 = vmatprep.subr.bf16.mxu0 %v5911_v0 }
  0xba   :  { %4855 = vmatpush3.bf16.msra.mxu1 %v5496_v35  ;;  %v162_v35 = vpack.c.bf16 %v6232_v34, %v6232_v34 }
  0xbb   :  { %4856 = vmatprep.subr.bf16.mxu1 %v5911_v0 }
  0xbc   :  { %4837 = vmatpush3.bf16.msra.mxu0 %v5479_v23  ;;  %v5499_v23 = vld [vmem:[#allocation20 + $0x38] sm:$0xff]   ;;  %163 = vst [vmem:[#allocation10] sm:$0xf] %v162_v35 }
  0xbd   :  { %4838 = vmatprep.subr.bf16.mxu0 %v5911_v0 }
  0xbe   :  { %4857 = vmatpush3.bf16.msra.mxu1 %v5497_v21 }
  0xbf   :  { %4858 = vmatprep.subr.bf16.mxu1 %v5911_v0 }
  0xc0   :  { %4839 = vmatpush3.bf16.msra.mxu0 %v5481_v27  ;;  %v5504_v27 = vld [vmem:[#allocation17 + $0x10] sm:$0xff]  }
  0xc1   :  { %4840 = vmatprep.subr.bf16.mxu0 %v5911_v0 }
  0xc2   :  { %4859 = vmatpush3.bf16.msra.mxu1 %v5498_v22 }
  0xc3   :  { %4860 = vmatprep.subr.bf16.mxu1 %v5911_v0 }
  0xc4   :  { %4841 = vmatpush3.bf16.msra.mxu0 %v5483_v29  ;;  %v5508_v29 = vld [vmem:[#allocation17 + $0x20] sm:$0xff]  }
  0xc5   :  { %4866 = vmatprep.subr.bf16.mxu0 %v5911_v0 }
  0xc6   :  { %4861 = vmatpush3.bf16.msra.mxu1 %v5499_v23  ;;  %v5513_v23 = vld [vmem:[#allocation18 + $0x30] sm:$0xff]  }
  0xc7   :  { %4886 = vmatprep.subr.bf16.mxu1 %v5911_v0 }
 0x17a   :  { %v280_v54 = vpop.f32.mrb[0].mxu0  ;;  %v436_v17 = vpop.f32.mrb[0].mxu1 }
 0x17b   :  { %v287_v56 = vadd.f32 %v286_v51, %v280_v54  ;;  %v4804_v57 = vpop.f32.mrb[1].mxu0  ;;  %v4824_v18 = vpop.f32.mrb[1].mxu1  ;;  %v6256_v51 = vld [vmem:[%s7255_s4] ss:$0 sm:$0xff] }
 0x17c   :  { %v283_v58 = vpop.f32.mrb[2].mxu0  ;;  %v439_v19 = vpop.f32.mrb[2].mxu1 }
 0x17d   :  { %v314_v59 = vadd.f32 %v313_v53, %v287_v56  ;;  %v4805_v60 = vpop.f32.mrb[3].mxu0  ;;  %v4825_v20 = vpop.f32.mrb[3].mxu1  ;;  %v562_v53 = vmul.f32 %v6251_v48, %v6131_v24 }
 0x17f   :  { %v6171_v61 = vsub.f32 %v314_v59, %v315_v55 }
 0x181   :  { %v317_v62 = vsub.f32 %v6171_v61, %v306_v50  ;;  %v555_v50 = vadd.f32 0.01, %v554_v47  ;;  %v829_v20 = vmul.f32 %v6165_v49, %v6171_v61  ;;  %v5522_v47 = vld [vmem:[#allocation15 + $0x30] sm:$0xff]  }
 0x183   :  { %vm6175_vm1 = vcmp.gt.f32.partialorder %v317_v62, 0.0  ;;  %v564_v56 = vmul.f32 %v555_v50, %v545_v40 }
 0x184   :  { %vm4160_vm2 = vmpackc.low %vm6175_vm1, %vm6175_vm1  ;;  %v4143_v3 = vsel %vm6175_vm1, 1.0, %v5911_v0 }
 0x185   :  { %4843 = vmatmul.mubr.msk.bf16.vlgmr.msra.gmra.mrb[4].mxu0 %vm4160_vm2, %v5913_v4  ;;  %v825_v5 = vmul.f32 %v4143_v3, %v6158_v44 }
 0x186   :  { %4867 = vmatpush3.bf16.msra.mxu0 %v5484_v63  ;;  %4882 = vmatprep.mubr.msk.bf16.mxu0 %vm5912_vm0, %v5911_v0  ;;  %v5501_v63 = vld [vmem:[#allocation18] sm:$0xff]  }
 0x187   :  { %4868 = vmatprep.subr.bf16.mxu0 %v5911_v0  ;;  %v6195_v7 = vadd.f32 %v825_v5, %v823_v1  ;;  %v1047_v1 = vmul.f32 %v553_v46, %v6240_v38  ;;  %v5503_v5 = vld [vmem:[#allocation18 + $0x8] sm:$0xff]  }
 0x188   :  { %v5521_v46 = vld [vmem:[#allocation15 + $0x28] sm:$0xff]  }
 0x189   :  { %v827_v8 = vmul.f32 1.8, %v6195_v7 }
 0x18a   :  { %4869 = vmatpush3.bf16.msra.mxu0 %v5485_v6 }
 0x18b   :  { %4870 = vmatprep.subr.bf16.mxu0 %v5911_v0  ;;  %v6199_v10 = vadd.f32 0.01, %v827_v8 }
 0x18d   :  { %v6202_v11 = vmul.f32 %v4143_v3, %v6199_v10 }
 0x18e   :  { %4871 = vmatpush3.bf16.msra.mxu0 %v5486_v9  ;;  %v5505_v9 = vld [vmem:[#allocation18 + $0x10] sm:$0xff]  }
 0x18f   :  { %4872 = vmatprep.subr.bf16.mxu0 %v5911_v0 }
 0x192   :  { %4873 = vmatpush3.bf16.msra.mxu0 %v5487_v12 }
 0x193   :  { %4874 = vmatprep.subr.bf16.mxu0 %v5911_v0 }
 0x196   :  { %4875 = vmatpush3.bf16.msra.mxu0 %v5488_v13 }
 0x197   :  { %4876 = vmatprep.subr.bf16.mxu0 %v5911_v0 }
 0x19a   :  { %4877 = vmatpush3.bf16.msra.mxu0 %v5489_v14  ;;  %v5507_v14 = vld [vmem:[#allocation18 + $0x18] sm:$0xff]  }
 0x19b   :  { %4878 = vmatprep.subr.bf16.mxu0 %v5911_v0 }
 0x19e   :  { %4879 = vmatpush3.bf16.msra.mxu0 %v5490_v15  ;;  %v5509_v15 = vld [vmem:[#allocation18 + $0x20] sm:$0xff]  }
 0x19f   :  { %4880 = vmatprep.subr.bf16.mxu0 %v5911_v0 }
 0x1a2   :  { %4881 = vmatpush3.bf16.msra.mxu0 %v5491_v16  ;;  %v821_v16 = vld [vmem:[#allocation12 + $0x8] sm:$0xff] }
 0x1a3   :  { %4906 = vmatprep.subr.bf16.mxu0 %v5911_v0 }
 0x1a5   :  { %4883 = vmatmul.mubr.msk.bf16.vlgmr.msra.gmra.mrb[8].mxu0 %vm4160_vm2, %v5913_v4 }
 0x1a6   :  { %4922 = vmatprep.mubr.msk.bf16.mxu0 %vm5912_vm0, %v5911_v0  ;;  %4907 = vmatpush3.bf16.msra.mxu0 %v5500_v25 }
 0x1a7   :  { %4908 = vmatprep.subr.bf16.mxu0 %v5911_v0 }
 0x1aa   :  { %4909 = vmatpush3.bf16.msra.mxu0 %v5502_v26 }
 0x1ab   :  { %4910 = vmatprep.subr.bf16.mxu0 %v5911_v0 }
 0x1ae   :  { %4911 = vmatpush3.bf16.msra.mxu0 %v5504_v27 }
 0x1af   :  { %4912 = vmatprep.subr.bf16.mxu0 %v5911_v0 }
 0x1b2   :  { %4913 = vmatpush3.bf16.msra.mxu0 %v5506_v28  ;;  %v5515_v28 = vld [vmem:[#allocation18 + $0x38] sm:$0xff]  }
 0x1b3   :  { %4914 = vmatprep.subr.bf16.mxu0 %v5911_v0 }
 0x1b6   :  { %4915 = vmatpush3.bf16.msra.mxu0 %v5508_v29 }
 0x1b7   :  { %4916 = vmatprep.subr.bf16.mxu0 %v5911_v0 }
 0x1ba   :  { %4917 = vmatpush3.bf16.msra.mxu0 %v5510_v31  ;;  %v5516_v31 = vld [vmem:[#allocation15] sm:$0xff]  }
 0x1bb   :  { %4918 = vmatprep.subr.bf16.mxu0 %v5911_v0 }
 0x1be   :  { %4919 = vmatpush3.bf16.msra.mxu0 %v5512_v32 }
 0x1bf   :  { %4920 = vmatprep.subr.bf16.mxu0 %v5911_v0 }
 0x1c2   :  { %4921 = vmatpush3.bf16.msra.mxu0 %v5514_v33  ;;  %v5517_v33 = vld [vmem:[#allocation15 + $0x8] sm:$0xff]  }
 0x1c3   :  { %4946 = vmatprep.subr.bf16.mxu0 %v5911_v0 }
 0x258   :  { %v524_v30 = vpop.f32.mrb[4].mxu0 }
 0x259   :  { %v525_v52 = vadd.f32 %v524_v30, %v436_v17  ;;  %v4844_v54 = vpop.f32.mrb[5].mxu0  ;;  %v5511_v17 = vld [vmem:[#allocation18 + $0x28] sm:$0xff]   ;;  %v5524_v30 = vld [vmem:[#allocation20] sm:$0xff]  }
 0x25a   :  { %v527_v55 = vpop.f32.mrb[6].mxu0  ;;  %v5527_v54 = vld [vmem:[#allocation20 + $0x18] sm:$0xff]  }
 0x25b   :  { %v536_v57 = vadd.f32 %v6256_v51, %v525_v52  ;;  %v4845_v58 = vpop.f32.mrb[7].mxu0  ;;  %v5525_v52 = vld [vmem:[#allocation20 + $0x8] sm:$0xff]   ;;  %v5528_v55 = vld [vmem:[#allocation20 + $0x20] sm:$0xff]  }
 0x25c   :  { %v5531_v58 = vld [vmem:[#allocation17] sm:$0xff]  }
 0x25d   :  { %v563_v59 = vadd.f32 %v562_v53, %v536_v57  ;;  %v5526_v53 = vld [vmem:[#allocation20 + $0x10] sm:$0xff]  }
 0x25e   :  { %v5530_v57 = vld [vmem:[#allocation20 + $0x30] sm:$0xff]  }
 0x25f   :  { %v6261_v60 = vsub.f32 %v563_v59, %v564_v56  ;;  %v5529_v56 = vld [vmem:[#allocation20 + $0x28] sm:$0xff]   ;;  %v5532_v59 = vld [vmem:[#allocation20 + $0x38] sm:$0xff]  }
 0x261   :  { %v566_v62 = vsub.f32 %v6261_v60, %v555_v50  ;;  %v5523_v50 = vld [vmem:[#allocation15 + $0x38] sm:$0xff]  }
 0x263   :  { %vm6265_vm3 = vcmp.gt.f32.partialorder %v566_v62, 0.0  ;;  %v5533_v62 = vld [vmem:[#allocation17 + $0x8] sm:$0xff]  }
 0x264   :  { %v4164_v24 = vsel %vm6265_vm3, 1.0, %v5911_v0  ;;  %vm4174_vm4 = vmpackc.low %vm6265_vm3, %vm6265_vm3 }
 0x265   :  { %4863 = vmatmul.mubr.msk.bf16.vlgmr.msra.gmra.mrb[4].mxu1 %vm4174_vm4, %v5913_v4  ;;  %v1049_v3 = vmul.f32 %v4164_v24, %v6244_v42 }
 0x266   :  { %4887 = vmatpush3.bf16.msra.mxu1 %v5501_v63  ;;  %4902 = vmatprep.mubr.msk.bf16.mxu1 %vm5912_vm0, %v5911_v0  ;;  %v5535_v63 = vld [vmem:[#allocation17 + $0x10] sm:$0xff]  }
 0x267   :  { %v6284_v6 = vadd.f32 %v1049_v3, %v1047_v1  ;;  %4888 = vmatprep.subr.bf16.mxu1 %v5911_v0  ;;  %v5537_v1 = vld [vmem:[#allocation17 + $0x18] sm:$0xff]   ;;  %v5543_v3 = vld [vmem:[#allocation17 + $0x30] sm:$0xff]  }
 0x269   :  { %v1051_v8 = vmul.f32 1.8, %v6284_v6 }
 0x26a   :  { %4889 = vmatpush3.bf16.msra.mxu1 %v5503_v5  ;;  %v5545_v5 = vld [vmem:[#allocation17 + $0x38] sm:$0xff]  }
 0x26b   :  { %4890 = vmatprep.subr.bf16.mxu1 %v5911_v0  ;;  %v6289_v12 = vadd.f32 0.01, %v1051_v8  ;;  %v170_v8 = vld [vmem:[%s7265_s14] sm:$0x1] }
 0x26d   :  { %v6292_v13 = vmul.f32 %v4164_v24, %v6289_v12  ;;  %v5541_v24 = vld [vmem:[#allocation17 + $0x28] sm:$0xff]  }
 0x26e   :  { %4891 = vmatpush3.bf16.msra.mxu1 %v5505_v9  ;;  %v688_v9 = vsub.f32 1.0, %v170_v8 }
 0x26f   :  { %4892 = vmatprep.subr.bf16.mxu1 %v5911_v0 }
 0x272   :  { %4893 = vmatpush3.bf16.msra.mxu1 %v5507_v14  ;;  %v180_v14 = vld [vmem:[#allocation10] sm:$0xf] }
 0x273   :  { %4894 = vmatprep.subr.bf16.mxu1 %v5911_v0 }
 0x276   :  { %4895 = vmatpush3.bf16.msra.mxu1 %v5509_v15  ;;  %v6380_v15 = vrot.slane %v170_v8, %v6152_v39 }
 0x277   :  { %4896 = vmatprep.subr.bf16.mxu1 %v5911_v0 }
 0x278   :  { %v814_v18 = vpop.f32.mrb[8].mxu0 }
 0x279   :  { %v822_v19 = vadd.f32 %v821_v16, %v814_v18  ;;  %v4884_v21 = vpop.f32.mrb[9].mxu0  ;;  %v689_v16 = vunpack.c.l.bf16 %v180_v14  ;;  %v687_v18 = vmul.f32 0.01, %v6380_v15  ;;  %v5538_v14 = vld [vmem:[#allocation18 + $0x10] sm:$0xff]  }
 0x27a   :  { %v817_v22 = vpop.f32.mrb[10].mxu0  ;;  %4897 = vmatpush3.bf16.msra.mxu1 %v5511_v17  ;;  %v6383_v17 = vrot.slane %v688_v9, %v6152_v39 }
 0x27b   :  { %v830_v25 = vadd.f32 %v829_v20, %v822_v19  ;;  %v4885_v26 = vpop.f32.mrb[11].mxu0  ;;  %4898 = vmatprep.subr.bf16.mxu1 %v5911_v0  ;;  %v6390_v22 = vld [vmem:[%s7264_s13] ss:$0 sm:$0xff] }
 0x27c   :  { %v696_v19 = vmul.f32 %v6383_v17, %v689_v16  ;;  %v706_v39 = vmul.f32 %v6390_v22, %v6232_v34 }
 0x27d   :  { %v6301_v27 = vsub.f32 %v830_v25, %v6202_v11  ;;  %v6395_v25 = vld [vmem:[%s7257_s6] ss:$0 sm:$0xff] }
 0x27e   :  { %4899 = vmatpush3.bf16.msra.mxu1 %v5513_v23  ;;  %v697_v20 = vadd.f32 %v696_v19, %v687_v18  ;;  %v5540_v18 = vld [vmem:[#allocation18 + $0x18] sm:$0xff]   ;;  %v5542_v19 = vld [vmem:[#allocation18 + $0x20] sm:$0xff]  }
 0x27f   :  { %v833_v29 = vsub.f32 %v6301_v27, %v6199_v10  ;;  %4900 = vmatprep.subr.bf16.mxu1 %v5911_v0  ;;  %v1290_v10 = vmul.f32 %v6195_v7, %v6155_v41 }
 0x280   :  { %v698_v21 = vmul.f32 1.8, %v697_v20 }
 0x281   :  { %vm6306_vm5 = vcmp.gt.f32.partialorder %v833_v29, 0.0 }
 0x282   :  { %4901 = vmatpush3.bf16.msra.mxu1 %v5515_v28  ;;  %vm4207_vm6 = vmpackc.low %vm6306_vm5, %vm6306_vm5  ;;  %v4188_v11 = vsel %vm6306_vm5, 1.0, %v5911_v0  ;;  %v699_v23 = vadd.f32 0.01, %v698_v21 }
 0x283   :  { %4923 = vmatmul.mubr.msk.bf16.vlgmr.msra.gmra.mrb[12].mxu0 %vm4207_vm6, %v5913_v4  ;;  %4926 = vmatprep.subr.bf16.mxu1 %v5911_v0  ;;  %v1292_v32 = vmul.f32 %v4188_v11, %v6158_v44 }
 0x284   :  { %4947 = vmatpush3.bf16.msra.mxu0 %v5516_v31  ;;  %4962 = vmatprep.mubr.msk.bf16.mxu0 %vm5912_vm0, %v5911_v0  ;;  %v708_v29 = vmul.f32 %v699_v23, %v689_v16 }
 0x285   :  { %4903 = vmatmul.mubr.msk.bf16.vlgmr.msra.gmra.mrb[8].mxu1 %vm4174_vm4, %v5913_v4  ;;  %4948 = vmatprep.subr.bf16.mxu0 %v5911_v0  ;;  %v6335_v35 = vadd.f32 %v1292_v32, %v1290_v10 }
 0x286   :  { %4942 = vmatprep.mubr.msk.bf16.mxu1 %vm5912_vm0, %v5911_v0  ;;  %4927 = vmatpush3.bf16.msra.mxu1 %v5524_v30 }
 0x287   :  { %v1294_v7 = vmul.f32 1.8, %v6335_v35  ;;  %4928 = vmatprep.subr.bf16.mxu1 %v5911_v0 }
 0x288   :  { %4949 = vmatpush3.bf16.msra.mxu0 %v5517_v33 }
 0x289   :  { %4950 = vmatprep.subr.bf16.mxu0 %v5911_v0  ;;  %v6341_v37 = vadd.f32 0.01, %v1294_v7  ;;  %v1166_v7 = vmul.f32 %v697_v20, %v6380_v15  ;;  %v1288_v20 = vld [vmem:[#allocation12 + $0x10] sm:$0xff] }
 0x28a   :  { %4929 = vmatpush3.bf16.msra.mxu1 %v5525_v52 }
 0x28b   :  { %v6344_v40 = vmul.f32 %v4188_v11, %v6341_v37  ;;  %4930 = vmatprep.subr.bf16.mxu1 %v5911_v0 }
 0x28c   :  { %4951 = vmatpush3.bf16.msra.mxu0 %v5518_v36 }
 0x28d   :  { %4952 = vmatprep.subr.bf16.mxu0 %v5911_v0 }
 0x28e   :  { %4931 = vmatpush3.bf16.msra.mxu1 %v5526_v53 }
 0x28f   :  { %4932 = vmatprep.subr.bf16.mxu1 %v5911_v0 }
 0x290   :  { %4953 = vmatpush3.bf16.msra.mxu0 %v5519_v43 }
 0x291   :  { %4954 = vmatprep.subr.bf16.mxu0 %v5911_v0 }
 0x292   :  { %4933 = vmatpush3.bf16.msra.mxu1 %v5527_v54 }
 0x293   :  { %4934 = vmatprep.subr.bf16.mxu1 %v5911_v0 }
 0x294   :  { %4955 = vmatpush3.bf16.msra.mxu0 %v5520_v45 }
 0x295   :  { %4956 = vmatprep.subr.bf16.mxu0 %v5911_v0 }
 0x296   :  { %4935 = vmatpush3.bf16.msra.mxu1 %v5528_v55 }
 0x297   :  { %4936 = vmatprep.subr.bf16.mxu1 %v5911_v0 }
 0x298   :  { %4957 = vmatpush3.bf16.msra.mxu0 %v5521_v46 }
 0x299   :  { %4958 = vmatprep.subr.bf16.mxu0 %v5911_v0 }
 0x29a   :  { %4937 = vmatpush3.bf16.msra.mxu1 %v5529_v56 }
 0x29b   :  { %4938 = vmatprep.subr.bf16.mxu1 %v5911_v0 }
 0x29c   :  { %4959 = vmatpush3.bf16.msra.mxu0 %v5522_v47 }
 0x29d   :  { %4960 = vmatprep.subr.bf16.mxu0 %v5911_v0 }
 0x29e   :  { %4939 = vmatpush3.bf16.msra.mxu1 %v5530_v57 }
 0x29f   :  { %4940 = vmatprep.subr.bf16.mxu1 %v5911_v0 }
 0x2a0   :  { %4961 = vmatpush3.bf16.msra.mxu0 %v5523_v50 }
 0x2a1   :  { %4986 = vmatprep.subr.bf16.mxu0 %v5911_v0 }
 0x2a2   :  { %4941 = vmatpush3.bf16.msra.mxu1 %v5532_v59  ;;  %v1053_v59 = vmul.f32 %v6251_v48, %v6261_v60  ;;  %v1514_v60 = vmul.f32 %v6284_v6, %v6240_v38 }
 0x2a3   :  { %4963 = vmatmul.mubr.msk.bf16.vlgmr.msra.gmra.mrb[16].mxu0 %vm4207_vm6, %v5913_v4  ;;  %4966 = vmatprep.subr.bf16.mxu1 %v5911_v0 }
 0x2a4   :  { %5002 = vmatprep.mubr.msk.bf16.mxu0 %vm5912_vm0, %v5911_v0  ;;  %4987 = vmatpush3.bf16.msra.mxu0 %v5531_v58 }
 0x2a5   :  { %4988 = vmatprep.subr.bf16.mxu0 %v5911_v0 }
 0x2a8   :  { %4989 = vmatpush3.bf16.msra.mxu0 %v5533_v62 }
 0x2a9   :  { %4990 = vmatprep.subr.bf16.mxu0 %v5911_v0 }
 0x2ac   :  { %4991 = vmatpush3.bf16.msra.mxu0 %v5535_v63 }
 0x2ad   :  { %4992 = vmatprep.subr.bf16.mxu0 %v5911_v0 }
 0x2b0   :  { %4993 = vmatpush3.bf16.msra.mxu0 %v5537_v1 }
 0x2b1   :  { %4994 = vmatprep.subr.bf16.mxu0 %v5911_v0 }
 0x2b4   :  { %4995 = vmatpush3.bf16.msra.mxu0 %v5539_v2 }
 0x2b5   :  { %4996 = vmatprep.subr.bf16.mxu0 %v5911_v0 }
 0x2b8   :  { %4997 = vmatpush3.bf16.msra.mxu0 %v5541_v24  ;;  %v5534_v24 = vld [vmem:[#allocation18] sm:$0xff]  }
 0x2b9   :  { %4998 = vmatprep.subr.bf16.mxu0 %v5911_v0 }
 0x2bc   :  { %4999 = vmatpush3.bf16.msra.mxu0 %v5543_v3  ;;  %v5561_v3 = vld [vmem:[#allocation20 + $0x28] sm:$0xff]  }
 0x2bd   :  { %5000 = vmatprep.subr.bf16.mxu0 %v5911_v0 }
 0x2c0   :  { %5001 = vmatpush3.bf16.msra.mxu0 %v5545_v5 }
 0x2c1   :  { %5026 = vmatprep.subr.bf16.mxu0 %v5911_v0 }
 0x338   :  { %v675_v26 = vpop.f32.mrb[4].mxu1 }
 0x339   :  { %v676_v28 = vadd.f32 %v6395_v25, %v675_v26  ;;  %v4864_v31 = vpop.f32.mrb[5].mxu1  ;;  %v1296_v26 = vmul.f32 %v6165_v49, %v6301_v27 }
 0x33a   :  { %v678_v61 = vpop.f32.mrb[6].mxu1 }
 0x33b   :  { %v707_v11 = vadd.f32 %v706_v39, %v676_v28  ;;  %v4865_v10 = vpop.f32.mrb[7].mxu1 }
 0x33d   :  { %v6400_v32 = vsub.f32 %v707_v11, %v708_v29  ;;  %v5546_v11 = vld [vmem:[#allocation18 + $0x30] sm:$0xff]  }
 0x33f   :  { %v710_v33 = vsub.f32 %v6400_v32, %v699_v23  ;;  %v5544_v23 = vld [vmem:[#allocation18 + $0x28] sm:$0xff]  }
 0x341   :  { %vm711_vm7 = vcmp.gt.f32.partialorder %v710_v33, 0.0 }
 0x342   :  { %v4177_v36 = vsel %vm711_vm7, 1.0, %v5911_v0 }
 0x343   :  { %v1168_v43 = vmul.f32 %v4177_v36, %v6383_v17 }
 0x345   :  { %v6406_v34 = vadd.f32 %v1168_v43, %v1166_v7  ;;  %v5547_v7 = vld [vmem:[#allocation15] sm:$0xff]  }
 0x347   :  { %v1170_v45 = vmul.f32 1.8, %v6406_v34  ;;  %v1633_v27 = vmul.f32 %v6406_v34, %v6380_v15 }
 0x349   :  { %v6409_v46 = vadd.f32 0.01, %v1170_v45  ;;  %v5549_v45 = vld [vmem:[#allocation15 + $0x8] sm:$0xff]  }
 0x34b   :  { %v6412_v47 = vmul.f32 %v4177_v36, %v6409_v46  ;;  %v5548_v36 = vld [vmem:[#allocation18 + $0x38] sm:$0xff]  }
 0x356   :  { %v1040_v50 = vpop.f32.mrb[12].mxu0 }
 0x357   :  { %v4924_v30 = vpop.f32.mrb[13].mxu0 }
 0x358   :  { %v952_v52 = vpop.f32.mrb[8].mxu1  ;;  %v1043_v53 = vpop.f32.mrb[14].mxu0  ;;  %v5550_v30 = vld [vmem:[#allocation15 + $0x10] sm:$0xff]  }
 0x359   :  { %v1041_v54 = vadd.f32 %v1040_v50, %v952_v52  ;;  %v4904_v55 = vpop.f32.mrb[9].mxu1  ;;  %v4925_v56 = vpop.f32.mrb[15].mxu0 }
 0x35a   :  { %v955_v57 = vpop.f32.mrb[10].mxu1  ;;  %v5552_v55 = vld [vmem:[#allocation15 + $0x20] sm:$0xff]   ;;  %v5553_v56 = vld [vmem:[#allocation15 + $0x28] sm:$0xff]  }
 0x35b   :  { %v1046_v58 = vadd.f32 %v6256_v51, %v1041_v54  ;;  %v4905_v62 = vpop.f32.mrb[11].mxu1  ;;  %v5551_v54 = vld [vmem:[#allocation15 + $0x18] sm:$0xff]   ;;  %v5554_v57 = vld [vmem:[#allocation15 + $0x30] sm:$0xff]  }
 0x35c   :  { %v5557_v62 = vld [vmem:[#allocation20 + $0x8] sm:$0xff]  }
 0x35d   :  { %v1054_v63 = vadd.f32 %v1053_v59, %v1046_v58  ;;  %v5555_v58 = vld [vmem:[#allocation15 + $0x38] sm:$0xff]   ;;  %v5556_v59 = vld [vmem:[#allocation20] sm:$0xff]  }
 0x35f   :  { %v6418_v1 = vsub.f32 %v1054_v63, %v6292_v13  ;;  %v5536_v13 = vld [vmem:[#allocation18 + $0x8] sm:$0xff]   ;;  %v5558_v63 = vld [vmem:[#allocation20 + $0x10] sm:$0xff]  }
 0x361   :  { %v1057_v2 = vsub.f32 %v6418_v1, %v6289_v12  ;;  %v1520_v34 = vmul.f32 %v6251_v48, %v6418_v1 }
 0x363   :  { %vm6422_vm8 = vcmp.gt.f32.partialorder %v1057_v2, 0.0  ;;  %v5559_v2 = vld [vmem:[#allocation20 + $0x18] sm:$0xff]  }
 0x364   :  { %v4209_v5 = vsel %vm6422_vm8, 1.0, %v5911_v0  ;;  %vm4218_vm9 = vmpackc.low %vm6422_vm8, %vm6422_vm8 }
 0x365   :  { %4943 = vmatmul.mubr.msk.bf16.vlgmr.msra.gmra.mrb[12].mxu1 %vm4218_vm9, %v5913_v4  ;;  %v1516_v12 = vmul.f32 %v4209_v5, %v6244_v42 }
 0x366   :  { %4967 = vmatpush3.bf16.msra.mxu1 %v5534_v24  ;;  %4982 = vmatprep.mubr.msk.bf16.mxu1 %vm5912_vm0, %v5911_v0  ;;  %v5560_v24 = vld [vmem:[#allocation20 + $0x20] sm:$0xff]  }
 0x367   :  { %v6443_v8 = vadd.f32 %v1516_v12, %v1514_v60  ;;  %4968 = vmatprep.subr.bf16.mxu1 %v5911_v0  ;;  %v5563_v60 = vld [vmem:[#allocation17] sm:$0xff]   ;;  %v5564_v12 = vld [vmem:[#allocation20 + $0x38] sm:$0xff]  }
 0x369   :  { %v1518_v9 = vmul.f32 1.8, %v6443_v8  ;;  %v1981_v48 = vmul.f32 %v6443_v8, %v6240_v38 }
 0x36a   :  { %4969 = vmatpush3.bf16.msra.mxu1 %v5536_v13  ;;  %v5565_v13 = vld [vmem:[#allocation17 + $0x8] sm:$0xff]  }
 0x36b   :  { %4970 = vmatprep.subr.bf16.mxu1 %v5911_v0  ;;  %v6448_v16 = vadd.f32 0.01, %v1518_v9  ;;  %v5567_v9 = vld [vmem:[#allocation17 + $0x10] sm:$0xff]  }
 0x36d   :  { %v6451_v6 = vmul.f32 %v4209_v5, %v6448_v16  ;;  %v5562_v5 = vld [vmem:[#allocation20 + $0x30] sm:$0xff]  }
 0x36e   :  { %4971 = vmatpush3.bf16.msra.mxu1 %v5538_v14  ;;  %v5569_v14 = vld [vmem:[#allocation17 + $0x18] sm:$0xff]  }
 0x36f   :  { %4972 = vmatprep.subr.bf16.mxu1 %v5911_v0 }
 0x372   :  { %4973 = vmatpush3.bf16.msra.mxu1 %v5540_v18  ;;  %v5571_v18 = vld [vmem:[#allocation17 + $0x20] sm:$0xff]  }
 0x373   :  { %4974 = vmatprep.subr.bf16.mxu1 %v5911_v0 }
 0x376   :  { %v1281_v21 = vpop.f32.mrb[16].mxu0  ;;  %4975 = vmatpush3.bf16.msra.mxu1 %v5542_v19  ;;  %v5573_v19 = vld [vmem:[#allocation17 + $0x28] sm:$0xff]  }
 0x377   :  { %v1289_v39 = vadd.f32 %v1288_v20, %v1281_v21  ;;  %v4964_v28 = vpop.f32.mrb[17].mxu0  ;;  %4976 = vmatprep.subr.bf16.mxu1 %v5911_v0  ;;  %v5575_v20 = vld [vmem:[#allocation17 + $0x30] sm:$0xff]   ;;  %v5577_v21 = vld [vmem:[#allocation17 + $0x38] sm:$0xff]  }
 0x378   :  { %v1284_v29 = vpop.f32.mrb[18].mxu0 }
 0x379   :  { %v1297_v31 = vadd.f32 %v1296_v26, %v1289_v39  ;;  %v4965_v61 = vpop.f32.mrb[19].mxu0  ;;  %v1172_v26 = vmul.f32 %v6390_v22, %v6400_v32 }
 0x37a   :  { %4977 = vmatpush3.bf16.msra.mxu1 %v5544_v23 }
 0x37b   :  { %v6459_v10 = vsub.f32 %v1297_v31, %v6344_v40  ;;  %4978 = vmatprep.subr.bf16.mxu1 %v5911_v0 }
 0x37d   :  { %v1300_v33 = vsub.f32 %v6459_v10, %v6341_v37  ;;  %v1757_v37 = vmul.f32 %v6335_v35, %v6155_v41 }
 0x37e   :  { %4979 = vmatpush3.bf16.msra.mxu1 %v5546_v11 }
 0x37f   :  { %4980 = vmatprep.subr.bf16.mxu1 %v5911_v0  ;;  %vm6465_vm10 = vcmp.gt.f32.partialorder %v1300_v33, 0.0 }
 0x380   :  { %vm4250_vm11 = vmpackc.low %vm6465_vm10, %vm6465_vm10  ;;  %v4231_v40 = vsel %vm6465_vm10, 1.0, %v5911_v0 }
 0x381   :  { %5003 = vmatmul.mubr.msk.bf16.vlgmr.msra.gmra.mrb[20].mxu0 %vm4250_vm11, %v5913_v4  ;;  %v1759_v43 = vmul.f32 %v4231_v40, %v6158_v44 }
 0x382   :  { %5027 = vmatpush3.bf16.msra.mxu0 %v5547_v7  ;;  %4981 = vmatpush3.bf16.msra.mxu1 %v5548_v36 }
 0x383   :  { %5028 = vmatprep.subr.bf16.mxu0 %v5911_v0  ;;  %5042 = vmatprep.mubr.msk.bf16.mxu0 %vm5912_vm0, %v5911_v0  ;;  %v6487_v50 = vadd.f32 %v1759_v43, %v1757_v37 }
 0x384   :  { %5006 = vmatprep.subr.bf16.mxu1 %v5911_v0 }
 0x385   :  { %4983 = vmatmul.mubr.msk.bf16.vlgmr.msra.gmra.mrb[16].mxu1 %vm4218_vm9, %v5913_v4  ;;  %v1761_v35 = vmul.f32 1.8, %v6487_v50 }
 0x386   :  { %5029 = vmatpush3.bf16.msra.mxu0 %v5549_v45  ;;  %5022 = vmatprep.mubr.msk.bf16.mxu1 %vm5912_vm0, %v5911_v0 }
 0x387   :  { %5030 = vmatprep.subr.bf16.mxu0 %v5911_v0  ;;  %v6500_v52 = vadd.f32 0.01, %v1761_v35  ;;  %5007 = vmatpush3.bf16.msra.mxu1 %v5556_v59 }
 0x388   :  { %5008 = vmatprep.subr.bf16.mxu1 %v5911_v0 }
 0x389   :  { %v6503_v53 = vmul.f32 %v4231_v40, %v6500_v52 }
 0x38a   :  { %5031 = vmatpush3.bf16.msra.mxu0 %v5550_v30 }
 0x38b   :  { %5032 = vmatprep.subr.bf16.mxu0 %v5911_v0  ;;  %5009 = vmatpush3.bf16.msra.mxu1 %v5557_v62 }
 0x38c   :  { %5010 = vmatprep.subr.bf16.mxu1 %v5911_v0 }
 0x38e   :  { %5033 = vmatpush3.bf16.msra.mxu0 %v5551_v54 }
 0x38f   :  { %5034 = vmatprep.subr.bf16.mxu0 %v5911_v0  ;;  %5011 = vmatpush3.bf16.msra.mxu1 %v5558_v63 }
 0x390   :  { %5012 = vmatprep.subr.bf16.mxu1 %v5911_v0 }
 0x392   :  { %5035 = vmatpush3.bf16.msra.mxu0 %v5552_v55 }
 0x393   :  { %5036 = vmatprep.subr.bf16.mxu0 %v5911_v0  ;;  %5013 = vmatpush3.bf16.msra.mxu1 %v5559_v2  ;;  %v5566_v2 = vld [vmem:[#allocation18] sm:$0xff]  }
 0x394   :  { %5014 = vmatprep.subr.bf16.mxu1 %v5911_v0 }
 0x396   :  { %5037 = vmatpush3.bf16.msra.mxu0 %v5553_v56 }
 0x397   :  { %5038 = vmatprep.subr.bf16.mxu0 %v5911_v0  ;;  %5015 = vmatpush3.bf16.msra.mxu1 %v5560_v24  ;;  %v5596_v24 = vld [vmem:[#allocation17 + $0x8] sm:$0xff]  }
 0x398   :  { %5016 = vmatprep.subr.bf16.mxu1 %v5911_v0 }
 0x39a   :  { %5039 = vmatpush3.bf16.msra.mxu0 %v5554_v57 }
 0x39b   :  { %5040 = vmatprep.subr.bf16.mxu0 %v5911_v0  ;;  %5017 = vmatpush3.bf16.msra.mxu1 %v5561_v3 }
 0x39c   :  { %5018 = vmatprep.subr.bf16.mxu1 %v5911_v0 }
 0x39e   :  { %5041 = vmatpush3.bf16.msra.mxu0 %v5555_v58 }
 0x39f   :  { %5066 = vmatprep.subr.bf16.mxu0 %v5911_v0  ;;  %5019 = vmatpush3.bf16.msra.mxu1 %v5562_v5  ;;  %v5570_v5 = vld [vmem:[#allocation18 + $0x10] sm:$0xff]  }
 0x3a0   :  { %5020 = vmatprep.subr.bf16.mxu1 %v5911_v0 }
 0x3a1   :  { %5043 = vmatmul.mubr.msk.bf16.vlgmr.msra.gmra.mrb[24].mxu0 %vm4250_vm11, %v5913_v4 }
 0x3a2   :  { %5082 = vmatprep.mubr.msk.bf16.mxu0 %vm5912_vm0, %v5911_v0  ;;  %5067 = vmatpush3.bf16.msra.mxu0 %v5563_v60 }
 0x3a3   :  { %5068 = vmatprep.subr.bf16.mxu0 %v5911_v0  ;;  %5021 = vmatpush3.bf16.msra.mxu1 %v5564_v12  ;;  %v5572_v12 = vld [vmem:[#allocation18 + $0x18] sm:$0xff]  }
 0x3a4   :  { %5046 = vmatprep.subr.bf16.mxu1 %v5911_v0 }
 0x3a6   :  { %5069 = vmatpush3.bf16.msra.mxu0 %v5565_v13  ;;  %v1755_v13 = vld [vmem:[#allocation12 + $0x18] sm:$0xff] }
 0x3a7   :  { %5070 = vmatprep.subr.bf16.mxu0 %v5911_v0 }
 0x3aa   :  { %5071 = vmatpush3.bf16.msra.mxu0 %v5567_v9  ;;  %v5574_v9 = vld [vmem:[#allocation18 + $0x20] sm:$0xff]  }
 0x3ab   :  { %5072 = vmatprep.subr.bf16.mxu0 %v5911_v0 }
 0x3ae   :  { %5073 = vmatpush3.bf16.msra.mxu0 %v5569_v14 }
 0x3af   :  { %5074 = vmatprep.subr.bf16.mxu0 %v5911_v0 }
 0x3b2   :  { %5075 = vmatpush3.bf16.msra.mxu0 %v5571_v18 }
 0x3b3   :  { %5076 = vmatprep.subr.bf16.mxu0 %v5911_v0 }
 0x3b6   :  { %5077 = vmatpush3.bf16.msra.mxu0 %v5573_v19  ;;  %v1763_v19 = vmul.f32 %v6165_v49, %v6459_v10  ;;  %v5580_v10 = vld [vmem:[#allocation18 + $0x38] sm:$0xff]  }
 0x3b7   :  { %5078 = vmatprep.subr.bf16.mxu0 %v5911_v0 }
 0x3ba   :  { %5079 = vmatpush3.bf16.msra.mxu0 %v5575_v20 }
 0x3bb   :  { %5080 = vmatprep.subr.bf16.mxu0 %v5911_v0 }
 0x3be   :  { %5081 = vmatpush3.bf16.msra.mxu0 %v5577_v21 }
 0x3bf   :  { %5106 = vmatprep.subr.bf16.mxu0 %v5911_v0 }
 0x438   :  { %v1160_v23 = vpop.f32.mrb[12].mxu1 }
 0x439   :  { %v1161_v39 = vadd.f32 %v6395_v25, %v1160_v23  ;;  %v4944_v28 = vpop.f32.mrb[13].mxu1  ;;  %v5576_v23 = vld [vmem:[#allocation18 + $0x28] sm:$0xff]  }
 0x43a   :  { %v1163_v29 = vpop.f32.mrb[14].mxu1 }
 0x43b   :  { %v1173_v31 = vadd.f32 %v1172_v26, %v1161_v39  ;;  %v4945_v61 = vpop.f32.mrb[15].mxu1  ;;  %v5578_v29 = vld [vmem:[#allocation18 + $0x30] sm:$0xff]  }
 0x43c   :  { %v5579_v61 = vld [vmem:[#allocation15] sm:$0xff]  }
 0x43d   :  { %v6539_v11 = vsub.f32 %v1173_v31, %v6412_v47 }
 0x43f   :  { %v1176_v33 = vsub.f32 %v6539_v11, %v6409_v46 }
 0x441   :  { %vm1177_vm12 = vcmp.gt.f32.partialorder %v1176_v33, 0.0 }
 0x442   :  { %v4220_v7 = vsel %vm1177_vm12, 1.0, %v5911_v0 }
 0x443   :  { %v1635_v36 = vmul.f32 %v4220_v7, %v6383_v17 }
 0x445   :  { %v6547_v40 = vadd.f32 %v1635_v36, %v1633_v27 }
 0x447   :  { %v1637_v32 = vmul.f32 1.8, %v6547_v40 }
 0x449   :  { %v6550_v37 = vadd.f32 0.01, %v1637_v32  ;;  %v5582_v32 = vld [vmem:[#allocation15 + $0x10] sm:$0xff]  }
 0x44b   :  { %v6553_v47 = vmul.f32 %v4220_v7, %v6550_v37  ;;  %v5581_v7 = vld [vmem:[#allocation15 + $0x8] sm:$0xff]  }
 0x454   :  { %v1507_v43 = vpop.f32.mrb[20].mxu0 }
 0x455   :  { %v5004_v45 = vpop.f32.mrb[21].mxu0 }
 0x456   :  { %v1510_v46 = vpop.f32.mrb[22].mxu0  ;;  %v5583_v45 = vld [vmem:[#allocation15 + $0x18] sm:$0xff]  }
 0x457   :  { %v5005_v35 = vpop.f32.mrb[23].mxu0  ;;  %v5584_v46 = vld [vmem:[#allocation15 + $0x20] sm:$0xff]  }
 0x458   :  { %v1419_v30 = vpop.f32.mrb[16].mxu1  ;;  %v5585_v35 = vld [vmem:[#allocation15 + $0x28] sm:$0xff]  }
 0x459   :  { %v1508_v54 = vadd.f32 %v1507_v43, %v1419_v30  ;;  %v4984_v55 = vpop.f32.mrb[17].mxu1  ;;  %v5586_v30 = vld [vmem:[#allocation15 + $0x30] sm:$0xff]  }
 0x45a   :  { %v1422_v56 = vpop.f32.mrb[18].mxu1  ;;  %v5588_v55 = vld [vmem:[#allocation20] sm:$0xff]  }
 0x45b   :  { %v1513_v57 = vadd.f32 %v6256_v51, %v1508_v54  ;;  %v4985_v58 = vpop.f32.mrb[19].mxu1  ;;  %v5587_v54 = vld [vmem:[#allocation15 + $0x38] sm:$0xff]   ;;  %v5589_v56 = vld [vmem:[#allocation20 + $0x8] sm:$0xff]  }
 0x45c   :  { %v5592_v58 = vld [vmem:[#allocation20 + $0x20] sm:$0xff]  }
 0x45d   :  { %v1521_v59 = vadd.f32 %v1520_v34, %v1513_v57  ;;  %v5590_v57 = vld [vmem:[#allocation20 + $0x10] sm:$0xff]   ;;  %v5591_v34 = vld [vmem:[#allocation20 + $0x18] sm:$0xff]  }
 0x45f   :  { %v6559_v62 = vsub.f32 %v1521_v59, %v6451_v6  ;;  %v5593_v59 = vld [vmem:[#allocation20 + $0x28] sm:$0xff]  }
 0x461   :  { %v1524_v63 = vsub.f32 %v6559_v62, %v6448_v16  ;;  %v5568_v16 = vld [vmem:[#allocation18 + $0x8] sm:$0xff]  }
 0x463   :  { %vm6563_vm13 = vcmp.gt.f32.partialorder %v1524_v63, 0.0  ;;  %v5594_v63 = vld [vmem:[#allocation17] sm:$0xff]  }
 0x464   :  { %v4252_v51 = vsel %vm6563_vm13, 1.0, %v5911_v0  ;;  %vm4261_vm14 = vmpackc.low %vm6563_vm13, %vm6563_vm13 }
 0x465   :  { %5023 = vmatmul.mubr.msk.bf16.vlgmr.msra.gmra.mrb[20].mxu1 %vm4261_vm14, %v5913_v4  ;;  %v1983_v1 = vmul.f32 %v4252_v51, %v6244_v42 }
 0x466   :  { %5047 = vmatpush3.bf16.msra.mxu1 %v5566_v2  ;;  %5062 = vmatprep.mubr.msk.bf16.mxu1 %vm5912_vm0, %v5911_v0  ;;  %v5595_v2 = vld [vmem:[#allocation20 + $0x30] sm:$0xff]  }
 0x467   :  { %v6584_v6 = vadd.f32 %v1983_v1, %v1981_v48  ;;  %5048 = vmatprep.subr.bf16.mxu1 %v5911_v0  ;;  %v5598_v48 = vld [vmem:[#allocation17 + $0x10] sm:$0xff]   ;;  %v5600_v1 = vld [vmem:[#allocation17 + $0x18] sm:$0xff]  }
 0x469   :  { %v1985_v3 = vmul.f32 1.8, %v6584_v6 }
 0x46a   :  { %5049 = vmatpush3.bf16.msra.mxu1 %v5568_v16  ;;  %v5602_v16 = vld [vmem:[#allocation17 + $0x20] sm:$0xff]  }
 0x46b   :  { %5050 = vmatprep.subr.bf16.mxu1 %v5911_v0  ;;  %v6589_v60 = vadd.f32 0.01, %v1985_v3  ;;  %v5604_v3 = vld [vmem:[#allocation17 + $0x28] sm:$0xff]  }
 0x46d   :  { %v6592_v8 = vmul.f32 %v4252_v51, %v6589_v60  ;;  %v5597_v51 = vld [vmem:[#allocation20 + $0x38] sm:$0xff]  }
 0x46e   :  { %5051 = vmatpush3.bf16.msra.mxu1 %v5570_v5  ;;  %v5606_v5 = vld [vmem:[#allocation17 + $0x30] sm:$0xff]  }
 0x46f   :  { %5052 = vmatprep.subr.bf16.mxu1 %v5911_v0 }
 0x472   :  { %5053 = vmatpush3.bf16.msra.mxu1 %v5572_v12  ;;  %v5608_v12 = vld [vmem:[#allocation17 + $0x38] sm:$0xff]  }
 0x473   :  { %5054 = vmatprep.subr.bf16.mxu1 %v5911_v0 }
 0x474   :  { %v1748_v14 = vpop.f32.mrb[24].mxu0 }
 0x475   :  { %v1756_v18 = vadd.f32 %v1755_v13, %v1748_v14  ;;  %v5044_v20 = vpop.f32.mrb[25].mxu0  ;;  %v1639_v14 = vmul.f32 %v6390_v22, %v6539_v11 }
 0x476   :  { %v1751_v21 = vpop.f32.mrb[26].mxu0  ;;  %5055 = vmatpush3.bf16.msra.mxu1 %v5574_v9 }
 0x477   :  { %v1764_v39 = vadd.f32 %v1763_v19, %v1756_v18  ;;  %v5045_v26 = vpop.f32.mrb[27].mxu0  ;;  %5056 = vmatprep.subr.bf16.mxu1 %v5911_v0 }
 0x479   :  { %v6600_v28 = vsub.f32 %v1764_v39, %v6503_v53 }
 0x47a   :  { %5057 = vmatpush3.bf16.msra.mxu1 %v5576_v23 }
 0x47b   :  { %v1767_v31 = vsub.f32 %v6600_v28, %v6500_v52  ;;  %5058 = vmatprep.subr.bf16.mxu1 %v5911_v0  ;;  %v2224_v52 = vmul.f32 %v6487_v50, %v6155_v41 }
 0x47d   :  { %vm6605_vm15 = vcmp.gt.f32.partialorder %v1767_v31, 0.0  ;;  %v2100_v31 = vmul.f32 %v6547_v40, %v6380_v15  ;;  %v6699_v40 = vld [vmem:[%s7255_s4] ss:$0 sm:$0xff] }
 0x47e   :  { %5059 = vmatpush3.bf16.msra.mxu1 %v5578_v29  ;;  %vm4293_vm1 = vmpackc.low %vm6605_vm15, %vm6605_vm15  ;;  %v4274_v53 = vsel %vm6605_vm15, 1.0, %v5911_v0 }
 0x47f   :  { %5083 = vmatmul.mubr.msk.bf16.vlgmr.msra.gmra.mrb[28].mxu0 %vm4293_vm1, %v5913_v4  ;;  %5060 = vmatprep.subr.bf16.mxu1 %v5911_v0  ;;  %v2226_v33 = vmul.f32 %v4274_v53, %v6158_v44 }
 0x480   :  { %5107 = vmatpush3.bf16.msra.mxu0 %v5579_v61  ;;  %5122 = vmatprep.mubr.msk.bf16.mxu0 %vm5912_vm0, %v5911_v0 }
 0x481   :  { %5108 = vmatprep.subr.bf16.mxu0 %v5911_v0  ;;  %v6628_v36 = vadd.f32 %v2226_v33, %v2224_v52 }
 0x482   :  { %5061 = vmatpush3.bf16.msra.mxu1 %v5580_v10 }
 0x483   :  { %5086 = vmatprep.subr.bf16.mxu1 %v5911_v0  ;;  %v2228_v27 = vmul.f32 1.8, %v6628_v36 }
 0x484   :  { %5109 = vmatpush3.bf16.msra.mxu0 %v5581_v7 }
 0x485   :  { %5063 = vmatmul.mubr.msk.bf16.vlgmr.msra.gmra.mrb[24].mxu1 %vm4261_vm14, %v5913_v4  ;;  %5110 = vmatprep.subr.bf16.mxu0 %v5911_v0  ;;  %v6639_v50 = vadd.f32 0.01, %v2228_v27 }
 0x486   :  { %5102 = vmatprep.mubr.msk.bf16.mxu1 %vm5912_vm0, %v5911_v0  ;;  %5087 = vmatpush3.bf16.msra.mxu1 %v5588_v55 }
 0x487   :  { %v6644_v43 = vmul.f32 %v4274_v53, %v6639_v50  ;;  %5088 = vmatprep.subr.bf16.mxu1 %v5911_v0 }
 0x488   :  { %5111 = vmatpush3.bf16.msra.mxu0 %v5582_v32 }
 0x489   :  { %5112 = vmatprep.subr.bf16.mxu0 %v5911_v0 }
 0x48a   :  { %5089 = vmatpush3.bf16.msra.mxu1 %v5589_v56 }
 0x48b   :  { %5090 = vmatprep.subr.bf16.mxu1 %v5911_v0 }
 0x48c   :  { %5113 = vmatpush3.bf16.msra.mxu0 %v5583_v45 }
 0x48d   :  { %5114 = vmatprep.subr.bf16.mxu0 %v5911_v0 }
 0x48e   :  { %5091 = vmatpush3.bf16.msra.mxu1 %v5590_v57  ;;  %v5599_v57 = vld [vmem:[#allocation18] sm:$0xff]  }
 0x48f   :  { %5092 = vmatprep.subr.bf16.mxu1 %v5911_v0 }
 0x490   :  { %5115 = vmatpush3.bf16.msra.mxu0 %v5584_v46  ;;  %v6705_v46 = vld [vmem:[%s7262_s11] ss:$0 sm:$0xff] }
 0x491   :  { %5116 = vmatprep.subr.bf16.mxu0 %v5911_v0 }
 0x492   :  { %5093 = vmatpush3.bf16.msra.mxu1 %v5591_v34  ;;  %v5625_v34 = vld [vmem:[#allocation20 + $0x28] sm:$0xff]  }
 0x493   :  { %5094 = vmatprep.subr.bf16.mxu1 %v5911_v0 }
 0x494   :  { %5117 = vmatpush3.bf16.msra.mxu0 %v5585_v35  ;;  %v1987_v35 = vmul.f32 %v6705_v46, %v6559_v62  ;;  %v2448_v62 = vmul.f32 %v6584_v6, %v6240_v38 }
 0x495   :  { %5118 = vmatprep.subr.bf16.mxu0 %v5911_v0 }
 0x496   :  { %5095 = vmatpush3.bf16.msra.mxu1 %v5592_v58 }
 0x497   :  { %5096 = vmatprep.subr.bf16.mxu1 %v5911_v0 }
 0x498   :  { %5119 = vmatpush3.bf16.msra.mxu0 %v5586_v30 }
 0x499   :  { %5120 = vmatprep.subr.bf16.mxu0 %v5911_v0 }
 0x49a   :  { %5097 = vmatpush3.bf16.msra.mxu1 %v5593_v59 }
 0x49b   :  { %5098 = vmatprep.subr.bf16.mxu1 %v5911_v0 }
 0x49c   :  { %5121 = vmatpush3.bf16.msra.mxu0 %v5587_v54 }
 0x49d   :  { %5146 = vmatprep.subr.bf16.mxu0 %v5911_v0 }
 0x49e   :  { %5099 = vmatpush3.bf16.msra.mxu1 %v5595_v2  ;;  %v5603_v2 = vld [vmem:[#allocation18 + $0x10] sm:$0xff]  }
 0x49f   :  { %5123 = vmatmul.mubr.msk.bf16.vlgmr.msra.gmra.mrb[32].mxu0 %vm4293_vm1, %v5913_v4  ;;  %5100 = vmatprep.subr.bf16.mxu1 %v5911_v0 }
 0x4a0   :  { %5162 = vmatprep.mubr.msk.bf16.mxu0 %vm5912_vm0, %v5911_v0  ;;  %5147 = vmatpush3.bf16.msra.mxu0 %v5594_v63 }
 0x4a1   :  { %5148 = vmatprep.subr.bf16.mxu0 %v5911_v0 }
 0x4a2   :  { %5101 = vmatpush3.bf16.msra.mxu1 %v5597_v51  ;;  %v5605_v51 = vld [vmem:[#allocation18 + $0x18] sm:$0xff]  }
 0x4a3   :  { %5126 = vmatprep.subr.bf16.mxu1 %v5911_v0 }
 0x4a4   :  { %5149 = vmatpush3.bf16.msra.mxu0 %v5596_v24 }
 0x4a5   :  { %5150 = vmatprep.subr.bf16.mxu0 %v5911_v0 }
 0x4a8   :  { %5151 = vmatpush3.bf16.msra.mxu0 %v5598_v48  ;;  %v2222_v48 = vld [vmem:[#allocation12 + $0x20] sm:$0xff] }
 0x4a9   :  { %5152 = vmatprep.subr.bf16.mxu0 %v5911_v0 }
 0x4ac   :  { %5153 = vmatpush3.bf16.msra.mxu0 %v5600_v1 }
 0x4ad   :  { %5154 = vmatprep.subr.bf16.mxu0 %v5911_v0 }
 0x4b0   :  { %5155 = vmatpush3.bf16.msra.mxu0 %v5602_v16  ;;  %v5607_v16 = vld [vmem:[#allocation18 + $0x20] sm:$0xff]  }
 0x4b1   :  { %5156 = vmatprep.subr.bf16.mxu0 %v5911_v0 }
 0x4b4   :  { %5157 = vmatpush3.bf16.msra.mxu0 %v5604_v3 }
 0x4b5   :  { %5158 = vmatprep.subr.bf16.mxu0 %v5911_v0 }
 0x4b8   :  { %5159 = vmatpush3.bf16.msra.mxu0 %v5606_v5  ;;  %v6749_v5 = vld [vmem:[%s7260_s9] ss:$0 sm:$0xff] }
 0x4b9   :  { %5160 = vmatprep.subr.bf16.mxu0 %v5911_v0 }
 0x4bc   :  { %5161 = vmatpush3.bf16.msra.mxu0 %v5608_v12  ;;  %v2230_v12 = vmul.f32 %v6749_v5, %v6600_v28 }
 0x4bd   :  { %5186 = vmatprep.subr.bf16.mxu0 %v5911_v0 }
 0x538   :  { %v1627_v13 = vpop.f32.mrb[20].mxu1 }
 0x539   :  { %v1628_v9 = vadd.f32 %v6395_v25, %v1627_v13  ;;  %v5024_v18 = vpop.f32.mrb[21].mxu1 }
 0x53a   :  { %v1630_v19 = vpop.f32.mrb[22].mxu1 }
 0x53b   :  { %v1640_v20 = vadd.f32 %v1639_v14, %v1628_v9  ;;  %v5025_v21 = vpop.f32.mrb[23].mxu1  ;;  %v5609_v19 = vld [vmem:[#allocation18 + $0x28] sm:$0xff]  }
 0x53d   :  { %v6680_v23 = vsub.f32 %v1640_v20, %v6553_v47 }
 0x53f   :  { %v1643_v39 = vsub.f32 %v6680_v23, %v6550_v37 }
 0x541   :  { %vm1644_vm2 = vcmp.gt.f32.partialorder %v1643_v39, 0.0  ;;  %v5610_v39 = vld [vmem:[#allocation15] sm:$0xff]  }
 0x542   :  { %v4263_v26 = vsel %vm1644_vm2, 1.0, %v5911_v0 }
 0x543   :  { %v2102_v29 = vmul.f32 %v4263_v26, %v6383_v17 }
 0x545   :  { %v6688_v61 = vadd.f32 %v2102_v29, %v2100_v31  ;;  %v5612_v31 = vld [vmem:[#allocation15 + $0x8] sm:$0xff]  }
 0x547   :  { %v2104_v11 = vmul.f32 1.8, %v6688_v61 }
 0x549   :  { %v6691_v49 = vadd.f32 0.01, %v2104_v11  ;;  %v5613_v11 = vld [vmem:[#allocation18 + $0x38] sm:$0xff]  }
 0x54b   :  { %v6694_v47 = vmul.f32 %v4263_v26, %v6691_v49  ;;  %v5611_v26 = vld [vmem:[#allocation18 + $0x30] sm:$0xff]  }
 0x552   :  { %v1974_v10 = vpop.f32.mrb[28].mxu0 }
 0x553   :  { %v5084_v53 = vpop.f32.mrb[29].mxu0 }
 0x554   :  { %v1977_v37 = vpop.f32.mrb[30].mxu0 }
 0x555   :  { %v5085_v52 = vpop.f32.mrb[31].mxu0 }
 0x558   :  { %v1886_v33 = vpop.f32.mrb[24].mxu1 }
 0x559   :  { %v1975_v7 = vadd.f32 %v1974_v10, %v1886_v33  ;;  %v5064_v27 = vpop.f32.mrb[25].mxu1  ;;  %v5615_v33 = vld [vmem:[#allocation15 + $0x18] sm:$0xff]  }
 0x55a   :  { %v1889_v32 = vpop.f32.mrb[26].mxu1  ;;  %v5617_v27 = vld [vmem:[#allocation15 + $0x28] sm:$0xff]  }
 0x55b   :  { %v1980_v45 = vadd.f32 %v6699_v40, %v1975_v7  ;;  %v5065_v30 = vpop.f32.mrb[27].mxu1  ;;  %v5616_v7 = vld [vmem:[#allocation15 + $0x20] sm:$0xff]   ;;  %v5618_v32 = vld [vmem:[#allocation15 + $0x30] sm:$0xff]  }
 0x55c   :  { %v5621_v30 = vld [vmem:[#allocation20 + $0x8] sm:$0xff]  }
 0x55d   :  { %v1988_v54 = vadd.f32 %v1987_v35, %v1980_v45  ;;  %v5619_v45 = vld [vmem:[#allocation15 + $0x38] sm:$0xff]   ;;  %v5620_v35 = vld [vmem:[#allocation20] sm:$0xff]  }
 0x55f   :  { %v6710_v55 = vsub.f32 %v1988_v54, %v6592_v8  ;;  %v5601_v8 = vld [vmem:[#allocation18 + $0x8] sm:$0xff]   ;;  %v5622_v54 = vld [vmem:[#allocation20 + $0x10] sm:$0xff]  }
 0x561   :  { %v1991_v56 = vsub.f32 %v6710_v55, %v6589_v60 }
 0x563   :  { %vm6714_vm3 = vcmp.gt.f32.partialorder %v1991_v56, 0.0  ;;  %v5623_v56 = vld [vmem:[#allocation20 + $0x18] sm:$0xff]  }
 0x564   :  { %v4295_v58 = vsel %vm6714_vm3, 1.0, %v5911_v0  ;;  %vm4304_vm4 = vmpackc.low %vm6714_vm3, %vm6714_vm3 }
 0x565   :  { %5103 = vmatmul.mubr.msk.bf16.vlgmr.msra.gmra.mrb[28].mxu1 %vm4304_vm4, %v5913_v4  ;;  %v2450_v60 = vmul.f32 %v4295_v58, %v6244_v42 }
 0x566   :  { %5127 = vmatpush3.bf16.msra.mxu1 %v5599_v57  ;;  %5142 = vmatprep.mubr.msk.bf16.mxu1 %vm5912_vm0, %v5911_v0  ;;  %v5624_v57 = vld [vmem:[#allocation20 + $0x20] sm:$0xff]  }
 0x567   :  { %v6735_v59 = vadd.f32 %v2450_v60, %v2448_v62  ;;  %5128 = vmatprep.subr.bf16.mxu1 %v5911_v0  ;;  %v5627_v62 = vld [vmem:[#allocation20 + $0x30] sm:$0xff]   ;;  %v5628_v60 = vld [vmem:[#allocation17 + $0x8] sm:$0xff]  }
 0x569   :  { %v2452_v63 = vmul.f32 1.8, %v6735_v59 }
 0x56a   :  { %5129 = vmatpush3.bf16.msra.mxu1 %v5601_v8  ;;  %v5629_v8 = vld [vmem:[#allocation20 + $0x38] sm:$0xff]  }
 0x56b   :  { %5130 = vmatprep.subr.bf16.mxu1 %v5911_v0  ;;  %v6740_v24 = vadd.f32 0.01, %v2452_v63  ;;  %v5630_v63 = vld [vmem:[#allocation17 + $0x10] sm:$0xff]  }
 0x56d   :  { %v6743_v6 = vmul.f32 %v4295_v58, %v6740_v24  ;;  %v5626_v58 = vld [vmem:[#allocation17] sm:$0xff]  }
 0x56e   :  { %5131 = vmatpush3.bf16.msra.mxu1 %v5603_v2  ;;  %v5632_v2 = vld [vmem:[#allocation17 + $0x18] sm:$0xff]  }
 0x56f   :  { %5132 = vmatprep.subr.bf16.mxu1 %v5911_v0 }
 0x572   :  { %v2215_v1 = vpop.f32.mrb[32].mxu0  ;;  %5133 = vmatpush3.bf16.msra.mxu1 %v5605_v51  ;;  %v5634_v51 = vld [vmem:[#allocation17 + $0x20] sm:$0xff]  }
 0x573   :  { %v2223_v3 = vadd.f32 %v2222_v48, %v2215_v1  ;;  %v5124_v13 = vpop.f32.mrb[33].mxu0  ;;  %5134 = vmatprep.subr.bf16.mxu1 %v5911_v0  ;;  %v5636_v48 = vld [vmem:[#allocation17 + $0x28] sm:$0xff]   ;;  %v5638_v1 = vld [vmem:[#allocation17 + $0x30] sm:$0xff]  }
 0x574   :  { %v2218_v9 = vpop.f32.mrb[34].mxu0  ;;  %v2106_v13 = vmul.f32 %v6390_v22, %v6680_v23 }
 0x575   :  { %v2231_v14 = vadd.f32 %v2230_v12, %v2223_v3  ;;  %v5125_v18 = vpop.f32.mrb[35].mxu0 }
 0x576   :  { %5135 = vmatpush3.bf16.msra.mxu1 %v5607_v16  ;;  %v5640_v16 = vld [vmem:[#allocation17 + $0x38] sm:$0xff]  }
 0x577   :  { %v6755_v20 = vsub.f32 %v2231_v14, %v6644_v43  ;;  %5136 = vmatprep.subr.bf16.mxu1 %v5911_v0 }
 0x579   :  { %v2234_v21 = vsub.f32 %v6755_v20, %v6639_v50  ;;  %v2691_v50 = vmul.f32 %v6628_v36, %v6155_v41  ;;  %v5614_v36 = vld [vmem:[#allocation15 + $0x10] sm:$0xff]  }
 0x57a   :  { %5137 = vmatpush3.bf16.msra.mxu1 %v5609_v19 }
 0x57b   :  { %5138 = vmatprep.subr.bf16.mxu1 %v5911_v0  ;;  %vm6761_vm5 = vcmp.gt.f32.partialorder %v2234_v21, 0.0 }
 0x57c   :  { %vm4336_vm6 = vmpackc.low %vm6761_vm5, %vm6761_vm5  ;;  %v4317_v43 = vsel %vm6761_vm5, 1.0, %v5911_v0 }
 0x57d   :  { %5163 = vmatmul.mubr.msk.bf16.vlgmr.msra.gmra.mrb[36].mxu0 %vm4336_vm6, %v5913_v4  ;;  %v2693_v29 = vmul.f32 %v4317_v43, %v6158_v44 }
 0x57e   :  { %5187 = vmatpush3.bf16.msra.mxu0 %v5610_v39  ;;  %5139 = vmatpush3.bf16.msra.mxu1 %v5611_v26 }
 0x57f   :  { %5188 = vmatprep.subr.bf16.mxu0 %v5911_v0  ;;  %5140 = vmatprep.subr.bf16.mxu1 %v5911_v0  ;;  %v6782_v10 = vadd.f32 %v2693_v29, %v2691_v50 }
 0x580   :  { %5202 = vmatprep.mubr.msk.bf16.mxu0 %vm5912_vm0, %v5911_v0 }
 0x581   :  { %v2695_v53 = vmul.f32 1.8, %v6782_v10 }
 0x582   :  { %5189 = vmatpush3.bf16.msra.mxu0 %v5612_v31  ;;  %5141 = vmatpush3.bf16.msra.mxu1 %v5613_v11 }
 0x583   :  { %5190 = vmatprep.subr.bf16.mxu0 %v5911_v0  ;;  %5166 = vmatprep.subr.bf16.mxu1 %v5911_v0  ;;  %v6789_v37 = vadd.f32 0.01, %v2695_v53 }
 0x585   :  { %5143 = vmatmul.mubr.msk.bf16.vlgmr.msra.gmra.mrb[32].mxu1 %vm4304_vm4, %v5913_v4  ;;  %v6798_v52 = vmul.f32 %v4317_v43, %v6789_v37 }
 0x586   :  { %5191 = vmatpush3.bf16.msra.mxu0 %v5614_v36  ;;  %5182 = vmatprep.mubr.msk.bf16.mxu1 %vm5912_vm0, %v5911_v0 }
 0x587   :  { %5192 = vmatprep.subr.bf16.mxu0 %v5911_v0  ;;  %5167 = vmatpush3.bf16.msra.mxu1 %v5620_v35 }
 0x588   :  { %5168 = vmatprep.subr.bf16.mxu1 %v5911_v0 }
 0x58a   :  { %5193 = vmatpush3.bf16.msra.mxu0 %v5615_v33 }
 0x58b   :  { %5194 = vmatprep.subr.bf16.mxu0 %v5911_v0  ;;  %5169 = vmatpush3.bf16.msra.mxu1 %v5621_v30  ;;  %v5631_v30 = vld [vmem:[#allocation18] sm:$0xff]  }
 0x58c   :  { %5170 = vmatprep.subr.bf16.mxu1 %v5911_v0 }
 0x58e   :  { %5195 = vmatpush3.bf16.msra.mxu0 %v5616_v7 }
 0x58f   :  { %5196 = vmatprep.subr.bf16.mxu0 %v5911_v0  ;;  %5171 = vmatpush3.bf16.msra.mxu1 %v5622_v54  ;;  %v5659_v54 = vld [vmem:[#allocation17 + $0x8] sm:$0xff]  }
 0x590   :  { %5172 = vmatprep.subr.bf16.mxu1 %v5911_v0 }
 0x592   :  { %5197 = vmatpush3.bf16.msra.mxu0 %v5617_v27 }
 0x593   :  { %5198 = vmatprep.subr.bf16.mxu0 %v5911_v0  ;;  %5173 = vmatpush3.bf16.msra.mxu1 %v5623_v56 }
 0x594   :  { %5174 = vmatprep.subr.bf16.mxu1 %v5911_v0 }
 0x596   :  { %5199 = vmatpush3.bf16.msra.mxu0 %v5618_v32 }
 0x597   :  { %5200 = vmatprep.subr.bf16.mxu0 %v5911_v0  ;;  %5175 = vmatpush3.bf16.msra.mxu1 %v5624_v57 }
 0x598   :  { %5176 = vmatprep.subr.bf16.mxu1 %v5911_v0 }
 0x59a   :  { %5201 = vmatpush3.bf16.msra.mxu0 %v5619_v45 }
 0x59b   :  { %5226 = vmatprep.subr.bf16.mxu0 %v5911_v0  ;;  %5177 = vmatpush3.bf16.msra.mxu1 %v5625_v34 }
 0x59c   :  { %5178 = vmatprep.subr.bf16.mxu1 %v5911_v0 }
 0x59d   :  { %5203 = vmatmul.mubr.msk.bf16.vlgmr.msra.gmra.mrb[40].mxu0 %vm4336_vm6, %v5913_v4 }
 0x59e   :  { %5242 = vmatprep.mubr.msk.bf16.mxu0 %vm5912_vm0, %v5911_v0  ;;  %5227 = vmatpush3.bf16.msra.mxu0 %v5626_v58  ;;  %v5635_v58 = vld [vmem:[#allocation18 + $0x10] sm:$0xff]  }
 0x59f   :  { %5228 = vmatprep.subr.bf16.mxu0 %v5911_v0  ;;  %5179 = vmatpush3.bf16.msra.mxu1 %v5627_v62 }
 0x5a0   :  { %5180 = vmatprep.subr.bf16.mxu1 %v5911_v0 }
 0x5a2   :  { %5229 = vmatpush3.bf16.msra.mxu0 %v5628_v60  ;;  %v2689_v60 = vld [vmem:[#allocation12 + $0x28] sm:$0xff] }
 0x5a3   :  { %5230 = vmatprep.subr.bf16.mxu0 %v5911_v0  ;;  %5181 = vmatpush3.bf16.msra.mxu1 %v5629_v8  ;;  %v5637_v8 = vld [vmem:[#allocation18 + $0x18] sm:$0xff]  }
 0x5a4   :  { %5206 = vmatprep.subr.bf16.mxu1 %v5911_v0 }
 0x5a6   :  { %5231 = vmatpush3.bf16.msra.mxu0 %v5630_v63 }
 0x5a7   :  { %5232 = vmatprep.subr.bf16.mxu0 %v5911_v0 }
 0x5aa   :  { %5233 = vmatpush3.bf16.msra.mxu0 %v5632_v2 }
 0x5ab   :  { %5234 = vmatprep.subr.bf16.mxu0 %v5911_v0 }
 0x5ae   :  { %5235 = vmatpush3.bf16.msra.mxu0 %v5634_v51  ;;  %v2697_v51 = vmul.f32 %v6749_v5, %v6755_v20 }
 0x5af   :  { %5236 = vmatprep.subr.bf16.mxu0 %v5911_v0 }
 0x5b2   :  { %5237 = vmatpush3.bf16.msra.mxu0 %v5636_v48 }
 0x5b3   :  { %5238 = vmatprep.subr.bf16.mxu0 %v5911_v0 }
 0x5b6   :  { %5239 = vmatpush3.bf16.msra.mxu0 %v5638_v1 }
 0x5b7   :  { %5240 = vmatprep.subr.bf16.mxu0 %v5911_v0 }
 0x5ba   :  { %5241 = vmatpush3.bf16.msra.mxu0 %v5640_v16  ;;  %v5639_v16 = vld [vmem:[#allocation18 + $0x20] sm:$0xff]  }
 0x5bb   :  { %5266 = vmatprep.subr.bf16.mxu0 %v5911_v0 }
 0x638   :  { %v2094_v3 = vpop.f32.mrb[28].mxu1 }
 0x639   :  { %v2095_v12 = vadd.f32 %v6395_v25, %v2094_v3  ;;  %v5104_v9 = vpop.f32.mrb[29].mxu1  ;;  %v2567_v25 = vmul.f32 %v6688_v61, %v6380_v15  ;;  %v2454_v61 = vmul.f32 %v6705_v46, %v6710_v55  ;;  %v2915_v55 = vmul.f32 %v6735_v59, %v6240_v38 }
 0x63a   :  { %v2097_v14 = vpop.f32.mrb[30].mxu1  ;;  %v5641_v9 = vld [vmem:[#allocation18 + $0x28] sm:$0xff]  }
 0x63b   :  { %v2107_v18 = vadd.f32 %v2106_v13, %v2095_v12  ;;  %v5105_v19 = vpop.f32.mrb[31].mxu1 }
 0x63c   :  { %v5643_v19 = vld [vmem:[#allocation18 + $0x30] sm:$0xff]  }
 0x63d   :  { %v6836_v21 = vsub.f32 %v2107_v18, %v6694_v47  ;;  %v5642_v18 = vld [vmem:[#allocation15] sm:$0xff]  }
 0x63f   :  { %v2110_v39 = vsub.f32 %v6836_v21, %v6691_v49 }
 0x641   :  { %vm2111_vm7 = vcmp.gt.f32.partialorder %v2110_v39, 0.0 }
 0x642   :  { %v4306_v26 = vsel %vm2111_vm7, 1.0, %v5911_v0 }
 0x643   :  { %v2569_v28 = vmul.f32 %v4306_v26, %v6383_v17 }
 0x645   :  { %v6844_v43 = vadd.f32 %v2569_v28, %v2567_v25  ;;  %v5645_v25 = vld [vmem:[#allocation18 + $0x38] sm:$0xff]  }
 0x647   :  { %v2571_v22 = vmul.f32 1.8, %v6844_v43 }
 0x649   :  { %v6847_v23 = vadd.f32 0.01, %v2571_v22 }
 0x64b   :  { %v6850_v47 = vmul.f32 %v4306_v26, %v6847_v23  ;;  %v5644_v26 = vld [vmem:[#allocation15 + $0x8] sm:$0xff]  }
 0x650   :  { %v2441_v50 = vpop.f32.mrb[36].mxu0 }
 0x651   :  { %v5164_v29 = vpop.f32.mrb[37].mxu0 }
 0x652   :  { %v2444_v49 = vpop.f32.mrb[38].mxu0 }
 0x653   :  { %v5165_v31 = vpop.f32.mrb[39].mxu0  ;;  %v5647_v49 = vld [vmem:[#allocation15 + $0x18] sm:$0xff]  }
 0x654   :  { %v5648_v31 = vld [vmem:[#allocation15 + $0x20] sm:$0xff]  }
 0x658   :  { %v2353_v11 = vpop.f32.mrb[32].mxu1 }
 0x659   :  { %v2442_v53 = vadd.f32 %v2441_v50, %v2353_v11  ;;  %v5144_v36 = vpop.f32.mrb[33].mxu1  ;;  %v5646_v50 = vld [vmem:[#allocation15 + $0x10] sm:$0xff]   ;;  %v5649_v11 = vld [vmem:[#allocation15 + $0x28] sm:$0xff]  }
 0x65a   :  { %v2356_v33 = vpop.f32.mrb[34].mxu1  ;;  %v5651_v36 = vld [vmem:[#allocation15 + $0x38] sm:$0xff]  }
 0x65b   :  { %v2447_v7 = vadd.f32 %v6699_v40, %v2442_v53  ;;  %v5145_v27 = vpop.f32.mrb[35].mxu1  ;;  %v5650_v53 = vld [vmem:[#allocation15 + $0x30] sm:$0xff]   ;;  %v5652_v33 = vld [vmem:[#allocation20] sm:$0xff]  }
 0x65c   :  { %v5655_v27 = vld [vmem:[#allocation20 + $0x18] sm:$0xff]  }
 0x65d   :  { %v2455_v32 = vadd.f32 %v2454_v61, %v2447_v7  ;;  %v5653_v7 = vld [vmem:[#allocation20 + $0x8] sm:$0xff]   ;;  %v5654_v61 = vld [vmem:[#allocation20 + $0x10] sm:$0xff]  }
 0x65f   :  { %v6856_v45 = vsub.f32 %v2455_v32, %v6743_v6  ;;  %v5633_v6 = vld [vmem:[#allocation18 + $0x8] sm:$0xff]   ;;  %v5656_v32 = vld [vmem:[#allocation20 + $0x20] sm:$0xff]  }
 0x661   :  { %v2458_v35 = vsub.f32 %v6856_v45, %v6740_v24 }
 0x663   :  { %vm6860_vm8 = vcmp.gt.f32.partialorder %v2458_v35, 0.0  ;;  %v5657_v35 = vld [vmem:[#allocation17] sm:$0xff]  }
 0x664   :  { %v4338_v56 = vsel %vm6860_vm8, 1.0, %v5911_v0  ;;  %vm4347_vm9 = vmpackc.low %vm6860_vm8, %vm6860_vm8 }
 0x665   :  { %5183 = vmatmul.mubr.msk.bf16.vlgmr.msra.gmra.mrb[36].mxu1 %vm4347_vm9, %v5913_v4  ;;  %v2917_v24 = vmul.f32 %v4338_v56, %v6244_v42 }
 0x666   :  { %5207 = vmatpush3.bf16.msra.mxu1 %v5631_v30  ;;  %5222 = vmatprep.mubr.msk.bf16.mxu1 %vm5912_vm0, %v5911_v0  ;;  %v5658_v30 = vld [vmem:[#allocation20 + $0x28] sm:$0xff]  }
 0x667   :  { %v6881_v57 = vadd.f32 %v2917_v24, %v2915_v55  ;;  %5208 = vmatprep.subr.bf16.mxu1 %v5911_v0  ;;  %v5661_v55 = vld [vmem:[#allocation17 + $0x10] sm:$0xff]   ;;  %v5662_v24 = vld [vmem:[#allocation20 + $0x38] sm:$0xff]  }
 0x669   :  { %v2919_v34 = vmul.f32 1.8, %v6881_v57 }
 0x66a   :  { %5209 = vmatpush3.bf16.msra.mxu1 %v5633_v6  ;;  %v5663_v6 = vld [vmem:[#allocation17 + $0x18] sm:$0xff]  }
 0x66b   :  { %5210 = vmatprep.subr.bf16.mxu1 %v5911_v0  ;;  %v6886_v62 = vadd.f32 0.01, %v2919_v34  ;;  %v5665_v34 = vld [vmem:[#allocation17 + $0x20] sm:$0xff]  }
 0x66d   :  { %v6889_v59 = vmul.f32 %v4338_v56, %v6886_v62  ;;  %v5660_v56 = vld [vmem:[#allocation20 + $0x30] sm:$0xff]  }
 0x66e   :  { %5211 = vmatpush3.bf16.msra.mxu1 %v5635_v58  ;;  %v5667_v58 = vld [vmem:[#allocation17 + $0x28] sm:$0xff]  }
 0x66f   :  { %5212 = vmatprep.subr.bf16.mxu1 %v5911_v0 }
 0x670   :  { %v2682_v63 = vpop.f32.mrb[40].mxu0 }
 0x671   :  { %v2690_v2 = vadd.f32 %v2689_v60, %v2682_v63  ;;  %v5204_v48 = vpop.f32.mrb[41].mxu0  ;;  %v5669_v60 = vld [vmem:[#allocation17 + $0x30] sm:$0xff]  }
 0x672   :  { %v2685_v1 = vpop.f32.mrb[42].mxu0  ;;  %5213 = vmatpush3.bf16.msra.mxu1 %v5637_v8  ;;  %v5671_v8 = vld [vmem:[#allocation17 + $0x38] sm:$0xff]   ;;  %v6982_v48 = vld [vmem:[%s7264_s13] ss:$0 sm:$0xff] }
 0x673   :  { %v2698_v3 = vadd.f32 %v2697_v51, %v2690_v2  ;;  %v5205_v12 = vpop.f32.mrb[43].mxu0  ;;  %5214 = vmatprep.subr.bf16.mxu1 %v5911_v0  ;;  %v6976_v2 = vld [vmem:[%s7257_s6] ss:$0 sm:$0xff]  ;;  %v2573_v1 = vmul.f32 %v6982_v48, %v6836_v21 }
 0x675   :  { %v6896_v13 = vsub.f32 %v2698_v3, %v6798_v52 }
 0x676   :  { %5215 = vmatpush3.bf16.msra.mxu1 %v5639_v16 }
 0x677   :  { %v2701_v14 = vsub.f32 %v6896_v13, %v6789_v37  ;;  %5216 = vmatprep.subr.bf16.mxu1 %v5911_v0  ;;  %v3158_v37 = vmul.f32 %v6782_v10, %v6155_v41 }
 0x679   :  { %vm6901_vm10 = vcmp.gt.f32.partialorder %v2701_v14, 0.0 }
 0x67a   :  { %5217 = vmatpush3.bf16.msra.mxu1 %v5641_v9  ;;  %vm4379_vm11 = vmpackc.low %vm6901_vm10, %vm6901_vm10  ;;  %v4360_v52 = vsel %vm6901_vm10, 1.0, %v5911_v0 }
 0x67b   :  { %5243 = vmatmul.mubr.msk.bf16.vlgmr.msra.gmra.mrb[44].mxu0 %vm4379_vm11, %v5913_v4  ;;  %5218 = vmatprep.subr.bf16.mxu1 %v5911_v0  ;;  %v3160_v39 = vmul.f32 %v4360_v52, %v6158_v44 }
 0x67c   :  { %5267 = vmatpush3.bf16.msra.mxu0 %v5642_v18  ;;  %5282 = vmatprep.mubr.msk.bf16.mxu0 %vm5912_vm0, %v5911_v0 }
 0x67d   :  { %5268 = vmatprep.subr.bf16.mxu0 %v5911_v0  ;;  %v6924_v28 = vadd.f32 %v3160_v39, %v3158_v37 }
 0x67e   :  { %5219 = vmatpush3.bf16.msra.mxu1 %v5643_v19 }
 0x67f   :  { %5220 = vmatprep.subr.bf16.mxu1 %v5911_v0  ;;  %v3162_v22 = vmul.f32 1.8, %v6924_v28 }
 0x680   :  { %5269 = vmatpush3.bf16.msra.mxu0 %v5644_v26 }
 0x681   :  { %5270 = vmatprep.subr.bf16.mxu0 %v5911_v0  ;;  %v6929_v10 = vadd.f32 0.01, %v3162_v22 }
 0x682   :  { %5221 = vmatpush3.bf16.msra.mxu1 %v5645_v25 }
 0x683   :  { %5246 = vmatprep.subr.bf16.mxu1 %v5911_v0  ;;  %v6933_v29 = vmul.f32 %v4360_v52, %v6929_v10  ;;  %v3034_v52 = vmul.f32 %v6844_v43, %v6380_v15  ;;  %v2921_v43 = vmul.f32 %v6705_v46, %v6856_v45  ;;  %v3382_v45 = vmul.f32 %v6881_v57, %v6240_v38  ;;  %v3156_v57 = vld [vmem:[#allocation12 + $0x30] sm:$0xff] }
 0x684   :  { %5271 = vmatpush3.bf16.msra.mxu0 %v5646_v50 }
 0x685   :  { %5223 = vmatmul.mubr.msk.bf16.vlgmr.msra.gmra.mrb[40].mxu1 %vm4347_vm9, %v5913_v4  ;;  %5272 = vmatprep.subr.bf16.mxu0 %v5911_v0 }
 0x686   :  { %5262 = vmatprep.mubr.msk.bf16.mxu1 %vm5912_vm0, %v5911_v0  ;;  %5247 = vmatpush3.bf16.msra.mxu1 %v5652_v33 }
 0x687   :  { %5248 = vmatprep.subr.bf16.mxu1 %v5911_v0 }
 0x688   :  { %5273 = vmatpush3.bf16.msra.mxu0 %v5647_v49 }
 0x689   :  { %5274 = vmatprep.subr.bf16.mxu0 %v5911_v0 }
 0x68a   :  { %5249 = vmatpush3.bf16.msra.mxu1 %v5653_v7 }
 0x68b   :  { %5250 = vmatprep.subr.bf16.mxu1 %v5911_v0 }
 0x68c   :  { %5275 = vmatpush3.bf16.msra.mxu0 %v5648_v31 }
 0x68d   :  { %5276 = vmatprep.subr.bf16.mxu0 %v5911_v0 }
 0x68e   :  { %5251 = vmatpush3.bf16.msra.mxu1 %v5654_v61 }
 0x68f   :  { %5252 = vmatprep.subr.bf16.mxu1 %v5911_v0 }
 0x690   :  { %5277 = vmatpush3.bf16.msra.mxu0 %v5649_v11 }
 0x691   :  { %5278 = vmatprep.subr.bf16.mxu0 %v5911_v0 }
 0x692   :  { %5253 = vmatpush3.bf16.msra.mxu1 %v5655_v27  ;;  %v5664_v27 = vld [vmem:[#allocation18] sm:$0xff]  }
 0x693   :  { %5254 = vmatprep.subr.bf16.mxu1 %v5911_v0 }
 0x694   :  { %5279 = vmatpush3.bf16.msra.mxu0 %v5650_v53 }
 0x695   :  { %5280 = vmatprep.subr.bf16.mxu0 %v5911_v0 }
 0x696   :  { %5255 = vmatpush3.bf16.msra.mxu1 %v5656_v32  ;;  %v5691_v32 = vld [vmem:[#allocation17 + $0x8] sm:$0xff]  }
 0x697   :  { %5256 = vmatprep.subr.bf16.mxu1 %v5911_v0 }
 0x698   :  { %5281 = vmatpush3.bf16.msra.mxu0 %v5651_v36 }
 0x699   :  { %5306 = vmatprep.subr.bf16.mxu0 %v5911_v0 }
 0x69a   :  { %5257 = vmatpush3.bf16.msra.mxu1 %v5658_v30 }
 0x69b   :  { %5283 = vmatmul.mubr.msk.bf16.vlgmr.msra.gmra.mrb[48].mxu0 %vm4379_vm11, %v5913_v4  ;;  %5258 = vmatprep.subr.bf16.mxu1 %v5911_v0 }
 0x69c   :  { %5322 = vmatprep.mubr.msk.bf16.mxu0 %vm5912_vm0, %v5911_v0  ;;  %5307 = vmatpush3.bf16.msra.mxu0 %v5657_v35 }
 0x69d   :  { %5308 = vmatprep.subr.bf16.mxu0 %v5911_v0 }
 0x69e   :  { %5259 = vmatpush3.bf16.msra.mxu1 %v5660_v56  ;;  %v5668_v56 = vld [vmem:[#allocation18 + $0x10] sm:$0xff]  }
 0x69f   :  { %5260 = vmatprep.subr.bf16.mxu1 %v5911_v0 }
 0x6a0   :  { %5309 = vmatpush3.bf16.msra.mxu0 %v5659_v54 }
 0x6a1   :  { %5310 = vmatprep.subr.bf16.mxu0 %v5911_v0 }
 0x6a2   :  { %5261 = vmatpush3.bf16.msra.mxu1 %v5662_v24 }
 0x6a3   :  { %5286 = vmatprep.subr.bf16.mxu1 %v5911_v0 }
 0x6a4   :  { %5311 = vmatpush3.bf16.msra.mxu0 %v5661_v55 }
 0x6a5   :  { %5312 = vmatprep.subr.bf16.mxu0 %v5911_v0 }
 0x6a8   :  { %5313 = vmatpush3.bf16.msra.mxu0 %v5663_v6 }
 0x6a9   :  { %5314 = vmatprep.subr.bf16.mxu0 %v5911_v0 }
 0x6ac   :  { %5315 = vmatpush3.bf16.msra.mxu0 %v5665_v34  ;;  %v5670_v34 = vld [vmem:[#allocation18 + $0x18] sm:$0xff]  }
 0x6ad   :  { %5316 = vmatprep.subr.bf16.mxu0 %v5911_v0 }
 0x6b0   :  { %5317 = vmatpush3.bf16.msra.mxu0 %v5667_v58 }
 0x6b1   :  { %5318 = vmatprep.subr.bf16.mxu0 %v5911_v0 }
 0x6b4   :  { %5319 = vmatpush3.bf16.msra.mxu0 %v5669_v60  ;;  %v3164_v60 = vmul.f32 %v6749_v5, %v6896_v13 }
 0x6b5   :  { %5320 = vmatprep.subr.bf16.mxu0 %v5911_v0 }
 0x6b8   :  { %5321 = vmatpush3.bf16.msra.mxu0 %v5671_v8 }
 0x6b9   :  { %5346 = vmatprep.subr.bf16.mxu0 %v5911_v0 }
 0x738   :  { %v2561_v63 = vpop.f32.mrb[36].mxu1 }
 0x739   :  { %v2562_v51 = vadd.f32 %v6976_v2, %v2561_v63  ;;  %v5184_v16 = vpop.f32.mrb[37].mxu1 }
 0x73a   :  { %v2564_v3 = vpop.f32.mrb[38].mxu1  ;;  %v5672_v16 = vld [vmem:[#allocation18 + $0x20] sm:$0xff]  }
 0x73b   :  { %v2574_v12 = vadd.f32 %v2573_v1, %v2562_v51  ;;  %v5185_v9 = vpop.f32.mrb[39].mxu1 }
 0x73c   :  { %v5673_v9 = vld [vmem:[#allocation15] sm:$0xff]  }
 0x73d   :  { %v6987_v14 = vsub.f32 %v2574_v12, %v6850_v47 }
 0x73f   :  { %v2577_v18 = vsub.f32 %v6987_v14, %v6847_v23 }
 0x741   :  { %vm2578_vm12 = vcmp.gt.f32.partialorder %v2577_v18, 0.0  ;;  %v5674_v18 = vld [vmem:[#allocation18 + $0x28] sm:$0xff]  }
 0x742   :  { %v4349_v20 = vsel %vm2578_vm12, 1.0, %v5911_v0 }
 0x743   :  { %v3036_v19 = vmul.f32 %v4349_v20, %v6383_v17 }
 0x745   :  { %v6995_v37 = vadd.f32 %v3036_v19, %v3034_v52  ;;  %v5675_v19 = vld [vmem:[#allocation15 + $0x8] sm:$0xff]   ;;  %v5676_v52 = vld [vmem:[#allocation18 + $0x30] sm:$0xff]  }
 0x747   :  { %v3038_v21 = vmul.f32 1.8, %v6995_v37  ;;  %v3501_v13 = vmul.f32 %v6995_v37, %v6380_v15 }
 0x749   :  { %v6998_v39 = vadd.f32 0.01, %v3038_v21 }
 0x74b   :  { %v7001_v47 = vmul.f32 %v4349_v20, %v6998_v39 }
 0x74e   :  { %v2908_v26 = vpop.f32.mrb[44].mxu0 }
 0x74f   :  { %v5244_v25 = vpop.f32.mrb[45].mxu0 }
 0x750   :  { %v2911_v23 = vpop.f32.mrb[46].mxu0  ;;  %v5677_v25 = vld [vmem:[#allocation15 + $0x10] sm:$0xff]  }
 0x751   :  { %v5245_v22 = vpop.f32.mrb[47].mxu0  ;;  %v5678_v23 = vld [vmem:[#allocation18 + $0x38] sm:$0xff]  }
 0x752   :  { %v5680_v22 = vld [vmem:[#allocation15 + $0x20] sm:$0xff]  }
 0x758   :  { %v2820_v50 = vpop.f32.mrb[40].mxu1 }
 0x759   :  { %v2909_v49 = vadd.f32 %v2908_v26, %v2820_v50  ;;  %v5224_v31 = vpop.f32.mrb[41].mxu1  ;;  %v5681_v50 = vld [vmem:[#allocation15 + $0x28] sm:$0xff]  }
 0x75a   :  { %v2823_v11 = vpop.f32.mrb[42].mxu1  ;;  %v5683_v31 = vld [vmem:[#allocation15 + $0x38] sm:$0xff]  }
 0x75b   :  { %v2914_v53 = vadd.f32 %v6699_v40, %v2909_v49  ;;  %v5225_v36 = vpop.f32.mrb[43].mxu1  ;;  %v5682_v49 = vld [vmem:[#allocation15 + $0x30] sm:$0xff]   ;;  %v5684_v11 = vld [vmem:[#allocation20] sm:$0xff]  }
 0x75c   :  { %v5687_v36 = vld [vmem:[#allocation20 + $0x18] sm:$0xff]  }
 0x75d   :  { %v2922_v33 = vadd.f32 %v2921_v43, %v2914_v53  ;;  %v5685_v53 = vld [vmem:[#allocation20 + $0x8] sm:$0xff]   ;;  %v5686_v43 = vld [vmem:[#allocation20 + $0x10] sm:$0xff]  }
 0x75f   :  { %v7007_v7 = vsub.f32 %v2922_v33, %v6889_v59  ;;  %v5666_v59 = vld [vmem:[#allocation18 + $0x8] sm:$0xff]   ;;  %v5689_v33 = vld [vmem:[#allocation17] sm:$0xff]  }
 0x761   :  { %v2925_v61 = vsub.f32 %v7007_v7, %v6886_v62  ;;  %v3388_v37 = vmul.f32 %v6705_v46, %v7007_v7 }
 0x763   :  { %vm7011_vm13 = vcmp.gt.f32.partialorder %v2925_v61, 0.0  ;;  %v5688_v61 = vld [vmem:[#allocation20 + $0x20] sm:$0xff]  }
 0x764   :  { %v4381_v35 = vsel %vm7011_vm13, 1.0, %v5911_v0  ;;  %vm4390_vm14 = vmpackc.low %vm7011_vm13, %vm7011_vm13 }
 0x765   :  { %5263 = vmatmul.mubr.msk.bf16.vlgmr.msra.gmra.mrb[44].mxu1 %vm4390_vm14, %v5913_v4  ;;  %v3384_v62 = vmul.f32 %v4381_v35, %v6244_v42 }
 0x766   :  { %5287 = vmatpush3.bf16.msra.mxu1 %v5664_v27  ;;  %5302 = vmatprep.mubr.msk.bf16.mxu1 %vm5912_vm0, %v5911_v0  ;;  %v5690_v27 = vld [vmem:[#allocation20 + $0x28] sm:$0xff]  }
 0x767   :  { %v7032_v30 = vadd.f32 %v3384_v62, %v3382_v45  ;;  %5288 = vmatprep.subr.bf16.mxu1 %v5911_v0  ;;  %v5693_v45 = vld [vmem:[#allocation17 + $0x10] sm:$0xff]   ;;  %v5694_v62 = vld [vmem:[#allocation20 + $0x38] sm:$0xff]  }
 0x769   :  { %v3386_v54 = vmul.f32 1.8, %v7032_v30  ;;  %v3849_v46 = vmul.f32 %v7032_v30, %v6240_v38 }
 0x76a   :  { %5289 = vmatpush3.bf16.msra.mxu1 %v5666_v59  ;;  %v5695_v59 = vld [vmem:[#allocation17 + $0x18] sm:$0xff]  }
 0x76b   :  { %5290 = vmatprep.subr.bf16.mxu1 %v5911_v0  ;;  %v7037_v55 = vadd.f32 0.01, %v3386_v54  ;;  %v5697_v54 = vld [vmem:[#allocation17 + $0x20] sm:$0xff]  }
 0x76d   :  { %v7040_v24 = vmul.f32 %v4381_v35, %v7037_v55  ;;  %v5692_v35 = vld [vmem:[#allocation20 + $0x30] sm:$0xff]  }
 0x76e   :  { %v3149_v6 = vpop.f32.mrb[48].mxu0  ;;  %5291 = vmatpush3.bf16.msra.mxu1 %v5668_v56  ;;  %v5699_v56 = vld [vmem:[#allocation17 + $0x28] sm:$0xff]  }
 0x76f   :  { %v3157_v58 = vadd.f32 %v3156_v57, %v3149_v6  ;;  %v5284_v8 = vpop.f32.mrb[49].mxu0  ;;  %5292 = vmatprep.subr.bf16.mxu1 %v5911_v0  ;;  %v5701_v57 = vld [vmem:[#allocation17 + $0x30] sm:$0xff]   ;;  %v5703_v6 = vld [vmem:[#allocation17 + $0x38] sm:$0xff]  }
 0x770   :  { %v3152_v63 = vpop.f32.mrb[50].mxu0 }
 0x771   :  { %v3165_v51 = vadd.f32 %v3164_v60, %v3157_v58  ;;  %v5285_v1 = vpop.f32.mrb[51].mxu0  ;;  %v3040_v60 = vmul.f32 %v6982_v48, %v6987_v14 }
 0x772   :  { %5293 = vmatpush3.bf16.msra.mxu1 %v5670_v34 }
 0x773   :  { %v7046_v3 = vsub.f32 %v3165_v51, %v6933_v29  ;;  %5294 = vmatprep.subr.bf16.mxu1 %v5911_v0 }
 0x775   :  { %v3168_v12 = vsub.f32 %v7046_v3, %v6929_v10  ;;  %v3625_v10 = vmul.f32 %v6924_v28, %v6155_v41  ;;  %v5679_v28 = vld [vmem:[#allocation15 + $0x18] sm:$0xff]  }
 0x776   :  { %5295 = vmatpush3.bf16.msra.mxu1 %v5672_v16 }
 0x777   :  { %5296 = vmatprep.subr.bf16.mxu1 %v5911_v0  ;;  %vm7052_vm15 = vcmp.gt.f32.partialorder %v3168_v12, 0.0 }
 0x778   :  { %vm4422_vm1 = vmpackc.low %vm7052_vm15, %vm7052_vm15  ;;  %v4403_v29 = vsel %vm7052_vm15, 1.0, %v5911_v0 }
 0x779   :  { %5323 = vmatmul.mubr.msk.bf16.vlgmr.msra.gmra.mrb[52].mxu0 %vm4422_vm1, %v5913_v4  ;;  %v3627_v20 = vmul.f32 %v4403_v29, %v6158_v44 }
 0x77a   :  { %5347 = vmatpush3.bf16.msra.mxu0 %v5673_v9  ;;  %5297 = vmatpush3.bf16.msra.mxu1 %v5674_v18 }
 0x77b   :  { %5348 = vmatprep.subr.bf16.mxu0 %v5911_v0  ;;  %5298 = vmatprep.subr.bf16.mxu1 %v5911_v0  ;;  %v3628_v21 = vadd.f32 %v3627_v20, %v3625_v10 }
 0x77c   :  { %5362 = vmatprep.mubr.msk.bf16.mxu0 %vm5912_vm0, %v5911_v0 }
 0x77d   :  { %v3629_v26 = vmul.f32 1.8, %v3628_v21 }
 0x77e   :  { %5349 = vmatpush3.bf16.msra.mxu0 %v5675_v19  ;;  %5299 = vmatpush3.bf16.msra.mxu1 %v5676_v52 }
 0x77f   :  { %5350 = vmatprep.subr.bf16.mxu0 %v5911_v0  ;;  %5300 = vmatprep.subr.bf16.mxu1 %v5911_v0  ;;  %v7077_v41 = vadd.f32 0.01, %v3629_v26 }
 0x781   :  { %v7080_v44 = vmul.f32 %v4403_v29, %v7077_v41 }
 0x782   :  { %5351 = vmatpush3.bf16.msra.mxu0 %v5677_v25  ;;  %5301 = vmatpush3.bf16.msra.mxu1 %v5678_v23 }
 0x783   :  { %5352 = vmatprep.subr.bf16.mxu0 %v5911_v0  ;;  %5326 = vmatprep.subr.bf16.mxu1 %v5911_v0 }
 0x785   :  { %5303 = vmatmul.mubr.msk.bf16.vlgmr.msra.gmra.mrb[48].mxu1 %vm4390_vm14, %v5913_v4 }
 0x786   :  { %5353 = vmatpush3.bf16.msra.mxu0 %v5679_v28  ;;  %5342 = vmatprep.mubr.msk.bf16.mxu1 %vm5912_vm0, %v5911_v0 }
 0x787   :  { %5354 = vmatprep.subr.bf16.mxu0 %v5911_v0  ;;  %5327 = vmatpush3.bf16.msra.mxu1 %v5684_v11  ;;  %v5696_v11 = vld [vmem:[#allocation18] sm:$0xff]  }
 0x788   :  { %5328 = vmatprep.subr.bf16.mxu1 %v5911_v0 }
 0x78a   :  { %5355 = vmatpush3.bf16.msra.mxu0 %v5680_v22 }
 0x78b   :  { %5356 = vmatprep.subr.bf16.mxu0 %v5911_v0  ;;  %5329 = vmatpush3.bf16.msra.mxu1 %v5685_v53 }
 0x78c   :  { %5330 = vmatprep.subr.bf16.mxu1 %v5911_v0 }
 0x78e   :  { %5357 = vmatpush3.bf16.msra.mxu0 %v5681_v50 }
 0x78f   :  { %5358 = vmatprep.subr.bf16.mxu0 %v5911_v0  ;;  %5331 = vmatpush3.bf16.msra.mxu1 %v5686_v43 }
 0x790   :  { %5332 = vmatprep.subr.bf16.mxu1 %v5911_v0 }
 0x792   :  { %5359 = vmatpush3.bf16.msra.mxu0 %v5682_v49 }
 0x793   :  { %5360 = vmatprep.subr.bf16.mxu0 %v5911_v0  ;;  %5333 = vmatpush3.bf16.msra.mxu1 %v5687_v36  ;;  %v3623_v36 = vld [vmem:[#allocation12 + $0x38] sm:$0xff] }
 0x794   :  { %5334 = vmatprep.subr.bf16.mxu1 %v5911_v0 }
 0x796   :  { %5361 = vmatpush3.bf16.msra.mxu0 %v5683_v31 }
 0x797   :  { %5386 = vmatprep.subr.bf16.mxu0 %v5911_v0  ;;  %5335 = vmatpush3.bf16.msra.mxu1 %v5688_v61 }
 0x798   :  { %5336 = vmatprep.subr.bf16.mxu1 %v5911_v0 }
 0x799   :  { %5363 = vmatmul.mubr.msk.bf16.vlgmr.msra.gmra.mrb[56].mxu0 %vm4422_vm1, %v5913_v4 }
 0x79a   :  { %5402 = vmatprep.mubr.msk.bf16.mxu0 %vm5912_vm0, %v5911_v0  ;;  %5387 = vmatpush3.bf16.msra.mxu0 %v5689_v33  ;;  %v5700_v33 = vld [vmem:[#allocation18 + $0x10] sm:$0xff]  }
 0x79b   :  { %5388 = vmatprep.subr.bf16.mxu0 %v5911_v0  ;;  %5337 = vmatpush3.bf16.msra.mxu1 %v5690_v27 }
 0x79c   :  { %5338 = vmatprep.subr.bf16.mxu1 %v5911_v0 }
 0x79e   :  { %5389 = vmatpush3.bf16.msra.mxu0 %v5691_v32 }
 0x79f   :  { %5390 = vmatprep.subr.bf16.mxu0 %v5911_v0  ;;  %5339 = vmatpush3.bf16.msra.mxu1 %v5692_v35 }
 0x7a0   :  { %5340 = vmatprep.subr.bf16.mxu1 %v5911_v0 }
 0x7a2   :  { %5391 = vmatpush3.bf16.msra.mxu0 %v5693_v45  ;;  %v5702_v45 = vld [vmem:[#allocation18 + $0x18] sm:$0xff]  }
 0x7a3   :  { %5392 = vmatprep.subr.bf16.mxu0 %v5911_v0  ;;  %5341 = vmatpush3.bf16.msra.mxu1 %v5694_v62 }
 0x7a4   :  { %5366 = vmatprep.subr.bf16.mxu1 %v5911_v0 }
 0x7a6   :  { %5393 = vmatpush3.bf16.msra.mxu0 %v5695_v59 }
 0x7a7   :  { %5394 = vmatprep.subr.bf16.mxu0 %v5911_v0 }
 0x7aa   :  { %5395 = vmatpush3.bf16.msra.mxu0 %v5697_v54 }
 0x7ab   :  { %5396 = vmatprep.subr.bf16.mxu0 %v5911_v0 }
 0x7ae   :  { %5397 = vmatpush3.bf16.msra.mxu0 %v5699_v56  ;;  %v5704_v56 = vld [vmem:[#allocation18 + $0x20] sm:$0xff]  }
 0x7af   :  { %5398 = vmatprep.subr.bf16.mxu0 %v5911_v0 }
 0x7b2   :  { %5399 = vmatpush3.bf16.msra.mxu0 %v5701_v57 }
 0x7b3   :  { %5400 = vmatprep.subr.bf16.mxu0 %v5911_v0 }
 0x7b6   :  { %5401 = vmatpush3.bf16.msra.mxu0 %v5703_v6 }
 0x7b7   :  { %5426 = vmatprep.subr.bf16.mxu0 %v5911_v0 }
 0x838   :  { %v3028_v34 = vpop.f32.mrb[44].mxu1 }
 0x839   :  { %v3029_v58 = vadd.f32 %v6976_v2, %v3028_v34  ;;  %v5264_v8 = vpop.f32.mrb[45].mxu1  ;;  %v5708_v34 = vld [vmem:[#allocation20] sm:$0xff]  }
 0x83a   :  { %v3031_v63 = vpop.f32.mrb[46].mxu1  ;;  %v5711_v8 = vld [vmem:[#allocation20 + $0x18] sm:$0xff]  }
 0x83b   :  { %v3041_v51 = vadd.f32 %v3040_v60, %v3029_v58  ;;  %v5265_v1 = vpop.f32.mrb[47].mxu1  ;;  %v5709_v58 = vld [vmem:[#allocation20 + $0x8] sm:$0xff]   ;;  %v5710_v60 = vld [vmem:[#allocation20 + $0x10] sm:$0xff]   ;;  %v5712_v63 = vld [vmem:[#allocation20 + $0x20] sm:$0xff]  }
 0x83c   :  { %v5714_v1 = vld [vmem:[#allocation20 + $0x30] sm:$0xff]  }
 0x83d   :  { %v7125_v16 = vsub.f32 %v3041_v51, %v7001_v47  ;;  %v5713_v51 = vld [vmem:[#allocation20 + $0x28] sm:$0xff]  }
 0x83f   :  { %v3044_v12 = vsub.f32 %v7125_v16, %v6998_v39 }
 0x841   :  { %vm3045_vm2 = vcmp.gt.f32.partialorder %v3044_v12, 0.0  ;;  %v5715_v12 = vld [vmem:[#allocation20 + $0x38] sm:$0xff]  }
 0x842   :  { %v4392_v9 = vsel %vm3045_vm2, 1.0, %v5911_v0 }
 0x843   :  { %v3503_v18 = vmul.f32 %v4392_v9, %v6383_v17 }
 0x845   :  { %v7133_v29 = vadd.f32 %v3503_v18, %v3501_v13  ;;  %v5717_v18 = vld [vmem:[#allocation21 + $0x8] sm:$0xff]   ;;  %v5718_v13 = vld [vmem:[#allocation21 + $0x10] sm:$0xff]  }
 0x847   :  { %v3505_v14 = vmul.f32 1.8, %v7133_v29 }
 0x849   :  { %v7136_v10 = vadd.f32 0.01, %v3505_v14 }
 0x84b   :  { %v7139_v47 = vmul.f32 %v4392_v9, %v7136_v10  ;;  %v5716_v9 = vld [vmem:[#allocation21] sm:$0xff]  }
 0x84c   :  { %v3375_v20 = vpop.f32.mrb[52].mxu0 }
 0x84d   :  { %v5324_v19 = vpop.f32.mrb[53].mxu0 }
 0x84e   :  { %v3378_v39 = vpop.f32.mrb[54].mxu0  ;;  %v3507_v19 = vmul.f32 %v6982_v48, %v7125_v16 }
 0x84f   :  { %v5325_v52 = vpop.f32.mrb[55].mxu0 }
 0x858   :  { %v3287_v21 = vpop.f32.mrb[48].mxu1 }
 0x859   :  { %v3376_v26 = vadd.f32 %v3375_v20, %v3287_v21  ;;  %v5304_v25 = vpop.f32.mrb[49].mxu1 }
 0x85a   :  { %v3290_v23 = vpop.f32.mrb[50].mxu1 }
 0x85b   :  { %v3381_v28 = vadd.f32 %v6699_v40, %v3376_v26  ;;  %v5305_v22 = vpop.f32.mrb[51].mxu1 }
 0x85c   :  { %v3968_v22 = vmul.f32 %v7133_v29, %v6380_v15  ;;  %v5736_v15 = vld [vmem:[%s7262_s11] ss:$0 sm:$0xff] }
 0x85d   :  { %v3389_v50 = vadd.f32 %v3388_v37, %v3381_v28 }
 0x85f   :  { %v7145_v49 = vsub.f32 %v3389_v50, %v7040_v24 }
 0x861   :  { %v3392_v31 = vsub.f32 %v7145_v49, %v7037_v55  ;;  %v5698_v55 = vld [vmem:[#allocation18 + $0x8] sm:$0xff]   ;;  %v3855_v29 = vmul.f32 %v5736_v15, %v7145_v49 }
 0x862   :  { %v5721_v49 = vld [vmem:[#allocation21 + $0x28] sm:$0xff]  }
 0x863   :  { %vm7149_vm3 = vcmp.gt.f32.partialorder %v3392_v31, 0.0 }
 0x864   :  { %v4424_v40 = vsel %vm7149_vm3, 1.0, %v5911_v0  ;;  %vm4433_vm4 = vmpackc.low %vm7149_vm3, %vm7149_vm3 }
 0x865   :  { %5343 = vmatmul.mubr.msk.bf16.vlgmr.msra.gmra.mrb[52].mxu1 %vm4433_vm4, %v5913_v4  ;;  %v3851_v7 = vmul.f32 %v4424_v40, %v6244_v42  ;;  %v3631_v42 = vmul.f32 %v6749_v5, %v7046_v3  ;;  %v5705_v3 = vld [vmem:[#allocation18 + $0x28] sm:$0xff]  }
 0x866   :  { %5367 = vmatpush3.bf16.msra.mxu1 %v5696_v11  ;;  %5382 = vmatprep.mubr.msk.bf16.mxu1 %vm5912_vm0, %v5911_v0 }
 0x867   :  { %v3852_v24 = vadd.f32 %v3851_v7, %v3849_v46  ;;  %5368 = vmatprep.subr.bf16.mxu1 %v5911_v0 }
 0x869   :  { %v3853_v43 = vmul.f32 1.8, %v3852_v24 }
 0x86a   :  { %5369 = vmatpush3.bf16.msra.mxu1 %v5698_v55 }
 0x86b   :  { %5370 = vmatprep.subr.bf16.mxu1 %v5911_v0  ;;  %v7172_v61 = vadd.f32 0.01, %v3853_v43  ;;  %v5735_v43 = vld [vmem:[%s7255_s4] ss:$0 sm:$0xff] }
 0x86c   :  { %v3616_v27 = vpop.f32.mrb[56].mxu0 }
 0x86d   :  { %v3624_v38 = vadd.f32 %v3623_v36, %v3616_v27  ;;  %v5364_v30 = vpop.f32.mrb[57].mxu0  ;;  %v7177_v32 = vmul.f32 %v4424_v40, %v7172_v61 }
 0x86e   :  { %v3619_v35 = vpop.f32.mrb[58].mxu0  ;;  %5371 = vmatpush3.bf16.msra.mxu1 %v5700_v33 }
 0x86f   :  { %v3632_v62 = vadd.f32 %v3631_v42, %v3624_v38  ;;  %v5365_v59 = vpop.f32.mrb[59].mxu0  ;;  %5372 = vmatprep.subr.bf16.mxu1 %v5911_v0  ;;  %v5719_v35 = vld [vmem:[#allocation21 + $0x18] sm:$0xff]  }
 0x871   :  { %v3634_v54 = vsub.f32 %v3632_v62, %v7080_v44  ;;  %v5706_v44 = vld [vmem:[#allocation18 + $0x30] sm:$0xff]  }
 0x872   :  { %5373 = vmatpush3.bf16.msra.mxu1 %v5702_v45  ;;  %v5720_v45 = vld [vmem:[#allocation21 + $0x20] sm:$0xff]  }
 0x873   :  { %v3635_v57 = vsub.f32 %v3634_v54, %v7077_v41  ;;  %5374 = vmatprep.subr.bf16.mxu1 %v5911_v0  ;;  %v5707_v41 = vld [vmem:[#allocation18 + $0x38] sm:$0xff]  }
 0x875   :  { %vm3636_vm5 = vcmp.gt.f32.partialorder %v3635_v57, 0.0 }
 0x876   :  { %5375 = vmatpush3.bf16.msra.mxu1 %v5704_v56  ;;  %v4446_v5 = vsel %vm3636_vm5, 1.0, %v5911_v0  ;;  %vm4465_vm6 = vmpackc.low %vm3636_vm5, %vm3636_vm5 }
 0x877   :  { %v3639_v6 = vpack.c.bf16 %v4446_v5, %v4446_v5  ;;  %5403 = vmatmul.mubr.msk.bf16.vlgmr.msra.gmra.mrb[60].mxu0 %vm4465_vm6, %v5913_v4  ;;  %5376 = vmatprep.subr.bf16.mxu1 %v5911_v0 }
 0x878   :  { %5442 = vmatprep.mubr.msk.bf16.mxu0 %vm5912_vm0, %v5911_v0  ;;  %5427 = vmatpush3.bf16.msra.mxu0 %v5716_v9 }
 0x879   :  { %3986 = vst [vmem:[#allocation4] sm:$0xf] %v3639_v6  ;;  %5428 = vmatprep.subr.bf16.mxu0 %v5911_v0 }
 0x87a   :  { %5377 = vmatpush3.bf16.msra.mxu1 %v5705_v3 }
 0x87b   :  { %5378 = vmatprep.subr.bf16.mxu1 %v5911_v0 }
 0x87c   :  { %5429 = vmatpush3.bf16.msra.mxu0 %v5717_v18 }
 0x87d   :  { %5430 = vmatprep.subr.bf16.mxu0 %v5911_v0 }
 0x87e   :  { %5379 = vmatpush3.bf16.msra.mxu1 %v5706_v44 }
 0x87f   :  { %5380 = vmatprep.subr.bf16.mxu1 %v5911_v0 }
 0x880   :  { %5431 = vmatpush3.bf16.msra.mxu0 %v5718_v13 }
 0x881   :  { %5432 = vmatprep.subr.bf16.mxu0 %v5911_v0 }
 0x882   :  { %5381 = vmatpush3.bf16.msra.mxu1 %v5707_v41 }
 0x883   :  { %5406 = vmatprep.subr.bf16.mxu1 %v5911_v0 }
 0x884   :  { %5433 = vmatpush3.bf16.msra.mxu0 %v5719_v35 }
 0x885   :  { %5383 = vmatmul.mubr.msk.bf16.vlgmr.msra.gmra.mrb[56].mxu1 %vm4433_vm4, %v5913_v4  ;;  %5434 = vmatprep.subr.bf16.mxu0 %v5911_v0 }
 0x886   :  { %5422 = vmatprep.mubr.msk.bf16.mxu1 %vm5912_vm0, %v5911_v0  ;;  %5407 = vmatpush3.bf16.msra.mxu1 %v5708_v34 }
 0x887   :  { %5408 = vmatprep.subr.bf16.mxu1 %v5911_v0 }
 0x888   :  { %5435 = vmatpush3.bf16.msra.mxu0 %v5720_v45 }
 0x889   :  { %5436 = vmatprep.subr.bf16.mxu0 %v5911_v0 }
 0x88a   :  { %5409 = vmatpush3.bf16.msra.mxu1 %v5709_v58 }
 0x88b   :  { %5410 = vmatprep.subr.bf16.mxu1 %v5911_v0 }
 0x88c   :  { %5437 = vmatpush3.bf16.msra.mxu0 %v5721_v49 }
 0x88d   :  { %5438 = vmatprep.subr.bf16.mxu0 %v5911_v0 }
 0x88e   :  { %5411 = vmatpush3.bf16.msra.mxu1 %v5710_v60 }
 0x88f   :  { %5412 = vmatprep.subr.bf16.mxu1 %v5911_v0 }
 0x892   :  { %5413 = vmatpush3.bf16.msra.mxu1 %v5711_v8 }
 0x893   :  { %5414 = vmatprep.subr.bf16.mxu1 %v5911_v0 }
 0x896   :  { %5415 = vmatpush3.bf16.msra.mxu1 %v5712_v63 }
 0x897   :  { %5416 = vmatprep.subr.bf16.mxu1 %v5911_v0 }
 0x89a   :  { %5417 = vmatpush3.bf16.msra.mxu1 %v5713_v51 }
 0x89b   :  { %5418 = vmatprep.subr.bf16.mxu1 %v5911_v0 }
 0x89e   :  { %5419 = vmatpush3.bf16.msra.mxu1 %v5714_v1 }
 0x89f   :  { %5420 = vmatprep.subr.bf16.mxu1 %v5911_v0 }
 0x8a2   :  { %5421 = vmatpush3.bf16.msra.mxu1 %v5715_v12 }
 0x938   :  { %v3495_v14 = vpop.f32.mrb[52].mxu1 }
 0x939   :  { %v3496_v20 = vadd.f32 %v6976_v2, %v3495_v14  ;;  %v5344_v39 = vpop.f32.mrb[53].mxu1 }
 0x93a   :  { %v3498_v52 = vpop.f32.mrb[54].mxu1 }
 0x93b   :  { %v3508_v21 = vadd.f32 %v3507_v19, %v3496_v20  ;;  %v5345_v26 = vpop.f32.mrb[55].mxu1 }
 0x93d   :  { %v3510_v25 = vsub.f32 %v3508_v21, %v7139_v47 }
 0x93f   :  { %v3511_v23 = vsub.f32 %v3510_v25, %v7136_v10  ;;  %v3974_v59 = vmul.f32 %v6982_v48, %v3510_v25 }
 0x941   :  { %vm3512_vm0 = vcmp.gt.f32.partialorder %v3511_v23, 0.0 }
 0x942   :  { %v4435_v28 = vsel %vm3512_vm0, 1.0, %v5911_v0 }
 0x943   :  { %v3970_v37 = vmul.f32 %v4435_v28, %v6383_v17 }
 0x945   :  { %v3971_v50 = vadd.f32 %v3970_v37, %v3968_v22 }
 0x947   :  { %v3972_v31 = vmul.f32 1.8, %v3971_v50 }
 0x949   :  { %v3973_v11 = vadd.f32 0.01, %v3972_v31 }
 0x94a   :  { %v3842_v16 = vpop.f32.mrb[60].mxu0 }
 0x94b   :  { %v5404_v53 = vpop.f32.mrb[61].mxu0  ;;  %v3976_v40 = vmul.f32 %v4435_v28, %v3973_v11 }
 0x94c   :  { %v3845_v46 = vpop.f32.mrb[62].mxu0 }
 0x94d   :  { %v5405_v7 = vpop.f32.mrb[63].mxu0 }
 0x958   :  { %v3754_v55 = vpop.f32.mrb[56].mxu1 }
 0x959   :  { %v3843_v47 = vadd.f32 %v3842_v16, %v3754_v55  ;;  %v5384_v24 = vpop.f32.mrb[57].mxu1 }
 0x95a   :  { %v3757_v10 = vpop.f32.mrb[58].mxu1 }
 0x95b   :  { %v3848_v17 = vadd.f32 %v5735_v43, %v3843_v47  ;;  %v5385_v36 = vpop.f32.mrb[59].mxu1 }
 0x95d   :  { %v3856_v33 = vadd.f32 %v3855_v29, %v3848_v17 }
 0x95f   :  { %v3858_v27 = vsub.f32 %v3856_v33, %v7177_v32  ;;  %v5723_v32 = vld [vmem:[#allocation21 + $0x38] sm:$0xff]  }
 0x961   :  { %v3859_v38 = vsub.f32 %v3858_v27, %v7172_v61  ;;  %v5722_v61 = vld [vmem:[#allocation21 + $0x30] sm:$0xff]  }
 0x962   :  { %5439 = vmatpush3.bf16.msra.mxu0 %v5722_v61 }
 0x963   :  { %vm3860_vm7 = vcmp.gt.f32.partialorder %v3859_v38, 0.0  ;;  %5440 = vmatprep.subr.bf16.mxu0 %v5911_v0 }
 0x964   :  { %v4467_v42 = vsel %vm3860_vm7, 1.0, %v5911_v0  ;;  %vm4476_vm8 = vmpackc.low %vm3860_vm7, %vm3860_vm7 }
 0x965   :  { %v3863_v30 = vpack.c.bf16 %v4467_v42, %v4467_v42  ;;  %5423 = vmatmul.mubr.msk.bf16.vlgmr.msra.gmra.mrb[60].mxu1 %vm4476_vm8, %v5913_v4 }
 0x966   :  { %5441 = vmatpush3.bf16.msra.mxu0 %v5723_v32 }
 0x967   :  { %3989 = vst [vmem:[#allocation7] sm:$0xf] %v3863_v30 }
 0xa38   :  { %v3962_v4 = vpop.f32.mrb[60].mxu1 }
 0xa39   :  { %v3963_v62 = vadd.f32 %v6976_v2, %v3962_v4  ;;  %v5424_v54 = vpop.f32.mrb[61].mxu1  ;;  %v4479_v2 = vld [vmem:[%s7316_s1] ss:$0 sm:$0xff] }
 0xa3a   :  { %v3965_v56 = vpop.f32.mrb[62].mxu1 }
 0xa3b   :  { %v3975_v57 = vadd.f32 %v3974_v59, %v3963_v62  ;;  %v5425_v5 = vpop.f32.mrb[63].mxu1 }
 0xa3d   :  { %v3977_v3 = vsub.f32 %v3975_v57, %v3976_v40 }
 0xa3f   :  { %v3978_v6 = vsub.f32 %v3977_v3, %v3973_v11 }
 0xa41   :  { %vm3979_vm9 = vcmp.gt.f32.partialorder %v3978_v6, 0.0 }
 0xa42   :  { %v4478_v44 = vsel %vm3979_vm9, 1.0, %v5911_v0 }
 0xa43   :  { %v3982_v41 = vpack.c.bf16 %v4478_v44, %v4478_v44 }
 0xa45   :  { %3984 = vst [vmem:[#allocation2 + $0x1c] sm:$0xf] %v3982_v41  ;;  %3992 = vst [vmem:[#allocation10] sm:$0xf] %v3982_v41 }
 0xa4c   :  { %v3998_v34 = vld [vmem:[#allocation2 + $0x1c] sm:$0xf] }
 0xa4d   :  { %5443 = vmatmul.mubr.bf16.vlgmr.msra.gmra.mrb[64].mxu0 %v3998_v34 }
 0xb20   :  { %v4103_v58 = vpop.f32.mrb[64].mxu0 }
 0xb21   :  { %v4104_v48 = vadd.f32 %v4479_v2, %v4103_v58  ;;  %v5444_v60 = vpop.f32.mrb[65].mxu0 }
 0xb22   :  { %v4106_v8 = vpop.f32.mrb[66].mxu0 }
 0xb23   :  { %v4488_v63 = vmul.f32 -1.442695, %v4104_v48  ;;  %v5445_v51 = vpop.f32.mrb[67].mxu0 }
 0xb25   :  { %5724 = vpow2.f32 %v4488_v63 }
 0xb2f   :  { %v5725_v1 = vpop.eup %5724 }
 0xb30   :  { %v4112_v12 = vadd.f32 1.0, %v5725_v1 }
 0xb32   :  { %5726 = vrcp.f32 %v4112_v12 }
 0xb3c   :  { %v5727_v0 = vpop.eup %5726 }
 0xb3d   :  { %4115 = vst [vmem:[#allocation23] sm:$0xff] %v5727_v0 }
 0xb3e   :  { %5880 = shalt.err (!%p5877_p10)
}
 0xb3f   :  { %s7317_s29 = sld [smem:[#allocation33_spill]] }
 0xb45   :  { %s5881_s12 = scalar_lea.hbm %s7317_s29, 128 }
 0xb46   :  { %p5882_p11 = scmp.ne.s32.totalorder %s7317_s29, %s5881_s12  ;;  %p5885_p12 = scmp.lt.u32.totalorder %s5881_s12, %s7317_s29 }
 0xb48   :  { %p5887_p13 = pnand %p5885_p12, %p5882_p11 }
 0xb4a   :  { %5890 = shalt.err (!%p5887_p13)
}
 0xb4b   :  { %4125 = dma.vmem_to_hbm [thread:$0]  %s4123_s21, 128, %s7317_s29, [#allocation14]  }
 0xb4c   :  { %5899 = dma.done.wait [#allocation14], 128  }
 0xb4d   :  { %5900 = vsyncadd [#allocation14], 4294967168 }
 0xb4e   :  { %4129 = vsyncpa [#allocation13], 1 }
 0xb4f   :  { %4130 = vsyncpa [#allocation16], 1 }
 0xb50   :  { %4131 = vsyncpa [#allocation19], 1 }
 0xb51   :  { %4132 = vsyncpa [#allocation22], 1 }
 0xb52   :  { %4133 = vsyncpa [#allocation14], 1 }

</bundles_post_ra>
